<compile_context>
chip_gen: v6e
topology: v6e:2x2x1
jax: 0.10.0
libtpu: 0.0.40
codegen_flags: <defaults>
</compile_context>

<pallas_src>
import math
import jax
import jax.numpy as jnp
from jax.experimental import pallas as pl
from jax.experimental.pallas import tpu as pltpu


def _round_up(x, m):
    return ((x + m - 1) // m) * m


# ----------------------------- Pallas kernels ------------------------------ #

def _matmul_stats_kernel(p_ref, w_ref, y_ref, sum_ref, sq_ref):
    """Pass 1: y = patches @ w (MXU, f32 acc) + per-channel sum / sumsq accum."""
    y = jnp.dot(p_ref[...], w_ref[...], preferred_element_type=jnp.float32)
    y_ref[...] = y

    @pl.when(pl.program_id(0) == 0)
    def _():
        sum_ref[...] = jnp.zeros_like(sum_ref)
        sq_ref[...] = jnp.zeros_like(sq_ref)

    sum_ref[...] += jnp.sum(y, axis=0, keepdims=True)
    sq_ref[...] += jnp.sum(y * y, axis=0, keepdims=True)


def _bn_act_kernel(y_ref, scale_ref, shift_ref, o_ref):
    """Pass 2: folded BN affine + leaky_relu(0.1)."""
    z = y_ref[...] * scale_ref[...] + shift_ref[...]
    o_ref[...] = jnp.where(z >= 0.0, z, 0.1 * z).astype(o_ref.dtype)


def _linear_kernel(x_ref, w_ref, o_ref):
    o_ref[...] = jnp.dot(x_ref[...], w_ref[...],
                         preferred_element_type=jnp.float32)


_VMEM = pl.BlockSpec(memory_space=pltpu.MemorySpace.VMEM)
_VMEM_LIMIT = 32 * 1024 * 1024  # safe on v5e (128M), v6e (128M), v7x (64M)


# ----------------------------- wrappers / glue ------------------------------ #

def _extract_patches(x, kh, kw, stride, pad):
    """x: (N, H, W, C) -> (N*Ho*Wo, kh*kw*C) with taps ordered (kh, kw, C)."""
    N, H, W, C = x.shape
    xp = jnp.pad(x, ((0, 0), (pad, pad), (pad, pad), (0, 0)))
    Ho = (H + 2 * pad - kh) // stride + 1
    Wo = (W + 2 * pad - kw) // stride + 1
    taps = []
    for i in range(kh):
        for j in range(kw):
            taps.append(xp[:, i:i + stride * Ho:stride, j:j + stride * Wo:stride, :])
    p = jnp.stack(taps, axis=3)                      # (N, Ho, Wo, kh*kw, C)
    return p.reshape(N * Ho * Wo, kh * kw * C), (N, Ho, Wo)


def conv_bn_lrelu(x, w, gamma, beta, stride, pad):
    """Fused Conv2d + BatchNorm2d(train) + leaky_relu(0.1).

    x: (N, H, W, Cin) bf16 activations, w: (kh, kw, Cin, Cout) f32.
    Conv bias is intentionally omitted (cancelled by the BN mean subtraction).
    """
    kh, kw, cin, cout = w.shape
    patches, (N, Ho, Wo) = _extract_patches(x, kh, kw, stride, pad)
    M, K = patches.shape
    Kp = _round_up(K, 128)
    Cp = _round_up(cout, 128)
    tm = 512 if M >= 512 else _round_up(M, 8)
    Mp = _round_up(M, tm)

    patches = jnp.pad(patches.astype(jnp.bfloat16), ((0, Mp - M), (0, Kp - K)))
    w2 = jnp.pad(w.reshape(K, cout).astype(jnp.bfloat16),
                 ((0, Kp - K), (0, Cp - cout)))

    grid = (Mp // tm,)

    # --- Pass 1: tiled matmul + global channel statistics ------------------ #
    y, csum, csq = pl.pallas_call(
        _matmul_stats_kernel,
        out_shape=(jax.ShapeDtypeStruct((Mp, Cp), jnp.float32),
                   jax.ShapeDtypeStruct((1, Cp), jnp.float32),
                   jax.ShapeDtypeStruct((1, Cp), jnp.float32)),
        grid=grid,
        in_specs=[pl.BlockSpec((tm, Kp), lambda i: (i, 0)),
                  pl.BlockSpec((Kp, Cp), lambda i: (0, 0))],
        out_specs=(pl.BlockSpec((tm, Cp), lambda i: (i, 0)),
                   pl.BlockSpec((1, Cp), lambda i: (0, 0)),
                   pl.BlockSpec((1, Cp), lambda i: (0, 0))),
        compiler_params=pltpu.CompilerParams(
            dimension_semantics=("arbitrary",),
            vmem_limit_bytes=_VMEM_LIMIT),
    )(patches, w2)

    # --- Fold BN into a single per-channel scale/shift (tiny, outside kernel).
    inv_m = jnp.float32(1.0 / M)
    mean = csum * inv_m                                   # (1, Cp)
    var = jnp.maximum(csq * inv_m - mean * mean, 0.0)     # biased variance
    gpad = jnp.pad(gamma, (0, Cp - cout)).reshape(1, Cp)
    bpad = jnp.pad(beta, (0, Cp - cout)).reshape(1, Cp)
    scale = gpad * jax.lax.rsqrt(var + 1e-5)
    shift = bpad - mean * scale

    # --- Pass 2: apply folded affine + leaky_relu, tiled & parallel --------- #
    out = pl.pallas_call(
        _bn_act_kernel,
        out_shape=jax.ShapeDtypeStruct((Mp, Cp), jnp.bfloat16),
        grid=grid,
        in_specs=[pl.BlockSpec((tm, Cp), lambda i: (i, 0)),
                  pl.BlockSpec((1, Cp), lambda i: (0, 0)),
                  pl.BlockSpec((1, Cp), lambda i: (0, 0))],
        out_specs=pl.BlockSpec((tm, Cp), lambda i: (i, 0)),
        compiler_params=pltpu.CompilerParams(
            dimension_semantics=("parallel",),
            vmem_limit_bytes=_VMEM_LIMIT),
    )(y, scale, shift)

    return out[:M, :cout].reshape(N, Ho, Wo, cout)


def linear_proj(flat, proj):
    """flat: (N, D) bf16, proj: (D, 1) f32 -> (N, 1) f32."""
    N, D = flat.shape
    Np = _round_up(N, 8)
    Dp = _round_up(D, 128)
    x = jnp.pad(flat, ((0, Np - N), (0, Dp - D)))
    # Pad proj columns to 128 so the output store is lane-dense.
    w = jnp.pad(proj.astype(jnp.bfloat16), ((0, Dp - D), (0, 127)))
    out = pl.pallas_call(
        _linear_kernel,
        out_shape=jax.ShapeDtypeStruct((Np, 128), jnp.float32),
        in_specs=[_VMEM, _VMEM],
        out_specs=_VMEM,
        compiler_params=pltpu.CompilerParams(vmem_limit_bytes=_VMEM_LIMIT),
    )(x, w)
    return out[:N, 0:1]


# ------------------------------- parameters -------------------------------- #

def _conv_layer_params(key, cin, cout, k):
    kw_key, kb_key = jax.random.split(key)
    fan_in = cin * k * k
    bound = 1.0 / math.sqrt(fan_in)
    w = jax.random.uniform(kw_key, (k, k, cin, cout), jnp.float32, -bound, bound)
    b = jax.random.uniform(kb_key, (cout,), jnp.float32, -bound, bound)
    gamma = jnp.ones((cout,), jnp.float32)   # BatchNorm2d default weight
    beta = jnp.zeros((cout,), jnp.float32)   # BatchNorm2d default bias
    return dict(w=w, b=b, gamma=gamma, beta=beta)


def init_params(key, num_features=64, channel=3, first_kernel=4):
    nf = num_features
    cfg = [
        (channel, nf, 3, 1, 1),
        (nf, nf, 4, 2, 1),
        (nf, 2 * nf, 3, 1, 1),
        (2 * nf, 2 * nf, 4, 2, 1),
        (2 * nf, 4 * nf, 3, 1, 1),
        (4 * nf, 4 * nf, 4, 2, 1),
        (4 * nf, 8 * nf, 3, 1, 1),
    ]
    keys = jax.random.split(key, len(cfg) + 1)
    convs = []
    for lkey, (cin, cout, k, s, p) in zip(keys[:-1], cfg):
        convs.append((_conv_layer_params(lkey, cin, cout, k), s, p))
    d = 8 * nf * first_kernel * first_kernel
    bound = 1.0 / math.sqrt(d)
    proj = jax.random.uniform(keys[-1], (d, 1), jnp.float32, -bound, bound)
    return dict(convs=convs, proj=proj)


# --------------------------------- forward --------------------------------- #

def forward(params, x_nchw):
    # PyTorch conv inputs are NCHW; convert to NHWC (bf16 for the MXU).
    x = jnp.transpose(x_nchw, (0, 2, 3, 1)).astype(jnp.bfloat16)
    for layer, stride, pad in params["convs"]:
        # Note: conv bias is cancelled by training-mode BatchNorm, so it is not
        # applied in the kernel path.
        x = conv_bn_lrelu(x, layer["w"], layer["gamma"], layer["beta"],
                          stride, pad)
    # x.view(N, -1) in PyTorch flattens in (C, H, W) order.
    n = x.shape[0]
    flat = jnp.transpose(x, (0, 3, 1, 2)).reshape(n, -1)
    return linear_proj(flat, params["proj"])


# ------------------------------ pure-JAX reference -------------------------- #

def forward_ref(params, x_nchw):
    """Same numerics (bf16 MXU inputs, f32 stats) via XLA conv, incl. bias."""
    x = jnp.transpose(x_nchw, (0, 2, 3, 1)).astype(jnp.bfloat16)
    for layer, stride, pad in params["convs"]:
        y = jax.lax.conv_general_dilated(
            x, layer["w"].astype(jnp.bfloat16),
            window_strides=(stride, stride),
            padding=[(pad, pad), (pad, pad)],
            dimension_numbers=("NHWC", "HWIO", "NHWC"),
            preferred_element_type=jnp.float32)
        y = y + layer["b"]  # cancelled by the BN mean subtraction below
        mean = jnp.mean(y, axis=(0, 1, 2), keepdims=True)
        var = jnp.mean(jnp.square(y - mean), axis=(0, 1, 2), keepdims=True)
        y = (y - mean) * jax.lax.rsqrt(var + 1e-5)
        y = y * layer["gamma"] + layer["beta"]
        x = jnp.where(y >= 0.0, y, 0.1 * y).astype(jnp.bfloat16)
    n = x.shape[0]
    flat = jnp.transpose(x, (0, 3, 1, 2)).reshape(n, -1)
    return jnp.dot(flat, params["proj"].astype(jnp.bfloat16),
                   preferred_element_type=jnp.float32)


# ----------------------------------- main ----------------------------------- #

if __name__ == "__main__":
    key = jax.random.PRNGKey(0)
    pkey, xkey = jax.random.split(key)

    # Small but shape-consistent config: 32x32 RGB input, num_features=8.
    num_features, channel, first_kernel = 8, 3, 4
    params = init_params(pkey, num_features=num_features, channel=channel,
                         first_kernel=first_kernel)
    x = jax.random.normal(xkey, (2, channel, 32, 32), jnp.float32)  # NCHW

    fwd = jax.jit(lambda inp: forward(params, inp))
    y = jax.block_until_ready(fwd(x))
    assert y.shape == (2, 1), y.shape

    y_ref = jax.block_until_ready(jax.jit(lambda inp: forward_ref(params, inp))(x))
    assert jnp.allclose(y, y_ref, atol=2e-2, rtol=2e-2), (y, y_ref)

    print("KERNEL_OK")
</pallas_src>

<mosaic_0001>
module attributes {stable_mosaic.version = 11 : i64} {
  func.func @_matmul_stats_kernel(%arg0: i32, %arg1: memref<512x128xbf16, #tpu.memory_space<vmem>>, %arg2: memref<128x128xbf16, #tpu.memory_space<vmem>>, %arg3: memref<512x128xf32, #tpu.memory_space<vmem>>, %arg4: memref<1x128xf32, #tpu.memory_space<vmem>>, %arg5: memref<1x128xf32, #tpu.memory_space<vmem>>) attributes {dimension_semantics = [#tpu.dimension_semantics<arbitrary>], iteration_bounds = array<i64: 4>, scalar_prefetch = 0 : i64, scratch_operands = 0 : i64, tpu.core_type = #tpu.core_type<tc>, window_params = [{transform_indices = @transform_0, window_bounds = array<i64: 512, 128>}, {pipeline_mode = #tpu.pipeline_mode<synchronous>, transform_indices = @transform_1, window_bounds = array<i64: 128, 128>}, {transform_indices = @transform_2, window_bounds = array<i64: 512, 128>}, {pipeline_mode = #tpu.pipeline_mode<synchronous>, transform_indices = @transform_3, window_bounds = array<i64: 1, 128>}, {pipeline_mode = #tpu.pipeline_mode<synchronous>, transform_indices = @transform_4, window_bounds = array<i64: 1, 128>}]} {
    %c0 = arith.constant 0 : index
    %c0_0 = arith.constant 0 : index
    %0 = vector.load %arg1[%c0, %c0_0] : memref<512x128xbf16, #tpu.memory_space<vmem>>, vector<512x128xbf16>
    %c0_1 = arith.constant 0 : index
    %c0_2 = arith.constant 0 : index
    %1 = vector.load %arg2[%c0_1, %c0_2] : memref<128x128xbf16, #tpu.memory_space<vmem>>, vector<128x128xbf16>
    %cst = arith.constant dense<0.000000e+00> : vector<512x128xf32>
    %2 = tpu.matmul %0, %1, %cst {dimension_numbers = #tpu.dot_dimension_numbers<[1], [0], [0], [1], [0, 0, 1, 1], [], []>} : vector<512x128xbf16>, vector<128x128xbf16>, vector<512x128xf32> -> vector<512x128xf32>
    %c0_3 = arith.constant 0 : index
    %c0_4 = arith.constant 0 : index
    %3 = vector.load %arg3[%c0_3, %c0_4] : memref<512x128xf32, #tpu.memory_space<vmem>>, vector<512x128xf32>
    tpu.vector_store %arg3[%c0_3, %c0_4], %2 {strides = array<i32>} : memref<512x128xf32, #tpu.memory_space<vmem>>, vector<512x128xf32>,
    %c0_i32 = arith.constant 0 : i32
    %4 = arith.cmpi eq, %arg0, %c0_i32 : i32
    %5 = arith.extui %4 : i1 to i32
    %c0_i32_5 = arith.constant 0 : i32
    %6 = arith.cmpi ne, %5, %c0_i32_5 : i32
    scf.if %6 {
      %cst_16 = arith.constant 0.000000e+00 : f32
      %18 = vector.broadcast %cst_16 : f32 to vector<1x128xf32>
      %c0_17 = arith.constant 0 : index
      %c0_18 = arith.constant 0 : index
      %19 = vector.load %arg4[%c0_17, %c0_18] : memref<1x128xf32, #tpu.memory_space<vmem>>, vector<1x128xf32>
      tpu.vector_store %arg4[%c0_17, %c0_18], %18 {strides = array<i32>} : memref<1x128xf32, #tpu.memory_space<vmem>>, vector<1x128xf32>,
      %cst_19 = arith.constant 0.000000e+00 : f32
      %20 = vector.broadcast %cst_19 : f32 to vector<1x128xf32>
      %c0_20 = arith.constant 0 : index
      %c0_21 = arith.constant 0 : index
      %21 = vector.load %arg5[%c0_20, %c0_21] : memref<1x128xf32, #tpu.memory_space<vmem>>, vector<1x128xf32>
      tpu.vector_store %arg5[%c0_20, %c0_21], %20 {strides = array<i32>} : memref<1x128xf32, #tpu.memory_space<vmem>>, vector<1x128xf32>,
    } else {
    }
    %c0_6 = arith.constant 0 : index
    %c0_7 = arith.constant 0 : index
    %7 = vector.load %arg4[%c0_6, %c0_7] : memref<1x128xf32, #tpu.memory_space<vmem>>, vector<1x128xf32>
    %cst_8 = arith.constant dense<0.000000e+00> : vector<128xf32>
    %8 = vector.multi_reduction <add>, %2, %cst_8 [0] : vector<512x128xf32> to vector<128xf32>
    %9 = vector.shape_cast %8 : vector<128xf32> to vector<1x128xf32>
    %10 = arith.addf %7, %9 : vector<1x128xf32>
    %c0_9 = arith.constant 0 : index
    %c0_10 = arith.constant 0 : index
    %11 = vector.load %arg4[%c0_9, %c0_10] : memref<1x128xf32, #tpu.memory_space<vmem>>, vector<1x128xf32>
    tpu.vector_store %arg4[%c0_9, %c0_10], %10 {strides = array<i32>} : memref<1x128xf32, #tpu.memory_space<vmem>>, vector<1x128xf32>,
    %c0_11 = arith.constant 0 : index
    %c0_12 = arith.constant 0 : index
    %12 = vector.load %arg5[%c0_11, %c0_12] : memref<1x128xf32, #tpu.memory_space<vmem>>, vector<1x128xf32>
    %13 = arith.mulf %2, %2 : vector<512x128xf32>
    %cst_13 = arith.constant dense<0.000000e+00> : vector<128xf32>
    %14 = vector.multi_reduction <add>, %13, %cst_13 [0] : vector<512x128xf32> to vector<128xf32>
    %15 = vector.shape_cast %14 : vector<128xf32> to vector<1x128xf32>
    %16 = arith.addf %12, %15 : vector<1x128xf32>
    %c0_14 = arith.constant 0 : index
    %c0_15 = arith.constant 0 : index
    %17 = vector.load %arg5[%c0_14, %c0_15] : memref<1x128xf32, #tpu.memory_space<vmem>>, vector<1x128xf32>
    tpu.vector_store %arg5[%c0_14, %c0_15], %16 {strides = array<i32>} : memref<1x128xf32, #tpu.memory_space<vmem>>, vector<1x128xf32>,
    return
  }
  func.func @transform_0(%arg0: i32) -> (i32, i32) {
    %c0_i32 = arith.constant 0 : i32
    %c0_i32_0 = arith.constant 0 : i32
    return %arg0, %c0_i32 : i32, i32
  }
  func.func @transform_1(%arg0: i32) -> (i32, i32) {
    %c0_i32 = arith.constant 0 : i32
    %c0_i32_0 = arith.constant 0 : i32
    %c0_i32_1 = arith.constant 0 : i32
    return %c0_i32, %c0_i32_0 : i32, i32
  }
  func.func @transform_2(%arg0: i32) -> (i32, i32) {
    %c0_i32 = arith.constant 0 : i32
    %c0_i32_0 = arith.constant 0 : i32
    return %arg0, %c0_i32 : i32, i32
  }
  func.func @transform_3(%arg0: i32) -> (i32, i32) {
    %c0_i32 = arith.constant 0 : i32
    %c0_i32_0 = arith.constant 0 : i32
    %c0_i32_1 = arith.constant 0 : i32
    return %c0_i32, %c0_i32_0 : i32, i32
  }
  func.func @transform_4(%arg0: i32) -> (i32, i32) {
    %c0_i32 = arith.constant 0 : i32
    %c0_i32_0 = arith.constant 0 : i32
    %c0_i32_1 = arith.constant 0 : i32
    return %c0_i32, %c0_i32_0 : i32, i32
  }
}

module attributes {stable_mosaic.version = 11 : i64} {
  func.func @_bn_act_kernel(%arg0: i32, %arg1: memref<512x128xf32, #tpu.memory_space<vmem>>, %arg2: memref<1x128xf32, #tpu.memory_space<vmem>>, %arg3: memref<1x128xf32, #tpu.memory_space<vmem>>, %arg4: memref<512x128xbf16, #tpu.memory_space<vmem>>) attributes {dimension_semantics = [#tpu.dimension_semantics<parallel>], iteration_bounds = array<i64: 4>, scalar_prefetch = 0 : i64, scratch_operands = 0 : i64, tpu.core_type = #tpu.core_type<tc>, window_params = [{transform_indices = @transform_0, window_bounds = array<i64: 512, 128>}, {pipeline_mode = #tpu.pipeline_mode<synchronous>, transform_indices = @transform_1, window_bounds = array<i64: 1, 128>}, {pipeline_mode = #tpu.pipeline_mode<synchronous>, transform_indices = @transform_2, window_bounds = array<i64: 1, 128>}, {transform_indices = @transform_3, window_bounds = array<i64: 512, 128>}]} {
    %c0 = arith.constant 0 : index
    %c0_0 = arith.constant 0 : index
    %0 = vector.load %arg1[%c0, %c0_0] : memref<512x128xf32, #tpu.memory_space<vmem>>, vector<512x128xf32>
    %c0_1 = arith.constant 0 : index
    %c0_2 = arith.constant 0 : index
    %1 = vector.load %arg2[%c0_1, %c0_2] : memref<1x128xf32, #tpu.memory_space<vmem>>, vector<1x128xf32>
    %2 = vector.broadcast %1 : vector<1x128xf32> to vector<512x128xf32>
    %3 = arith.mulf %0, %2 : vector<512x128xf32>
    %c0_3 = arith.constant 0 : index
    %c0_4 = arith.constant 0 : index
    %4 = vector.load %arg3[%c0_3, %c0_4] : memref<1x128xf32, #tpu.memory_space<vmem>>, vector<1x128xf32>
    %5 = vector.broadcast %4 : vector<1x128xf32> to vector<512x128xf32>
    %6 = arith.addf %3, %5 : vector<512x128xf32>
    %cst = arith.constant 0.000000e+00 : f32
    %7 = vector.broadcast %cst : f32 to vector<512x128xf32>
    %8 = arith.cmpf oge, %6, %7 : vector<512x128xf32>
    %cst_5 = arith.constant 1.000000e-01 : f32
    %9 = vector.broadcast %cst_5 : f32 to vector<512x128xf32>
    %10 = arith.mulf %9, %6 : vector<512x128xf32>
    %11 = arith.select %8, %6, %10 : vector<512x128xi1>, vector<512x128xf32>
    %12 = arith.truncf %11 : vector<512x128xf32> to vector<512x128xbf16>
    %c0_6 = arith.constant 0 : index
    %c0_7 = arith.constant 0 : index
    %13 = vector.load %arg4[%c0_6, %c0_7] : memref<512x128xbf16, #tpu.memory_space<vmem>>, vector<512x128xbf16>
    tpu.vector_store %arg4[%c0_6, %c0_7], %12 {strides = array<i32>} : memref<512x128xbf16, #tpu.memory_space<vmem>>, vector<512x128xbf16>,
    return
  }
  func.func @transform_0(%arg0: i32) -> (i32, i32) {
    %c0_i32 = arith.constant 0 : i32
    %c0_i32_0 = arith.constant 0 : i32
    return %arg0, %c0_i32 : i32, i32
  }
  func.func @transform_1(%arg0: i32) -> (i32, i32) {
    %c0_i32 = arith.constant 0 : i32
    %c0_i32_0 = arith.constant 0 : i32
    %c0_i32_1 = arith.constant 0 : i32
    return %c0_i32, %c0_i32_0 : i32, i32
  }
  func.func @transform_2(%arg0: i32) -> (i32, i32) {
    %c0_i32 = arith.constant 0 : i32
    %c0_i32_0 = arith.constant 0 : i32
    %c0_i32_1 = arith.constant 0 : i32
    return %c0_i32, %c0_i32_0 : i32, i32
  }
  func.func @transform_3(%arg0: i32) -> (i32, i32) {
    %c0_i32 = arith.constant 0 : i32
    %c0_i32_0 = arith.constant 0 : i32
    return %arg0, %c0_i32 : i32, i32
  }
}

module attributes {stable_mosaic.version = 11 : i64} {
  func.func @_bn_act_kernel(%arg0: i32, %arg1: memref<512x128xf32, #tpu.memory_space<vmem>>, %arg2: memref<1x128xf32, #tpu.memory_space<vmem>>, %arg3: memref<1x128xf32, #tpu.memory_space<vmem>>, %arg4: memref<512x128xbf16, #tpu.memory_space<vmem>>) attributes {dimension_semantics = [#tpu.dimension_semantics<parallel>], iteration_bounds = array<i64: 1>, scalar_prefetch = 0 : i64, scratch_operands = 0 : i64, tpu.core_type = #tpu.core_type<tc>, window_params = [{transform_indices = @transform_0, window_bounds = array<i64: 512, 128>}, {pipeline_mode = #tpu.pipeline_mode<synchronous>, transform_indices = @transform_1, window_bounds = array<i64: 1, 128>}, {pipeline_mode = #tpu.pipeline_mode<synchronous>, transform_indices = @transform_2, window_bounds = array<i64: 1, 128>}, {transform_indices = @transform_3, window_bounds = array<i64: 512, 128>}]} {
    %c0 = arith.constant 0 : index
    %c0_0 = arith.constant 0 : index
    %0 = vector.load %arg1[%c0, %c0_0] : memref<512x128xf32, #tpu.memory_space<vmem>>, vector<512x128xf32>
    %c0_1 = arith.constant 0 : index
    %c0_2 = arith.constant 0 : index
    %1 = vector.load %arg2[%c0_1, %c0_2] : memref<1x128xf32, #tpu.memory_space<vmem>>, vector<1x128xf32>
    %2 = vector.broadcast %1 : vector<1x128xf32> to vector<512x128xf32>
    %3 = arith.mulf %0, %2 : vector<512x128xf32>
    %c0_3 = arith.constant 0 : index
    %c0_4 = arith.constant 0 : index
    %4 = vector.load %arg3[%c0_3, %c0_4] : memref<1x128xf32, #tpu.memory_space<vmem>>, vector<1x128xf32>
    %5 = vector.broadcast %4 : vector<1x128xf32> to vector<512x128xf32>
    %6 = arith.addf %3, %5 : vector<512x128xf32>
    %cst = arith.constant 0.000000e+00 : f32
    %7 = vector.broadcast %cst : f32 to vector<512x128xf32>
    %8 = arith.cmpf oge, %6, %7 : vector<512x128xf32>
    %cst_5 = arith.constant 1.000000e-01 : f32
    %9 = vector.broadcast %cst_5 : f32 to vector<512x128xf32>
    %10 = arith.mulf %9, %6 : vector<512x128xf32>
    %11 = arith.select %8, %6, %10 : vector<512x128xi1>, vector<512x128xf32>
    %12 = arith.truncf %11 : vector<512x128xf32> to vector<512x128xbf16>
    %c0_6 = arith.constant 0 : index
    %c0_7 = arith.constant 0 : index
    %13 = vector.load %arg4[%c0_6, %c0_7] : memref<512x128xbf16, #tpu.memory_space<vmem>>, vector<512x128xbf16>
    tpu.vector_store %arg4[%c0_6, %c0_7], %12 {strides = array<i32>} : memref<512x128xbf16, #tpu.memory_space<vmem>>, vector<512x128xbf16>,
    return
  }
  func.func @transform_0(%arg0: i32) -> (i32, i32) {
    %c0_i32 = arith.constant 0 : i32
    %c0_i32_0 = arith.constant 0 : i32
    return %arg0, %c0_i32 : i32, i32
  }
  func.func @transform_1(%arg0: i32) -> (i32, i32) {
    %c0_i32 = arith.constant 0 : i32
    %c0_i32_0 = arith.constant 0 : i32
    %c0_i32_1 = arith.constant 0 : i32
    return %c0_i32, %c0_i32_0 : i32, i32
  }
  func.func @transform_2(%arg0: i32) -> (i32, i32) {
    %c0_i32 = arith.constant 0 : i32
    %c0_i32_0 = arith.constant 0 : i32
    %c0_i32_1 = arith.constant 0 : i32
    return %c0_i32, %c0_i32_0 : i32, i32
  }
  func.func @transform_3(%arg0: i32) -> (i32, i32) {
    %c0_i32 = arith.constant 0 : i32
    %c0_i32_0 = arith.constant 0 : i32
    return %arg0, %c0_i32 : i32, i32
  }
}

module attributes {stable_mosaic.version = 11 : i64} {
  func.func @_matmul_stats_kernel(%arg0: i32, %arg1: memref<512x128xbf16, #tpu.memory_space<vmem>>, %arg2: memref<128x128xbf16, #tpu.memory_space<vmem>>, %arg3: memref<512x128xf32, #tpu.memory_space<vmem>>, %arg4: memref<1x128xf32, #tpu.memory_space<vmem>>, %arg5: memref<1x128xf32, #tpu.memory_space<vmem>>) attributes {dimension_semantics = [#tpu.dimension_semantics<arbitrary>], iteration_bounds = array<i64: 1>, scalar_prefetch = 0 : i64, scratch_operands = 0 : i64, tpu.core_type = #tpu.core_type<tc>, window_params = [{transform_indices = @transform_0, window_bounds = array<i64: 512, 128>}, {pipeline_mode = #tpu.pipeline_mode<synchronous>, transform_indices = @transform_1, window_bounds = array<i64: 128, 128>}, {transform_indices = @transform_2, window_bounds = array<i64: 512, 128>}, {pipeline_mode = #tpu.pipeline_mode<synchronous>, transform_indices = @transform_3, window_bounds = array<i64: 1, 128>}, {pipeline_mode = #tpu.pipeline_mode<synchronous>, transform_indices = @transform_4, window_bounds = array<i64: 1, 128>}]} {
    %c0 = arith.constant 0 : index
    %c0_0 = arith.constant 0 : index
    %0 = vector.load %arg1[%c0, %c0_0] : memref<512x128xbf16, #tpu.memory_space<vmem>>, vector<512x128xbf16>
    %c0_1 = arith.constant 0 : index
    %c0_2 = arith.constant 0 : index
    %1 = vector.load %arg2[%c0_1, %c0_2] : memref<128x128xbf16, #tpu.memory_space<vmem>>, vector<128x128xbf16>
    %cst = arith.constant dense<0.000000e+00> : vector<512x128xf32>
    %2 = tpu.matmul %0, %1, %cst {dimension_numbers = #tpu.dot_dimension_numbers<[1], [0], [0], [1], [0, 0, 1, 1], [], []>} : vector<512x128xbf16>, vector<128x128xbf16>, vector<512x128xf32> -> vector<512x128xf32>
    %c0_3 = arith.constant 0 : index
    %c0_4 = arith.constant 0 : index
    %3 = vector.load %arg3[%c0_3, %c0_4] : memref<512x128xf32, #tpu.memory_space<vmem>>, vector<512x128xf32>
    tpu.vector_store %arg3[%c0_3, %c0_4], %2 {strides = array<i32>} : memref<512x128xf32, #tpu.memory_space<vmem>>, vector<512x128xf32>,
    %c0_i32 = arith.constant 0 : i32
    %4 = arith.cmpi eq, %arg0, %c0_i32 : i32
    %5 = arith.extui %4 : i1 to i32
    %c0_i32_5 = arith.constant 0 : i32
    %6 = arith.cmpi ne, %5, %c0_i32_5 : i32
    scf.if %6 {
      %cst_16 = arith.constant 0.000000e+00 : f32
      %18 = vector.broadcast %cst_16 : f32 to vector<1x128xf32>
      %c0_17 = arith.constant 0 : index
      %c0_18 = arith.constant 0 : index
      %19 = vector.load %arg4[%c0_17, %c0_18] : memref<1x128xf32, #tpu.memory_space<vmem>>, vector<1x128xf32>
      tpu.vector_store %arg4[%c0_17, %c0_18], %18 {strides = array<i32>} : memref<1x128xf32, #tpu.memory_space<vmem>>, vector<1x128xf32>,
      %cst_19 = arith.constant 0.000000e+00 : f32
      %20 = vector.broadcast %cst_19 : f32 to vector<1x128xf32>
      %c0_20 = arith.constant 0 : index
      %c0_21 = arith.constant 0 : index
      %21 = vector.load %arg5[%c0_20, %c0_21] : memref<1x128xf32, #tpu.memory_space<vmem>>, vector<1x128xf32>
      tpu.vector_store %arg5[%c0_20, %c0_21], %20 {strides = array<i32>} : memref<1x128xf32, #tpu.memory_space<vmem>>, vector<1x128xf32>,
    } else {
    }
    %c0_6 = arith.constant 0 : index
    %c0_7 = arith.constant 0 : index
    %7 = vector.load %arg4[%c0_6, %c0_7] : memref<1x128xf32, #tpu.memory_space<vmem>>, vector<1x128xf32>
    %cst_8 = arith.constant dense<0.000000e+00> : vector<128xf32>
    %8 = vector.multi_reduction <add>, %2, %cst_8 [0] : vector<512x128xf32> to vector<128xf32>
    %9 = vector.shape_cast %8 : vector<128xf32> to vector<1x128xf32>
    %10 = arith.addf %7, %9 : vector<1x128xf32>
    %c0_9 = arith.constant 0 : index
    %c0_10 = arith.constant 0 : index
    %11 = vector.load %arg4[%c0_9, %c0_10] : memref<1x128xf32, #tpu.memory_space<vmem>>, vector<1x128xf32>
    tpu.vector_store %arg4[%c0_9, %c0_10], %10 {strides = array<i32>} : memref<1x128xf32, #tpu.memory_space<vmem>>, vector<1x128xf32>,
    %c0_11 = arith.constant 0 : index
    %c0_12 = arith.constant 0 : index
    %12 = vector.load %arg5[%c0_11, %c0_12] : memref<1x128xf32, #tpu.memory_space<vmem>>, vector<1x128xf32>
    %13 = arith.mulf %2, %2 : vector<512x128xf32>
    %cst_13 = arith.constant dense<0.000000e+00> : vector<128xf32>
    %14 = vector.multi_reduction <add>, %13, %cst_13 [0] : vector<512x128xf32> to vector<128xf32>
    %15 = vector.shape_cast %14 : vector<128xf32> to vector<1x128xf32>
    %16 = arith.addf %12, %15 : vector<1x128xf32>
    %c0_14 = arith.constant 0 : index
    %c0_15 = arith.constant 0 : index
    %17 = vector.load %arg5[%c0_14, %c0_15] : memref<1x128xf32, #tpu.memory_space<vmem>>, vector<1x128xf32>
    tpu.vector_store %arg5[%c0_14, %c0_15], %16 {strides = array<i32>} : memref<1x128xf32, #tpu.memory_space<vmem>>, vector<1x128xf32>,
    return
  }
  func.func @transform_0(%arg0: i32) -> (i32, i32) {
    %c0_i32 = arith.constant 0 : i32
    %c0_i32_0 = arith.constant 0 : i32
    return %arg0, %c0_i32 : i32, i32
  }
  func.func @transform_1(%arg0: i32) -> (i32, i32) {
    %c0_i32 = arith.constant 0 : i32
    %c0_i32_0 = arith.constant 0 : i32
    %c0_i32_1 = arith.constant 0 : i32
    return %c0_i32, %c0_i32_0 : i32, i32
  }
  func.func @transform_2(%arg0: i32) -> (i32, i32) {
    %c0_i32 = arith.constant 0 : i32
    %c0_i32_0 = arith.constant 0 : i32
    return %arg0, %c0_i32 : i32, i32
  }
  func.func @transform_3(%arg0: i32) -> (i32, i32) {
    %c0_i32 = arith.constant 0 : i32
    %c0_i32_0 = arith.constant 0 : i32
    %c0_i32_1 = arith.constant 0 : i32
    return %c0_i32, %c0_i32_0 : i32, i32
  }
  func.func @transform_4(%arg0: i32) -> (i32, i32) {
    %c0_i32 = arith.constant 0 : i32
    %c0_i32_0 = arith.constant 0 : i32
    %c0_i32_1 = arith.constant 0 : i32
    return %c0_i32, %c0_i32_0 : i32, i32
  }
}

module attributes {stable_mosaic.version = 11 : i64} {
  func.func @_matmul_stats_kernel(%arg0: i32, %arg1: memref<128x256xbf16, #tpu.memory_space<vmem>>, %arg2: memref<256x128xbf16, #tpu.memory_space<vmem>>, %arg3: memref<128x128xf32, #tpu.memory_space<vmem>>, %arg4: memref<1x128xf32, #tpu.memory_space<vmem>>, %arg5: memref<1x128xf32, #tpu.memory_space<vmem>>) attributes {dimension_semantics = [#tpu.dimension_semantics<arbitrary>], iteration_bounds = array<i64: 1>, scalar_prefetch = 0 : i64, scratch_operands = 0 : i64, tpu.core_type = #tpu.core_type<tc>, window_params = [{transform_indices = @transform_0, window_bounds = array<i64: 128, 256>}, {pipeline_mode = #tpu.pipeline_mode<synchronous>, transform_indices = @transform_1, window_bounds = array<i64: 256, 128>}, {transform_indices = @transform_2, window_bounds = array<i64: 128, 128>}, {pipeline_mode = #tpu.pipeline_mode<synchronous>, transform_indices = @transform_3, window_bounds = array<i64: 1, 128>}, {pipeline_mode = #tpu.pipeline_mode<synchronous>, transform_indices = @transform_4, window_bounds = array<i64: 1, 128>}]} {
    %c0 = arith.constant 0 : index
    %c0_0 = arith.constant 0 : index
    %0 = vector.load %arg1[%c0, %c0_0] : memref<128x256xbf16, #tpu.memory_space<vmem>>, vector<128x256xbf16>
    %c0_1 = arith.constant 0 : index
    %c0_2 = arith.constant 0 : index
    %1 = vector.load %arg2[%c0_1, %c0_2] : memref<256x128xbf16, #tpu.memory_space<vmem>>, vector<256x128xbf16>
    %cst = arith.constant dense<0.000000e+00> : vector<128x128xf32>
    %2 = tpu.matmul %0, %1, %cst {dimension_numbers = #tpu.dot_dimension_numbers<[1], [0], [0], [1], [0, 0, 1, 1], [], []>} : vector<128x256xbf16>, vector<256x128xbf16>, vector<128x128xf32> -> vector<128x128xf32>
    %c0_3 = arith.constant 0 : index
    %c0_4 = arith.constant 0 : index
    %3 = vector.load %arg3[%c0_3, %c0_4] : memref<128x128xf32, #tpu.memory_space<vmem>>, vector<128x128xf32>
    tpu.vector_store %arg3[%c0_3, %c0_4], %2 {strides = array<i32>} : memref<128x128xf32, #tpu.memory_space<vmem>>, vector<128x128xf32>,
    %c0_i32 = arith.constant 0 : i32
    %4 = arith.cmpi eq, %arg0, %c0_i32 : i32
    %5 = arith.extui %4 : i1 to i32
    %c0_i32_5 = arith.constant 0 : i32
    %6 = arith.cmpi ne, %5, %c0_i32_5 : i32
    scf.if %6 {
      %cst_16 = arith.constant 0.000000e+00 : f32
      %18 = vector.broadcast %cst_16 : f32 to vector<1x128xf32>
      %c0_17 = arith.constant 0 : index
      %c0_18 = arith.constant 0 : index
      %19 = vector.load %arg4[%c0_17, %c0_18] : memref<1x128xf32, #tpu.memory_space<vmem>>, vector<1x128xf32>
      tpu.vector_store %arg4[%c0_17, %c0_18], %18 {strides = array<i32>} : memref<1x128xf32, #tpu.memory_space<vmem>>, vector<1x128xf32>,
      %cst_19 = arith.constant 0.000000e+00 : f32
      %20 = vector.broadcast %cst_19 : f32 to vector<1x128xf32>
      %c0_20 = arith.constant 0 : index
      %c0_21 = arith.constant 0 : index
      %21 = vector.load %arg5[%c0_20, %c0_21] : memref<1x128xf32, #tpu.memory_space<vmem>>, vector<1x128xf32>
      tpu.vector_store %arg5[%c0_20, %c0_21], %20 {strides = array<i32>} : memref<1x128xf32, #tpu.memory_space<vmem>>, vector<1x128xf32>,
    } else {
    }
    %c0_6 = arith.constant 0 : index
    %c0_7 = arith.constant 0 : index
    %7 = vector.load %arg4[%c0_6, %c0_7] : memref<1x128xf32, #tpu.memory_space<vmem>>, vector<1x128xf32>
    %cst_8 = arith.constant dense<0.000000e+00> : vector<128xf32>
    %8 = vector.multi_reduction <add>, %2, %cst_8 [0] : vector<128x128xf32> to vector<128xf32>
    %9 = vector.shape_cast %8 : vector<128xf32> to vector<1x128xf32>
    %10 = arith.addf %7, %9 : vector<1x128xf32>
    %c0_9 = arith.constant 0 : index
    %c0_10 = arith.constant 0 : index
    %11 = vector.load %arg4[%c0_9, %c0_10] : memref<1x128xf32, #tpu.memory_space<vmem>>, vector<1x128xf32>
    tpu.vector_store %arg4[%c0_9, %c0_10], %10 {strides = array<i32>} : memref<1x128xf32, #tpu.memory_space<vmem>>, vector<1x128xf32>,
    %c0_11 = arith.constant 0 : index
    %c0_12 = arith.constant 0 : index
    %12 = vector.load %arg5[%c0_11, %c0_12] : memref<1x128xf32, #tpu.memory_space<vmem>>, vector<1x128xf32>
    %13 = arith.mulf %2, %2 : vector<128x128xf32>
    %cst_13 = arith.constant dense<0.000000e+00> : vector<128xf32>
    %14 = vector.multi_reduction <add>, %13, %cst_13 [0] : vector<128x128xf32> to vector<128xf32>
    %15 = vector.shape_cast %14 : vector<128xf32> to vector<1x128xf32>
    %16 = arith.addf %12, %15 : vector<1x128xf32>
    %c0_14 = arith.constant 0 : index
    %c0_15 = arith.constant 0 : index
    %17 = vector.load %arg5[%c0_14, %c0_15] : memref<1x128xf32, #tpu.memory_space<vmem>>, vector<1x128xf32>
    tpu.vector_store %arg5[%c0_14, %c0_15], %16 {strides = array<i32>} : memref<1x128xf32, #tpu.memory_space<vmem>>, vector<1x128xf32>,
    return
  }
  func.func @transform_0(%arg0: i32) -> (i32, i32) {
    %c0_i32 = arith.constant 0 : i32
    %c0_i32_0 = arith.constant 0 : i32
    return %arg0, %c0_i32 : i32, i32
  }
  func.func @transform_1(%arg0: i32) -> (i32, i32) {
    %c0_i32 = arith.constant 0 : i32
    %c0_i32_0 = arith.constant 0 : i32
    %c0_i32_1 = arith.constant 0 : i32
    return %c0_i32, %c0_i32_0 : i32, i32
  }
  func.func @transform_2(%arg0: i32) -> (i32, i32) {
    %c0_i32 = arith.constant 0 : i32
    %c0_i32_0 = arith.constant 0 : i32
    return %arg0, %c0_i32 : i32, i32
  }
  func.func @transform_3(%arg0: i32) -> (i32, i32) {
    %c0_i32 = arith.constant 0 : i32
    %c0_i32_0 = arith.constant 0 : i32
    %c0_i32_1 = arith.constant 0 : i32
    return %c0_i32, %c0_i32_0 : i32, i32
  }
  func.func @transform_4(%arg0: i32) -> (i32, i32) {
    %c0_i32 = arith.constant 0 : i32
    %c0_i32_0 = arith.constant 0 : i32
    %c0_i32_1 = arith.constant 0 : i32
    return %c0_i32, %c0_i32_0 : i32, i32
  }
}

module attributes {stable_mosaic.version = 11 : i64} {
  func.func @_bn_act_kernel(%arg0: i32, %arg1: memref<128x128xf32, #tpu.memory_space<vmem>>, %arg2: memref<1x128xf32, #tpu.memory_space<vmem>>, %arg3: memref<1x128xf32, #tpu.memory_space<vmem>>, %arg4: memref<128x128xbf16, #tpu.memory_space<vmem>>) attributes {dimension_semantics = [#tpu.dimension_semantics<parallel>], iteration_bounds = array<i64: 1>, scalar_prefetch = 0 : i64, scratch_operands = 0 : i64, tpu.core_type = #tpu.core_type<tc>, window_params = [{transform_indices = @transform_0, window_bounds = array<i64: 128, 128>}, {pipeline_mode = #tpu.pipeline_mode<synchronous>, transform_indices = @transform_1, window_bounds = array<i64: 1, 128>}, {pipeline_mode = #tpu.pipeline_mode<synchronous>, transform_indices = @transform_2, window_bounds = array<i64: 1, 128>}, {transform_indices = @transform_3, window_bounds = array<i64: 128, 128>}]} {
    %c0 = arith.constant 0 : index
    %c0_0 = arith.constant 0 : index
    %0 = vector.load %arg1[%c0, %c0_0] : memref<128x128xf32, #tpu.memory_space<vmem>>, vector<128x128xf32>
    %c0_1 = arith.constant 0 : index
    %c0_2 = arith.constant 0 : index
    %1 = vector.load %arg2[%c0_1, %c0_2] : memref<1x128xf32, #tpu.memory_space<vmem>>, vector<1x128xf32>
    %2 = vector.broadcast %1 : vector<1x128xf32> to vector<128x128xf32>
    %3 = arith.mulf %0, %2 : vector<128x128xf32>
    %c0_3 = arith.constant 0 : index
    %c0_4 = arith.constant 0 : index
    %4 = vector.load %arg3[%c0_3, %c0_4] : memref<1x128xf32, #tpu.memory_space<vmem>>, vector<1x128xf32>
    %5 = vector.broadcast %4 : vector<1x128xf32> to vector<128x128xf32>
    %6 = arith.addf %3, %5 : vector<128x128xf32>
    %cst = arith.constant 0.000000e+00 : f32
    %7 = vector.broadcast %cst : f32 to vector<128x128xf32>
    %8 = arith.cmpf oge, %6, %7 : vector<128x128xf32>
    %cst_5 = arith.constant 1.000000e-01 : f32
    %9 = vector.broadcast %cst_5 : f32 to vector<128x128xf32>
    %10 = arith.mulf %9, %6 : vector<128x128xf32>
    %11 = arith.select %8, %6, %10 : vector<128x128xi1>, vector<128x128xf32>
    %12 = arith.truncf %11 : vector<128x128xf32> to vector<128x128xbf16>
    %c0_6 = arith.constant 0 : index
    %c0_7 = arith.constant 0 : index
    %13 = vector.load %arg4[%c0_6, %c0_7] : memref<128x128xbf16, #tpu.memory_space<vmem>>, vector<128x128xbf16>
    tpu.vector_store %arg4[%c0_6, %c0_7], %12 {strides = array<i32>} : memref<128x128xbf16, #tpu.memory_space<vmem>>, vector<128x128xbf16>,
    return
  }
  func.func @transform_0(%arg0: i32) -> (i32, i32) {
    %c0_i32 = arith.constant 0 : i32
    %c0_i32_0 = arith.constant 0 : i32
    return %arg0, %c0_i32 : i32, i32
  }
  func.func @transform_1(%arg0: i32) -> (i32, i32) {
    %c0_i32 = arith.constant 0 : i32
    %c0_i32_0 = arith.constant 0 : i32
    %c0_i32_1 = arith.constant 0 : i32
    return %c0_i32, %c0_i32_0 : i32, i32
  }
  func.func @transform_2(%arg0: i32) -> (i32, i32) {
    %c0_i32 = arith.constant 0 : i32
    %c0_i32_0 = arith.constant 0 : i32
    %c0_i32_1 = arith.constant 0 : i32
    return %c0_i32, %c0_i32_0 : i32, i32
  }
  func.func @transform_3(%arg0: i32) -> (i32, i32) {
    %c0_i32 = arith.constant 0 : i32
    %c0_i32_0 = arith.constant 0 : i32
    return %arg0, %c0_i32 : i32, i32
  }
}

module attributes {stable_mosaic.version = 11 : i64} {
  func.func @_matmul_stats_kernel(%arg0: i32, %arg1: memref<32x512xbf16, #tpu.memory_space<vmem>>, %arg2: memref<512x128xbf16, #tpu.memory_space<vmem>>, %arg3: memref<32x128xf32, #tpu.memory_space<vmem>>, %arg4: memref<1x128xf32, #tpu.memory_space<vmem>>, %arg5: memref<1x128xf32, #tpu.memory_space<vmem>>) attributes {dimension_semantics = [#tpu.dimension_semantics<arbitrary>], iteration_bounds = array<i64: 1>, scalar_prefetch = 0 : i64, scratch_operands = 0 : i64, tpu.core_type = #tpu.core_type<tc>, window_params = [{transform_indices = @transform_0, window_bounds = array<i64: 32, 512>}, {pipeline_mode = #tpu.pipeline_mode<synchronous>, transform_indices = @transform_1, window_bounds = array<i64: 512, 128>}, {transform_indices = @transform_2, window_bounds = array<i64: 32, 128>}, {pipeline_mode = #tpu.pipeline_mode<synchronous>, transform_indices = @transform_3, window_bounds = array<i64: 1, 128>}, {pipeline_mode = #tpu.pipeline_mode<synchronous>, transform_indices = @transform_4, window_bounds = array<i64: 1, 128>}]} {
    %c0 = arith.constant 0 : index
    %c0_0 = arith.constant 0 : index
    %0 = vector.load %arg1[%c0, %c0_0] : memref<32x512xbf16, #tpu.memory_space<vmem>>, vector<32x512xbf16>
    %c0_1 = arith.constant 0 : index
    %c0_2 = arith.constant 0 : index
    %1 = vector.load %arg2[%c0_1, %c0_2] : memref<512x128xbf16, #tpu.memory_space<vmem>>, vector<512x128xbf16>
    %cst = arith.constant dense<0.000000e+00> : vector<32x128xf32>
    %2 = tpu.matmul %0, %1, %cst {dimension_numbers = #tpu.dot_dimension_numbers<[1], [0], [0], [1], [0, 0, 1, 1], [], []>} : vector<32x512xbf16>, vector<512x128xbf16>, vector<32x128xf32> -> vector<32x128xf32>
    %c0_3 = arith.constant 0 : index
    %c0_4 = arith.constant 0 : index
    %3 = vector.load %arg3[%c0_3, %c0_4] : memref<32x128xf32, #tpu.memory_space<vmem>>, vector<32x128xf32>
    tpu.vector_store %arg3[%c0_3, %c0_4], %2 {strides = array<i32>} : memref<32x128xf32, #tpu.memory_space<vmem>>, vector<32x128xf32>,
    %c0_i32 = arith.constant 0 : i32
    %4 = arith.cmpi eq, %arg0, %c0_i32 : i32
    %5 = arith.extui %4 : i1 to i32
    %c0_i32_5 = arith.constant 0 : i32
    %6 = arith.cmpi ne, %5, %c0_i32_5 : i32
    scf.if %6 {
      %cst_16 = arith.constant 0.000000e+00 : f32
      %18 = vector.broadcast %cst_16 : f32 to vector<1x128xf32>
      %c0_17 = arith.constant 0 : index
      %c0_18 = arith.constant 0 : index
      %19 = vector.load %arg4[%c0_17, %c0_18] : memref<1x128xf32, #tpu.memory_space<vmem>>, vector<1x128xf32>
      tpu.vector_store %arg4[%c0_17, %c0_18], %18 {strides = array<i32>} : memref<1x128xf32, #tpu.memory_space<vmem>>, vector<1x128xf32>,
      %cst_19 = arith.constant 0.000000e+00 : f32
      %20 = vector.broadcast %cst_19 : f32 to vector<1x128xf32>
      %c0_20 = arith.constant 0 : index
      %c0_21 = arith.constant 0 : index
      %21 = vector.load %arg5[%c0_20, %c0_21] : memref<1x128xf32, #tpu.memory_space<vmem>>, vector<1x128xf32>
      tpu.vector_store %arg5[%c0_20, %c0_21], %20 {strides = array<i32>} : memref<1x128xf32, #tpu.memory_space<vmem>>, vector<1x128xf32>,
    } else {
    }
    %c0_6 = arith.constant 0 : index
    %c0_7 = arith.constant 0 : index
    %7 = vector.load %arg4[%c0_6, %c0_7] : memref<1x128xf32, #tpu.memory_space<vmem>>, vector<1x128xf32>
    %cst_8 = arith.constant dense<0.000000e+00> : vector<128xf32>
    %8 = vector.multi_reduction <add>, %2, %cst_8 [0] : vector<32x128xf32> to vector<128xf32>
    %9 = vector.shape_cast %8 : vector<128xf32> to vector<1x128xf32>
    %10 = arith.addf %7, %9 : vector<1x128xf32>
    %c0_9 = arith.constant 0 : index
    %c0_10 = arith.constant 0 : index
    %11 = vector.load %arg4[%c0_9, %c0_10] : memref<1x128xf32, #tpu.memory_space<vmem>>, vector<1x128xf32>
    tpu.vector_store %arg4[%c0_9, %c0_10], %10 {strides = array<i32>} : memref<1x128xf32, #tpu.memory_space<vmem>>, vector<1x128xf32>,
    %c0_11 = arith.constant 0 : index
    %c0_12 = arith.constant 0 : index
    %12 = vector.load %arg5[%c0_11, %c0_12] : memref<1x128xf32, #tpu.memory_space<vmem>>, vector<1x128xf32>
    %13 = arith.mulf %2, %2 : vector<32x128xf32>
    %cst_13 = arith.constant dense<0.000000e+00> : vector<128xf32>
    %14 = vector.multi_reduction <add>, %13, %cst_13 [0] : vector<32x128xf32> to vector<128xf32>
    %15 = vector.shape_cast %14 : vector<128xf32> to vector<1x128xf32>
    %16 = arith.addf %12, %15 : vector<1x128xf32>
    %c0_14 = arith.constant 0 : index
    %c0_15 = arith.constant 0 : index
    %17 = vector.load %arg5[%c0_14, %c0_15] : memref<1x128xf32, #tpu.memory_space<vmem>>, vector<1x128xf32>
    tpu.vector_store %arg5[%c0_14, %c0_15], %16 {strides = array<i32>} : memref<1x128xf32, #tpu.memory_space<vmem>>, vector<1x128xf32>,
    return
  }
  func.func @transform_0(%arg0: i32) -> (i32, i32) {
    %c0_i32 = arith.constant 0 : i32
    %c0_i32_0 = arith.constant 0 : i32
    return %arg0, %c0_i32 : i32, i32
  }
  func.func @transform_1(%arg0: i32) -> (i32, i32) {
    %c0_i32 = arith.constant 0 : i32
    %c0_i32_0 = arith.constant 0 : i32
    %c0_i32_1 = arith.constant 0 : i32
    return %c0_i32, %c0_i32_0 : i32, i32
  }
  func.func @transform_2(%arg0: i32) -> (i32, i32) {
    %c0_i32 = arith.constant 0 : i32
    %c0_i32_0 = arith.constant 0 : i32
    return %arg0, %c0_i32 : i32, i32
  }
  func.func @transform_3(%arg0: i32) -> (i32, i32) {
    %c0_i32 = arith.constant 0 : i32
    %c0_i32_0 = arith.constant 0 : i32
    %c0_i32_1 = arith.constant 0 : i32
    return %c0_i32, %c0_i32_0 : i32, i32
  }
  func.func @transform_4(%arg0: i32) -> (i32, i32) {
    %c0_i32 = arith.constant 0 : i32
    %c0_i32_0 = arith.constant 0 : i32
    %c0_i32_1 = arith.constant 0 : i32
    return %c0_i32, %c0_i32_0 : i32, i32
  }
}

module attributes {stable_mosaic.version = 11 : i64} {
  func.func @_bn_act_kernel(%arg0: i32, %arg1: memref<32x128xf32, #tpu.memory_space<vmem>>, %arg2: memref<1x128xf32, #tpu.memory_space<vmem>>, %arg3: memref<1x128xf32, #tpu.memory_space<vmem>>, %arg4: memref<32x128xbf16, #tpu.memory_space<vmem>>) attributes {dimension_semantics = [#tpu.dimension_semantics<parallel>], iteration_bounds = array<i64: 1>, scalar_prefetch = 0 : i64, scratch_operands = 0 : i64, tpu.core_type = #tpu.core_type<tc>, window_params = [{transform_indices = @transform_0, window_bounds = array<i64: 32, 128>}, {pipeline_mode = #tpu.pipeline_mode<synchronous>, transform_indices = @transform_1, window_bounds = array<i64: 1, 128>}, {pipeline_mode = #tpu.pipeline_mode<synchronous>, transform_indices = @transform_2, window_bounds = array<i64: 1, 128>}, {transform_indices = @transform_3, window_bounds = array<i64: 32, 128>}]} {
    %c0 = arith.constant 0 : index
    %c0_0 = arith.constant 0 : index
    %0 = vector.load %arg1[%c0, %c0_0] : memref<32x128xf32, #tpu.memory_space<vmem>>, vector<32x128xf32>
    %c0_1 = arith.constant 0 : index
    %c0_2 = arith.constant 0 : index
    %1 = vector.load %arg2[%c0_1, %c0_2] : memref<1x128xf32, #tpu.memory_space<vmem>>, vector<1x128xf32>
    %2 = vector.broadcast %1 : vector<1x128xf32> to vector<32x128xf32>
    %3 = arith.mulf %0, %2 : vector<32x128xf32>
    %c0_3 = arith.constant 0 : index
    %c0_4 = arith.constant 0 : index
    %4 = vector.load %arg3[%c0_3, %c0_4] : memref<1x128xf32, #tpu.memory_space<vmem>>, vector<1x128xf32>
    %5 = vector.broadcast %4 : vector<1x128xf32> to vector<32x128xf32>
    %6 = arith.addf %3, %5 : vector<32x128xf32>
    %cst = arith.constant 0.000000e+00 : f32
    %7 = vector.broadcast %cst : f32 to vector<32x128xf32>
    %8 = arith.cmpf oge, %6, %7 : vector<32x128xf32>
    %cst_5 = arith.constant 1.000000e-01 : f32
    %9 = vector.broadcast %cst_5 : f32 to vector<32x128xf32>
    %10 = arith.mulf %9, %6 : vector<32x128xf32>
    %11 = arith.select %8, %6, %10 : vector<32x128xi1>, vector<32x128xf32>
    %12 = arith.truncf %11 : vector<32x128xf32> to vector<32x128xbf16>
    %c0_6 = arith.constant 0 : index
    %c0_7 = arith.constant 0 : index
    %13 = vector.load %arg4[%c0_6, %c0_7] : memref<32x128xbf16, #tpu.memory_space<vmem>>, vector<32x128xbf16>
    tpu.vector_store %arg4[%c0_6, %c0_7], %12 {strides = array<i32>} : memref<32x128xbf16, #tpu.memory_space<vmem>>, vector<32x128xbf16>,
    return
  }
  func.func @transform_0(%arg0: i32) -> (i32, i32) {
    %c0_i32 = arith.constant 0 : i32
    %c0_i32_0 = arith.constant 0 : i32
    return %arg0, %c0_i32 : i32, i32
  }
  func.func @transform_1(%arg0: i32) -> (i32, i32) {
    %c0_i32 = arith.constant 0 : i32
    %c0_i32_0 = arith.constant 0 : i32
    %c0_i32_1 = arith.constant 0 : i32
    return %c0_i32, %c0_i32_0 : i32, i32
  }
  func.func @transform_2(%arg0: i32) -> (i32, i32) {
    %c0_i32 = arith.constant 0 : i32
    %c0_i32_0 = arith.constant 0 : i32
    %c0_i32_1 = arith.constant 0 : i32
    return %c0_i32, %c0_i32_0 : i32, i32
  }
  func.func @transform_3(%arg0: i32) -> (i32, i32) {
    %c0_i32 = arith.constant 0 : i32
    %c0_i32_0 = arith.constant 0 : i32
    return %arg0, %c0_i32 : i32, i32
  }
}

module attributes {stable_mosaic.version = 11 : i64} {
  func.func @_matmul_stats_kernel(%arg0: i32, %arg1: memref<32x384xbf16, #tpu.memory_space<vmem>>, %arg2: memref<384x128xbf16, #tpu.memory_space<vmem>>, %arg3: memref<32x128xf32, #tpu.memory_space<vmem>>, %arg4: memref<1x128xf32, #tpu.memory_space<vmem>>, %arg5: memref<1x128xf32, #tpu.memory_space<vmem>>) attributes {dimension_semantics = [#tpu.dimension_semantics<arbitrary>], iteration_bounds = array<i64: 1>, scalar_prefetch = 0 : i64, scratch_operands = 0 : i64, tpu.core_type = #tpu.core_type<tc>, window_params = [{transform_indices = @transform_0, window_bounds = array<i64: 32, 384>}, {pipeline_mode = #tpu.pipeline_mode<synchronous>, transform_indices = @transform_1, window_bounds = array<i64: 384, 128>}, {transform_indices = @transform_2, window_bounds = array<i64: 32, 128>}, {pipeline_mode = #tpu.pipeline_mode<synchronous>, transform_indices = @transform_3, window_bounds = array<i64: 1, 128>}, {pipeline_mode = #tpu.pipeline_mode<synchronous>, transform_indices = @transform_4, window_bounds = array<i64: 1, 128>}]} {
    %c0 = arith.constant 0 : index
    %c0_0 = arith.constant 0 : index
    %0 = vector.load %arg1[%c0, %c0_0] : memref<32x384xbf16, #tpu.memory_space<vmem>>, vector<32x384xbf16>
    %c0_1 = arith.constant 0 : index
    %c0_2 = arith.constant 0 : index
    %1 = vector.load %arg2[%c0_1, %c0_2] : memref<384x128xbf16, #tpu.memory_space<vmem>>, vector<384x128xbf16>
    %cst = arith.constant dense<0.000000e+00> : vector<32x128xf32>
    %2 = tpu.matmul %0, %1, %cst {dimension_numbers = #tpu.dot_dimension_numbers<[1], [0], [0], [1], [0, 0, 1, 1], [], []>} : vector<32x384xbf16>, vector<384x128xbf16>, vector<32x128xf32> -> vector<32x128xf32>
    %c0_3 = arith.constant 0 : index
    %c0_4 = arith.constant 0 : index
    %3 = vector.load %arg3[%c0_3, %c0_4] : memref<32x128xf32, #tpu.memory_space<vmem>>, vector<32x128xf32>
    tpu.vector_store %arg3[%c0_3, %c0_4], %2 {strides = array<i32>} : memref<32x128xf32, #tpu.memory_space<vmem>>, vector<32x128xf32>,
    %c0_i32 = arith.constant 0 : i32
    %4 = arith.cmpi eq, %arg0, %c0_i32 : i32
    %5 = arith.extui %4 : i1 to i32
    %c0_i32_5 = arith.constant 0 : i32
    %6 = arith.cmpi ne, %5, %c0_i32_5 : i32
    scf.if %6 {
      %cst_16 = arith.constant 0.000000e+00 : f32
      %18 = vector.broadcast %cst_16 : f32 to vector<1x128xf32>
      %c0_17 = arith.constant 0 : index
      %c0_18 = arith.constant 0 : index
      %19 = vector.load %arg4[%c0_17, %c0_18] : memref<1x128xf32, #tpu.memory_space<vmem>>, vector<1x128xf32>
      tpu.vector_store %arg4[%c0_17, %c0_18], %18 {strides = array<i32>} : memref<1x128xf32, #tpu.memory_space<vmem>>, vector<1x128xf32>,
      %cst_19 = arith.constant 0.000000e+00 : f32
      %20 = vector.broadcast %cst_19 : f32 to vector<1x128xf32>
      %c0_20 = arith.constant 0 : index
      %c0_21 = arith.constant 0 : index
      %21 = vector.load %arg5[%c0_20, %c0_21] : memref<1x128xf32, #tpu.memory_space<vmem>>, vector<1x128xf32>
      tpu.vector_store %arg5[%c0_20, %c0_21], %20 {strides = array<i32>} : memref<1x128xf32, #tpu.memory_space<vmem>>, vector<1x128xf32>,
    } else {
    }
    %c0_6 = arith.constant 0 : index
    %c0_7 = arith.constant 0 : index
    %7 = vector.load %arg4[%c0_6, %c0_7] : memref<1x128xf32, #tpu.memory_space<vmem>>, vector<1x128xf32>
    %cst_8 = arith.constant dense<0.000000e+00> : vector<128xf32>
    %8 = vector.multi_reduction <add>, %2, %cst_8 [0] : vector<32x128xf32> to vector<128xf32>
    %9 = vector.shape_cast %8 : vector<128xf32> to vector<1x128xf32>
    %10 = arith.addf %7, %9 : vector<1x128xf32>
    %c0_9 = arith.constant 0 : index
    %c0_10 = arith.constant 0 : index
    %11 = vector.load %arg4[%c0_9, %c0_10] : memref<1x128xf32, #tpu.memory_space<vmem>>, vector<1x128xf32>
    tpu.vector_store %arg4[%c0_9, %c0_10], %10 {strides = array<i32>} : memref<1x128xf32, #tpu.memory_space<vmem>>, vector<1x128xf32>,
    %c0_11 = arith.constant 0 : index
    %c0_12 = arith.constant 0 : index
    %12 = vector.load %arg5[%c0_11, %c0_12] : memref<1x128xf32, #tpu.memory_space<vmem>>, vector<1x128xf32>
    %13 = arith.mulf %2, %2 : vector<32x128xf32>
    %cst_13 = arith.constant dense<0.000000e+00> : vector<128xf32>
    %14 = vector.multi_reduction <add>, %13, %cst_13 [0] : vector<32x128xf32> to vector<128xf32>
    %15 = vector.shape_cast %14 : vector<128xf32> to vector<1x128xf32>
    %16 = arith.addf %12, %15 : vector<1x128xf32>
    %c0_14 = arith.constant 0 : index
    %c0_15 = arith.constant 0 : index
    %17 = vector.load %arg5[%c0_14, %c0_15] : memref<1x128xf32, #tpu.memory_space<vmem>>, vector<1x128xf32>
    tpu.vector_store %arg5[%c0_14, %c0_15], %16 {strides = array<i32>} : memref<1x128xf32, #tpu.memory_space<vmem>>, vector<1x128xf32>,
    return
  }
  func.func @transform_0(%arg0: i32) -> (i32, i32) {
    %c0_i32 = arith.constant 0 : i32
    %c0_i32_0 = arith.constant 0 : i32
    return %arg0, %c0_i32 : i32, i32
  }
  func.func @transform_1(%arg0: i32) -> (i32, i32) {
    %c0_i32 = arith.constant 0 : i32
    %c0_i32_0 = arith.constant 0 : i32
    %c0_i32_1 = arith.constant 0 : i32
    return %c0_i32, %c0_i32_0 : i32, i32
  }
  func.func @transform_2(%arg0: i32) -> (i32, i32) {
    %c0_i32 = arith.constant 0 : i32
    %c0_i32_0 = arith.constant 0 : i32
    return %arg0, %c0_i32 : i32, i32
  }
  func.func @transform_3(%arg0: i32) -> (i32, i32) {
    %c0_i32 = arith.constant 0 : i32
    %c0_i32_0 = arith.constant 0 : i32
    %c0_i32_1 = arith.constant 0 : i32
    return %c0_i32, %c0_i32_0 : i32, i32
  }
  func.func @transform_4(%arg0: i32) -> (i32, i32) {
    %c0_i32 = arith.constant 0 : i32
    %c0_i32_0 = arith.constant 0 : i32
    %c0_i32_1 = arith.constant 0 : i32
    return %c0_i32, %c0_i32_0 : i32, i32
  }
}

module attributes {stable_mosaic.version = 11 : i64} {
  func.func @_linear_kernel(%arg0: memref<8x1024xbf16, #tpu.memory_space<vmem>>, %arg1: memref<1024x128xbf16, #tpu.memory_space<vmem>>, %arg2: memref<8x128xf32, #tpu.memory_space<vmem>>) attributes {dimension_semantics = [], scalar_prefetch = 0 : i64, scratch_operands = 0 : i64, tpu.core_type = #tpu.core_type<tc>} {
    %c0 = arith.constant 0 : index
    %c0_0 = arith.constant 0 : index
    %0 = vector.load %arg0[%c0, %c0_0] : memref<8x1024xbf16, #tpu.memory_space<vmem>>, vector<8x1024xbf16>
    %c0_1 = arith.constant 0 : index
    %c0_2 = arith.constant 0 : index
    %1 = vector.load %arg1[%c0_1, %c0_2] : memref<1024x128xbf16, #tpu.memory_space<vmem>>, vector<1024x128xbf16>
    %cst = arith.constant dense<0.000000e+00> : vector<8x128xf32>
    %2 = tpu.matmul %0, %1, %cst {dimension_numbers = #tpu.dot_dimension_numbers<[1], [0], [0], [1], [0, 0, 1, 1], [], []>} : vector<8x1024xbf16>, vector<1024x128xbf16>, vector<8x128xf32> -> vector<8x128xf32>
    %c0_3 = arith.constant 0 : index
    %c0_4 = arith.constant 0 : index
    %3 = vector.load %arg2[%c0_3, %c0_4] : memref<8x128xf32, #tpu.memory_space<vmem>>, vector<8x128xf32>
    tpu.vector_store %arg2[%c0_3, %c0_4], %2 {strides = array<i32>} : memref<8x128xf32, #tpu.memory_space<vmem>>, vector<8x128xf32>,
    return
  }
}

</mosaic_0001>

<bundles_post_ra>
// kernel: _lambda_.15
= control target key start
LH: loop header
LB: loop body
LE: loop exit
PB: predicated region body
PF: predicated region fallthrough
CT: control target
= control target key end

     0   :  { %s1423_s15 = smov 0   ;;  %s1974_s0 = inlined_call_operand.vmem [shape: bf16[2048,128], index: 0, kind: input, shape index: {}]   ;;  %s1975_s1 = inlined_call_operand.vmem [shape: bf16[128,128], index: 1, kind: input, shape index: {}]   ;;  %s1976_s2 = inlined_call_operand.vmem [shape: f32[2048,128], index: 2, kind: output, shape index: {0}]   ;;  %s1977_s3 = inlined_call_operand.vmem [shape: f32[1,128], index: 3, kind: output, shape index: {1}]   ;;  %s1978_s4 = inlined_call_operand.vmem [shape: f32[1,128], index: 4, kind: output, shape index: {2}]  }
   0x1 LB: > { %s1152_s16 = sadd.s32 4294967295, %s1395_s15   ;;  %p1156_p0 = scmp.ge.s32.totalorder %s1395_s15, 1  ;;  %s1395_s15 = sphi %s1423_s15, %s15_s15  }
   0x2   : > { %p158_p1 = scmp.lt.s32.totalorder %s1395_s15, 5 }
   0x4   : > { %p159_p2 = pnand %p1156_p0, %p158_p1 }
   0x6   : > { %162 = sbr.rel (%p159_p2) target bundleno = 456 (0x1c8), region = 28 }
   0xb   : > { %v1349_v0 = vld [vmem:[%s1975_s1 + $0x38] sm:$0xff]   ;;  %s1157_s19 = sshll.u32 %s1152_s16, 6  ;;  %v1350_v1 = vld [vmem:[%s1975_s1 + $0x30] sm:$0xff]   ;;  %v1351_v2 = vld [vmem:[%s1975_s1 + $0x28] sm:$0xff]   ;;  %p1201_p4 = scmp.ne.s32.totalorder %s1152_s16, 0 }
   0xc   : > { %p185_p3 = scmp.lt.s32.totalorder %s1157_s19, 255  ;;  %1244 = vmatprep.subr.bf16.mxu0 %v1349_v0  ;;  %1324 = vmatprep.subr.bf16.mxu1 %v1349_v0  ;;  %v1352_v3 = vld [vmem:[%s1975_s1 + $0x20] sm:$0xff]   ;;  %v1353_v6 = vld [vmem:[%s1975_s1 + $0x18] sm:$0xff]   ;;  %v1354_v7 = vld [vmem:[%s1975_s1 + $0x10] sm:$0xff]  }
   0xd   : > { %1245 = vmatpush3.bf16.msra.mxu0 %v1349_v0  ;;  %1332 = vmatpush3.bf16.msra.mxu1 %v1349_v0  ;;  %v1355_v8 = vld [vmem:[%s1975_s1 + $0x8] sm:$0xff]   ;;  %v1356_v9 = vld [vmem:[%s1975_s1] sm:$0xff]  }
   0xe   : > { %s2028_s19 = smov (!%p185_p3, %s1157_s19), 255  ;;  %1246 = vmatprep.subr.bf16.mxu0 %v1350_v1  ;;  %1325 = vmatprep.subr.bf16.mxu1 %v1350_v1 }
   0xf   : > { %s1158_s24 = sshll.u32 %s2028_s19, 2  ;;  %s1160_s12 = sshll.u32 %s2028_s19, 3 }
  0x10   : > { %s1448_s27 = scalar_lea.vmem %s1974_s0, %s1158_s24  ;;  %s1501_s17 = scalar_lea.vmem %s1976_s2, %s1160_s12 }
  0x11   : > { %1247 = vmatpush3.bf16.msra.mxu0 %v1350_v1  ;;  %1333 = vmatpush3.bf16.msra.mxu1 %v1350_v1  ;;  %v1357_v4 = vld [vmem:[%s1448_s27] sm:$0xff]   ;;  %v1359_v10 = vld [vmem:[%s1448_s27 + $0x8] sm:$0xff]   ;;  %v1361_v12 = vld [vmem:[%s1448_s27 + $0x10] sm:$0xff]  }
  0x12   : > { %1248 = vmatprep.subr.bf16.mxu0 %v1351_v2  ;;  %1326 = vmatprep.subr.bf16.mxu1 %v1351_v2  ;;  %v1358_v5 = vld [vmem:[%s1448_s27 + $0x80] sm:$0xff]   ;;  %v1360_v11 = vld [vmem:[%s1448_s27 + $0x88] sm:$0xff]   ;;  %v1362_v13 = vld [vmem:[%s1448_s27 + $0x90] sm:$0xff]  }
  0x13   : > { %1260 = vmatprep.mubr.bf16.mxu0 %v1357_v4  ;;  %1292 = vmatprep.mubr.bf16.mxu1 %v1358_v5  ;;  %v1363_v14 = vld [vmem:[%s1448_s27 + $0x18] sm:$0xff]   ;;  %v1365_v16 = vld [vmem:[%s1448_s27 + $0x20] sm:$0xff]   ;;  %v1367_v18 = vld [vmem:[%s1448_s27 + $0x28] sm:$0xff]  }
  0x14   : > { %v1364_v15 = vld [vmem:[%s1448_s27 + $0x98] sm:$0xff]   ;;  %v1366_v17 = vld [vmem:[%s1448_s27 + $0xa0] sm:$0xff]   ;;  %v1368_v19 = vld [vmem:[%s1448_s27 + $0xa8] sm:$0xff]  }
  0x15   : > { %1249 = vmatpush3.bf16.msra.mxu0 %v1351_v2  ;;  %1334 = vmatpush3.bf16.msra.mxu1 %v1351_v2  ;;  %v1369_v20 = vld [vmem:[%s1448_s27 + $0x30] sm:$0xff]   ;;  %v1371_v22 = vld [vmem:[%s1448_s27 + $0x38] sm:$0xff]   ;;  %v1373_v24 = vld [vmem:[%s1448_s27 + $0x40] sm:$0xff]  }
  0x16   : > { %1250 = vmatprep.subr.bf16.mxu0 %v1352_v3  ;;  %1327 = vmatprep.subr.bf16.mxu1 %v1352_v3  ;;  %v1370_v21 = vld [vmem:[%s1448_s27 + $0xb0] sm:$0xff]   ;;  %v1372_v23 = vld [vmem:[%s1448_s27 + $0xb8] sm:$0xff]   ;;  %v1374_v25 = vld [vmem:[%s1448_s27 + $0xc0] sm:$0xff]  }
  0x17   : > { %v1375_v26 = vld [vmem:[%s1448_s27 + $0x48] sm:$0xff]   ;;  %v1377_v28 = vld [vmem:[%s1448_s27 + $0x50] sm:$0xff]   ;;  %v1379_v30 = vld [vmem:[%s1448_s27 + $0x58] sm:$0xff]  }
  0x18   : > { %v1376_v27 = vld [vmem:[%s1448_s27 + $0xc8] sm:$0xff]   ;;  %v1378_v29 = vld [vmem:[%s1448_s27 + $0xd0] sm:$0xff]   ;;  %v1380_v31 = vld [vmem:[%s1448_s27 + $0xd8] sm:$0xff]  }
  0x19   : > { %1251 = vmatpush3.bf16.msra.mxu0 %v1352_v3  ;;  %1335 = vmatpush3.bf16.msra.mxu1 %v1352_v3  ;;  %v1381_v32 = vld [vmem:[%s1448_s27 + $0x60] sm:$0xff]   ;;  %v1383_v34 = vld [vmem:[%s1448_s27 + $0x68] sm:$0xff]   ;;  %v1385_v36 = vld [vmem:[%s1448_s27 + $0x70] sm:$0xff]  }
  0x1a   : > { %1252 = vmatprep.subr.bf16.mxu0 %v1353_v6  ;;  %1328 = vmatprep.subr.bf16.mxu1 %v1353_v6  ;;  %v1382_v33 = vld [vmem:[%s1448_s27 + $0xe0] sm:$0xff]   ;;  %v1384_v35 = vld [vmem:[%s1448_s27 + $0xe8] sm:$0xff]   ;;  %v1386_v37 = vld [vmem:[%s1448_s27 + $0xf0] sm:$0xff]  }
  0x1b   : > { %v1387_v38 = vld [vmem:[%s1448_s27 + $0x78] sm:$0xff]  }
  0x1c   : > { %v1388_v39 = vld [vmem:[%s1448_s27 + $0xf8] sm:$0xff]  }
  0x1d   : > { %1253 = vmatpush3.bf16.msra.mxu0 %v1353_v6  ;;  %1336 = vmatpush3.bf16.msra.mxu1 %v1353_v6 }
  0x1e   : > { %1254 = vmatprep.subr.bf16.mxu0 %v1354_v7  ;;  %1329 = vmatprep.subr.bf16.mxu1 %v1354_v7 }
  0x21   : > { %1255 = vmatpush3.bf16.msra.mxu0 %v1354_v7  ;;  %1337 = vmatpush3.bf16.msra.mxu1 %v1354_v7 }
  0x22   : > { %1256 = vmatprep.subr.bf16.mxu0 %v1355_v8  ;;  %1330 = vmatprep.subr.bf16.mxu1 %v1355_v8 }
  0x25   : > { %1257 = vmatpush3.bf16.msra.mxu0 %v1355_v8  ;;  %1338 = vmatpush3.bf16.msra.mxu1 %v1355_v8 }
  0x26   : > { %1258 = vmatprep.subr.bf16.mxu0 %v1356_v9  ;;  %1331 = vmatprep.subr.bf16.mxu1 %v1356_v9 }
  0x29   : > { %1259 = vmatpush3.bf16.msra.mxu0 %v1356_v9  ;;  %1339 = vmatpush3.bf16.msra.mxu1 %v1356_v9 }
  0x2c   : > { %1261 = vmatmul.mubr.bf16.vlgmr.msra.gmra.mxu0 %v1359_v10  ;;  %1293 = vmatmul.mubr.bf16.vlgmr.msra.gmra.mxu1 %v1360_v11 }
  0x2d   : > { %1264 = vmatprep.mubr.bf16.mxu0 %v1361_v12  ;;  %1296 = vmatprep.mubr.bf16.mxu1 %v1362_v13 }
  0x34   : > { %1265 = vmatmul.mubr.bf16.gmra.mxu0 %v1363_v14  ;;  %1297 = vmatmul.mubr.bf16.gmra.mxu1 %v1364_v15 }
  0x35   : > { %1268 = vmatprep.mubr.bf16.mxu0 %v1365_v16  ;;  %1300 = vmatprep.mubr.bf16.mxu1 %v1366_v17 }
  0x3c   : > { %1269 = vmatmul.mubr.bf16.gmra.mxu0 %v1367_v18  ;;  %1301 = vmatmul.mubr.bf16.gmra.mxu1 %v1368_v19 }
  0x3d   : > { %1272 = vmatprep.mubr.bf16.mxu0 %v1369_v20  ;;  %1304 = vmatprep.mubr.bf16.mxu1 %v1370_v21 }
  0x44   : > { %1273 = vmatmul.mubr.bf16.gmra.mxu0 %v1371_v22  ;;  %1305 = vmatmul.mubr.bf16.gmra.mxu1 %v1372_v23 }
  0x45   : > { %1276 = vmatprep.mubr.bf16.mxu0 %v1373_v24  ;;  %1308 = vmatprep.mubr.bf16.mxu1 %v1374_v25 }
  0x4c   : > { %1277 = vmatmul.mubr.bf16.gmra.mxu0 %v1375_v26  ;;  %1309 = vmatmul.mubr.bf16.gmra.mxu1 %v1376_v27 }
  0x4d   : > { %1280 = vmatprep.mubr.bf16.mxu0 %v1377_v28  ;;  %1312 = vmatprep.mubr.bf16.mxu1 %v1378_v29 }
  0x54   : > { %1281 = vmatmul.mubr.bf16.gmra.mxu0 %v1379_v30  ;;  %1313 = vmatmul.mubr.bf16.gmra.mxu1 %v1380_v31 }
  0x55   : > { %1284 = vmatprep.mubr.bf16.mxu0 %v1381_v32  ;;  %1316 = vmatprep.mubr.bf16.mxu1 %v1382_v33 }
  0x5c   : > { %1285 = vmatmul.mubr.bf16.gmra.mxu0 %v1383_v34  ;;  %1317 = vmatmul.mubr.bf16.gmra.mxu1 %v1384_v35 }
  0x5d   : > { %1288 = vmatprep.mubr.bf16.mxu0 %v1385_v36  ;;  %1320 = vmatprep.mubr.bf16.mxu1 %v1386_v37 }
  0x64   : > { %1289 = vmatmul.mubr.bf16.gmra.mxu0 %v1387_v38  ;;  %1321 = vmatmul.mubr.bf16.gmra.mxu1 %v1388_v39 }
  0xec   : > { %v1503_v40 = vpop.f32.mrf.mxu0  ;;  %v1505_v41 = vpop.f32.mrf.mxu1 }
  0xed   : > { %808 = vst [vmem:[%s1501_s17 + $0x10] sm:$0xff] %v1503_v40  ;;  %840 = vst [vmem:[%s1501_s17 + $0x110] sm:$0xff] %v1505_v41 }
  0xee   : > { %v1511_v42 = vpop.f32.mrf.mxu0  ;;  %v1513_v43 = vpop.f32.mrf.mxu1 }
  0xef   : > { %806 = vst [vmem:[%s1501_s17] sm:$0xff] %v1511_v42  ;;  %838 = vst [vmem:[%s1501_s17 + $0x100] sm:$0xff] %v1513_v43 }
  0xf0   : > { %v1519_v44 = vpop.f32.mrf.mxu0  ;;  %v1521_v45 = vpop.f32.mrf.mxu1 }
  0xf1   : > { %809 = vst [vmem:[%s1501_s17 + $0x18] sm:$0xff] %v1519_v44  ;;  %841 = vst [vmem:[%s1501_s17 + $0x118] sm:$0xff] %v1521_v45 }
  0xf2   : > { %v1527_v46 = vpop.f32.mrf.mxu0  ;;  %v1529_v47 = vpop.f32.mrf.mxu1 }
  0xf3   : > { %807 = vst [vmem:[%s1501_s17 + $0x8] sm:$0xff] %v1527_v46  ;;  %839 = vst [vmem:[%s1501_s17 + $0x108] sm:$0xff] %v1529_v47 }
  0xf4   : > { %v1535_v48 = vpop.f32.mrf.mxu0  ;;  %v1537_v49 = vpop.f32.mrf.mxu1 }
  0xf5   : > { %812 = vst [vmem:[%s1501_s17 + $0x30] sm:$0xff] %v1535_v48  ;;  %844 = vst [vmem:[%s1501_s17 + $0x130] sm:$0xff] %v1537_v49 }
  0xf6   : > { %v1543_v50 = vpop.f32.mrf.mxu0  ;;  %v1545_v51 = vpop.f32.mrf.mxu1 }
  0xf7   : > { %810 = vst [vmem:[%s1501_s17 + $0x20] sm:$0xff] %v1543_v50  ;;  %842 = vst [vmem:[%s1501_s17 + $0x120] sm:$0xff] %v1545_v51 }
  0xf8   : > { %v1551_v52 = vpop.f32.mrf.mxu0  ;;  %v1553_v53 = vpop.f32.mrf.mxu1 }
  0xf9   : > { %813 = vst [vmem:[%s1501_s17 + $0x38] sm:$0xff] %v1551_v52  ;;  %845 = vst [vmem:[%s1501_s17 + $0x138] sm:$0xff] %v1553_v53 }
  0xfa   : > { %v1559_v54 = vpop.f32.mrf.mxu0  ;;  %v1561_v55 = vpop.f32.mrf.mxu1 }
  0xfb   : > { %811 = vst [vmem:[%s1501_s17 + $0x28] sm:$0xff] %v1559_v54  ;;  %843 = vst [vmem:[%s1501_s17 + $0x128] sm:$0xff] %v1561_v55 }
  0xfc   : > { %v1567_v56 = vpop.f32.mrf.mxu0  ;;  %v1569_v57 = vpop.f32.mrf.mxu1 }
  0xfd   : > { %816 = vst [vmem:[%s1501_s17 + $0x50] sm:$0xff] %v1567_v56  ;;  %848 = vst [vmem:[%s1501_s17 + $0x150] sm:$0xff] %v1569_v57 }
  0xfe   : > { %v1575_v58 = vpop.f32.mrf.mxu0  ;;  %v1577_v59 = vpop.f32.mrf.mxu1 }
  0xff   : > { %814 = vst [vmem:[%s1501_s17 + $0x40] sm:$0xff] %v1575_v58  ;;  %846 = vst [vmem:[%s1501_s17 + $0x140] sm:$0xff] %v1577_v59 }
 0x100   : > { %v1583_v60 = vpop.f32.mrf.mxu0  ;;  %v1585_v61 = vpop.f32.mrf.mxu1 }
 0x101   : > { %817 = vst [vmem:[%s1501_s17 + $0x58] sm:$0xff] %v1583_v60  ;;  %849 = vst [vmem:[%s1501_s17 + $0x158] sm:$0xff] %v1585_v61 }
 0x102   : > { %v1591_v62 = vpop.f32.mrf.mxu0  ;;  %v1593_v63 = vpop.f32.mrf.mxu1 }
 0x103   : > { %815 = vst [vmem:[%s1501_s17 + $0x48] sm:$0xff] %v1591_v62  ;;  %847 = vst [vmem:[%s1501_s17 + $0x148] sm:$0xff] %v1593_v63 }
 0x104   : > { %v1599_v0 = vpop.f32.mrf.mxu0  ;;  %v1601_v1 = vpop.f32.mrf.mxu1 }
 0x105   : > { %820 = vst [vmem:[%s1501_s17 + $0x70] sm:$0xff] %v1599_v0  ;;  %852 = vst [vmem:[%s1501_s17 + $0x170] sm:$0xff] %v1601_v1 }
 0x106   : > { %v1607_v2 = vpop.f32.mrf.mxu0  ;;  %v1609_v3 = vpop.f32.mrf.mxu1 }
 0x107   : > { %818 = vst [vmem:[%s1501_s17 + $0x60] sm:$0xff] %v1607_v2  ;;  %850 = vst [vmem:[%s1501_s17 + $0x160] sm:$0xff] %v1609_v3 }
 0x108   : > { %v1615_v4 = vpop.f32.mrf.mxu0  ;;  %v1617_v5 = vpop.f32.mrf.mxu1 }
 0x109   : > { %821 = vst [vmem:[%s1501_s17 + $0x78] sm:$0xff] %v1615_v4  ;;  %853 = vst [vmem:[%s1501_s17 + $0x178] sm:$0xff] %v1617_v5 }
 0x10a   : > { %v1623_v6 = vpop.f32.mrf.mxu0  ;;  %v1625_v7 = vpop.f32.mrf.mxu1 }
 0x10b   : > { %819 = vst [vmem:[%s1501_s17 + $0x68] sm:$0xff] %v1623_v6  ;;  %851 = vst [vmem:[%s1501_s17 + $0x168] sm:$0xff] %v1625_v7 }
 0x10c   : > { %v1631_v8 = vpop.f32.mrf.mxu0  ;;  %v1633_v9 = vpop.f32.mrf.mxu1 }
 0x10d   : > { %824 = vst [vmem:[%s1501_s17 + $0x90] sm:$0xff] %v1631_v8  ;;  %856 = vst [vmem:[%s1501_s17 + $0x190] sm:$0xff] %v1633_v9 }
 0x10e   : > { %v1639_v10 = vpop.f32.mrf.mxu0  ;;  %v1641_v11 = vpop.f32.mrf.mxu1 }
 0x10f   : > { %822 = vst [vmem:[%s1501_s17 + $0x80] sm:$0xff] %v1639_v10  ;;  %854 = vst [vmem:[%s1501_s17 + $0x180] sm:$0xff] %v1641_v11 }
 0x110   : > { %v1647_v12 = vpop.f32.mrf.mxu0  ;;  %v1649_v13 = vpop.f32.mrf.mxu1 }
 0x111   : > { %825 = vst [vmem:[%s1501_s17 + $0x98] sm:$0xff] %v1647_v12  ;;  %857 = vst [vmem:[%s1501_s17 + $0x198] sm:$0xff] %v1649_v13 }
 0x112   : > { %v1655_v14 = vpop.f32.mrf.mxu0  ;;  %v1657_v15 = vpop.f32.mrf.mxu1 }
 0x113   : > { %823 = vst [vmem:[%s1501_s17 + $0x88] sm:$0xff] %v1655_v14  ;;  %855 = vst [vmem:[%s1501_s17 + $0x188] sm:$0xff] %v1657_v15 }
 0x114   : > { %v1663_v16 = vpop.f32.mrf.mxu0  ;;  %v1665_v17 = vpop.f32.mrf.mxu1 }
 0x115   : > { %2003 = vst [vmem:[#allocation2_spill] sm:$0xff] %v1665_v17  ;;  %828 = vst [vmem:[%s1501_s17 + $0xb0] sm:$0xff] %v1663_v16 }
 0x116   : > { %860 = vst [vmem:[%s1501_s17 + $0x1b0] sm:$0xff] %v1665_v17  ;;  %v1671_v18 = vpop.f32.mrf.mxu0  ;;  %v1673_v19 = vpop.f32.mrf.mxu1 }
 0x117   : > { %2004 = vst [vmem:[#allocation3_spill] sm:$0xff] %v1673_v19  ;;  %826 = vst [vmem:[%s1501_s17 + $0xa0] sm:$0xff] %v1671_v18 }
 0x118   : > { %858 = vst [vmem:[%s1501_s17 + $0x1a0] sm:$0xff] %v1673_v19  ;;  %v1679_v20 = vpop.f32.mrf.mxu0  ;;  %v1681_v21 = vpop.f32.mrf.mxu1 }
 0x119   : > { %2005 = vst [vmem:[#allocation4_spill] sm:$0xff] %v1681_v21  ;;  %829 = vst [vmem:[%s1501_s17 + $0xb8] sm:$0xff] %v1679_v20 }
 0x11a   : > { %861 = vst [vmem:[%s1501_s17 + $0x1b8] sm:$0xff] %v1681_v21  ;;  %v1687_v22 = vpop.f32.mrf.mxu0  ;;  %v1689_v23 = vpop.f32.mrf.mxu1 }
 0x11b   : > { %2006 = vst [vmem:[#allocation5_spill] sm:$0xff] %v1689_v23  ;;  %827 = vst [vmem:[%s1501_s17 + $0xa8] sm:$0xff] %v1687_v22 }
 0x11c   : > { %859 = vst [vmem:[%s1501_s17 + $0x1a8] sm:$0xff] %v1689_v23  ;;  %v1695_v24 = vpop.f32.mrf.mxu0  ;;  %v1697_v25 = vpop.f32.mrf.mxu1 }
 0x11d   : > { %2007 = vst [vmem:[#allocation6_spill] sm:$0xff] %v1697_v25  ;;  %832 = vst [vmem:[%s1501_s17 + $0xd0] sm:$0xff] %v1695_v24 }
 0x11e   : > { %864 = vst [vmem:[%s1501_s17 + $0x1d0] sm:$0xff] %v1697_v25  ;;  %v1703_v26 = vpop.f32.mrf.mxu0  ;;  %v1705_v27 = vpop.f32.mrf.mxu1 }
 0x11f   : > { %2008 = vst [vmem:[#allocation7_spill] sm:$0xff] %v1705_v27  ;;  %830 = vst [vmem:[%s1501_s17 + $0xc0] sm:$0xff] %v1703_v26 }
 0x120   : > { %862 = vst [vmem:[%s1501_s17 + $0x1c0] sm:$0xff] %v1705_v27  ;;  %v1711_v28 = vpop.f32.mrf.mxu0  ;;  %v1713_v29 = vpop.f32.mrf.mxu1 }
 0x121   : > { %2009 = vst [vmem:[#allocation8_spill] sm:$0xff] %v1713_v29  ;;  %833 = vst [vmem:[%s1501_s17 + $0xd8] sm:$0xff] %v1711_v28 }
 0x122   : > { %865 = vst [vmem:[%s1501_s17 + $0x1d8] sm:$0xff] %v1713_v29  ;;  %v1719_v30 = vpop.f32.mrf.mxu0  ;;  %v1721_v31 = vpop.f32.mrf.mxu1 }
 0x123   : > { %2010 = vst [vmem:[#allocation9_spill] sm:$0xff] %v1721_v31  ;;  %831 = vst [vmem:[%s1501_s17 + $0xc8] sm:$0xff] %v1719_v30 }
 0x124   : > { %863 = vst [vmem:[%s1501_s17 + $0x1c8] sm:$0xff] %v1721_v31  ;;  %v1727_v32 = vpop.f32.mrf.mxu0  ;;  %v1729_v33 = vpop.f32.mrf.mxu1 }
 0x125   : > { %2011 = vst [vmem:[#allocation10_spill] sm:$0xff] %v1729_v33  ;;  %836 = vst [vmem:[%s1501_s17 + $0xf0] sm:$0xff] %v1727_v32 }
 0x126   : > { %868 = vst [vmem:[%s1501_s17 + $0x1f0] sm:$0xff] %v1729_v33  ;;  %v1735_v34 = vpop.f32.mrf.mxu0  ;;  %v1737_v35 = vpop.f32.mrf.mxu1 }
 0x127   : > { %2012 = vst [vmem:[#allocation11_spill] sm:$0xff] %v1737_v35  ;;  %834 = vst [vmem:[%s1501_s17 + $0xe0] sm:$0xff] %v1735_v34 }
 0x128   : > { %866 = vst [vmem:[%s1501_s17 + $0x1e0] sm:$0xff] %v1737_v35  ;;  %v1743_v36 = vpop.f32.mrf.mxu0  ;;  %v1745_v37 = vpop.f32.mrf.mxu1  ;;  %873 = sbr.rel (%p1201_p4) target bundleno = 303 (0x12f), region = 32 }
 0x129   : > { %2013 = vst [vmem:[#allocation12_spill] sm:$0xff] %v1745_v37  ;;  %837 = vst [vmem:[%s1501_s17 + $0xf8] sm:$0xff] %v1743_v36 }
 0x12a   : > { %869 = vst [vmem:[%s1501_s17 + $0x1f8] sm:$0xff] %v1745_v37  ;;  %v1751_v38 = vpop.f32.mrf.mxu0  ;;  %v1753_v39 = vpop.f32.mrf.mxu1 }
 0x12b   : > { %2014 = vst [vmem:[#allocation13_spill] sm:$0xff] %v1753_v39  ;;  %835 = vst [vmem:[%s1501_s17 + $0xe8] sm:$0xff] %v1751_v38 }
 0x12c   : > { %867 = vst [vmem:[%s1501_s17 + $0x1e8] sm:$0xff] %v1753_v39 }
 0x12d   : > { %v1397_v33 = vmov 0.0  }
 0x12e   : > { %874 = vst [vmem:[%s1977_s3] sm:$0x1] %v1397_v33  ;;  %875 = vst [vmem:[%s1978_s4] sm:$0x1] %v1397_v33 }
 0x12f PF: > { %v877_v37 = vadd.f32 %v1527_v46, %v1511_v42  ;;  %v949_v33 = vmul.f32 %v1511_v42, %v1511_v42  ;;  %v950_v17 = vmul.f32 %v1527_v46, %v1527_v46  ;;  %v954_v46 = vmul.f32 %v1559_v54, %v1559_v54 }
 0x131   : > { %v878_v35 = vadd.f32 %v1503_v40, %v877_v37 }
 0x133   : > { %v879_v39 = vadd.f32 %v1519_v44, %v878_v35  ;;  %v951_v35 = vmul.f32 %v1503_v40, %v1503_v40 }
 0x135   : > { %v880_v29 = vadd.f32 %v879_v39, %v1543_v50 }
 0x137   : > { %v881_v25 = vadd.f32 %v880_v29, %v1559_v54  ;;  %v1013_v29 = vadd.f32 %v950_v17, %v949_v33  ;;  %v956_v17 = vmul.f32 %v1551_v52, %v1551_v52 }
 0x139   : > { %v882_v31 = vadd.f32 %v1535_v48, %v881_v25  ;;  %v952_v25 = vmul.f32 %v1519_v44, %v1519_v44  ;;  %v1014_v42 = vadd.f32 %v1013_v29, %v951_v35  ;;  %v957_v35 = vmul.f32 %v1575_v58, %v1575_v58 }
 0x13a   : > { %v959_v29 = vmul.f32 %v1567_v56, %v1567_v56 }
 0x13b   : > { %v883_v27 = vadd.f32 %v1551_v52, %v882_v31 }
 0x13d   : > { %v884_v21 = vadd.f32 %v883_v27, %v1575_v58  ;;  %v953_v27 = vmul.f32 %v1543_v50, %v1543_v50 }
 0x13f   : > { %v885_v37 = vadd.f32 %v884_v21, %v1591_v62  ;;  %v1015_v21 = vadd.f32 %v1014_v42, %v952_v25  ;;  %v961_v42 = vmul.f32 %v1607_v2, %v1607_v2 }
 0x141   : > { %v886_v39 = vadd.f32 %v1567_v56, %v885_v37  ;;  %v955_v37 = vmul.f32 %v1535_v48, %v1535_v48  ;;  %v1016_v19 = vadd.f32 %v1015_v21, %v953_v27  ;;  %v962_v21 = vmul.f32 %v1623_v6, %v1623_v6 }
 0x143   : > { %v887_v31 = vadd.f32 %v1583_v60, %v886_v39  ;;  %v1017_v33 = vadd.f32 %v1016_v19, %v954_v46  ;;  %v960_v19 = vmul.f32 %v1583_v60, %v1583_v60 }
 0x145   : > { %v888_v23 = vadd.f32 %v887_v31, %v1607_v2  ;;  %v1018_v39 = vadd.f32 %v1017_v33, %v955_v37  ;;  %v963_v37 = vmul.f32 %v1599_v0, %v1599_v0 }
 0x147   : > { %v889_v40 = vadd.f32 %v888_v23, %v1623_v6  ;;  %v958_v23 = vmul.f32 %v1591_v62, %v1591_v62  ;;  %v1019_v25 = vadd.f32 %v1018_v39, %v956_v17  ;;  %v964_v17 = vmul.f32 %v1615_v4, %v1615_v4 }
 0x148   : > { %v966_v39 = vmul.f32 %v1655_v14, %v1655_v14 }
 0x149   : > { %v890_v44 = vadd.f32 %v1599_v0, %v889_v40  ;;  %v1020_v31 = vadd.f32 %v1019_v25, %v957_v35 }
 0x14b   : > { %v891_v50 = vadd.f32 %v1615_v4, %v890_v44  ;;  %v1021_v27 = vadd.f32 %v1020_v31, %v958_v23  ;;  %v967_v23 = vmul.f32 %v1631_v8, %v1631_v8  ;;  %v969_v31 = vmul.f32 %v1671_v18, %v1671_v18 }
 0x14d   : > { %v892_v54 = vadd.f32 %v891_v50, %v1639_v10  ;;  %v1022_v46 = vadd.f32 %v1021_v27, %v959_v29  ;;  %v965_v50 = vmul.f32 %v1639_v10, %v1639_v10 }
 0x14f   : > { %v893_v48 = vadd.f32 %v892_v54, %v1655_v14  ;;  %v1023_v40 = vadd.f32 %v1022_v46, %v960_v19  ;;  %v970_v19 = vmul.f32 %v1687_v22, %v1687_v22  ;;  %v972_v46 = vmul.f32 %v1679_v20, %v1679_v20 }
 0x151   : > { %v894_v52 = vadd.f32 %v1631_v8, %v893_v48  ;;  %v1024_v44 = vadd.f32 %v1023_v40, %v961_v42  ;;  %v968_v48 = vmul.f32 %v1647_v12, %v1647_v12 }
 0x153   : > { %v895_v58 = vadd.f32 %v1647_v12, %v894_v52  ;;  %v1025_v33 = vadd.f32 %v1024_v44, %v962_v21  ;;  %v973_v21 = vmul.f32 %v1703_v26, %v1703_v26  ;;  %v975_v44 = vmul.f32 %v1695_v24, %v1695_v24 }
 0x155   : > { %v896_v62 = vadd.f32 %v895_v58, %v1671_v18  ;;  %v1026_v35 = vadd.f32 %v1025_v33, %v963_v37  ;;  %v971_v58 = vmul.f32 %v1663_v16, %v1663_v16 }
 0x157   : > { %v897_v56 = vadd.f32 %v896_v62, %v1687_v22  ;;  %v1027_v54 = vadd.f32 %v1026_v35, %v964_v17  ;;  %v976_v17 = vmul.f32 %v1711_v28, %v1711_v28  ;;  %v978_v35 = vmul.f32 %v1751_v38, %v1751_v38 }
 0x159   : > { %v898_v60 = vadd.f32 %v1663_v16, %v897_v56  ;;  %v1028_v25 = vadd.f32 %v1027_v54, %v965_v50  ;;  %v974_v56 = vmul.f32 %v1719_v30, %v1719_v30 }
 0x15b   : > { %v899_v2 = vadd.f32 %v1679_v20, %v898_v60  ;;  %v1029_v29 = vadd.f32 %v1028_v25, %v966_v39  ;;  %v979_v39 = vmul.f32 %v1727_v32, %v1727_v32  ;;  %v981_v25 = vmul.f32 %v1513_v43, %v1513_v43 }
 0x15d   : > { %v900_v6 = vadd.f32 %v899_v2, %v1703_v26  ;;  %v1030_v52 = vadd.f32 %v1029_v29, %v967_v23  ;;  %v977_v2 = vmul.f32 %v1735_v34, %v1735_v34 }
 0x15f   : > { %v901_v0 = vadd.f32 %v900_v6, %v1719_v30  ;;  %v1031_v27 = vadd.f32 %v1030_v52, %v968_v48  ;;  %v982_v48 = vmul.f32 %v1529_v47, %v1529_v47  ;;  %v984_v52 = vmul.f32 %v1521_v45, %v1521_v45 }
 0x161   : > { %v902_v4 = vadd.f32 %v1695_v24, %v901_v0  ;;  %v1032_v42 = vadd.f32 %v1031_v27, %v969_v31  ;;  %v980_v0 = vmul.f32 %v1743_v36, %v1743_v36 }
 0x163   : > { %v903_v10 = vadd.f32 %v1711_v28, %v902_v4  ;;  %v1033_v62 = vadd.f32 %v1032_v42, %v970_v19  ;;  %v985_v19 = vmul.f32 %v1545_v51, %v1545_v51  ;;  %v987_v42 = vmul.f32 %v1537_v49, %v1537_v49 }
 0x165   : > { %v904_v14 = vadd.f32 %v903_v10, %v1735_v34  ;;  %v1034_v40 = vadd.f32 %v1033_v62, %v971_v58  ;;  %v983_v10 = vmul.f32 %v1505_v41, %v1505_v41 }
 0x167   : > { %v905_v8 = vadd.f32 %v904_v14, %v1751_v38  ;;  %v1035_v37 = vadd.f32 %v1034_v40, %v972_v46  ;;  %v988_v46 = vmul.f32 %v1553_v53, %v1553_v53  ;;  %v990_v40 = vmul.f32 %v1593_v63, %v1593_v63 }
 0x169   : > { %v906_v12 = vadd.f32 %v1727_v32, %v905_v8  ;;  %v1036_v60 = vadd.f32 %v1035_v37, %v973_v21  ;;  %v986_v8 = vmul.f32 %v1561_v55, %v1561_v55 }
 0x16b   : > { %v907_v18 = vadd.f32 %v1743_v36, %v906_v12  ;;  %v1037_v33 = vadd.f32 %v1036_v60, %v974_v56  ;;  %v991_v56 = vmul.f32 %v1569_v57, %v1569_v57  ;;  %v993_v60 = vmul.f32 %v1609_v3, %v1609_v3 }
 0x16d   : > { %v908_v22 = vadd.f32 %v907_v18, %v1513_v43  ;;  %v1038_v50 = vadd.f32 %v1037_v33, %v975_v44  ;;  %v989_v18 = vmul.f32 %v1577_v59, %v1577_v59  ;;  %v994_v33 = vmul.f32 %v1625_v7, %v1625_v7 }
 0x16f   : > { %v909_v16 = vadd.f32 %v908_v22, %v1529_v47  ;;  %v1039_v6 = vadd.f32 %v1038_v50, %v976_v17  ;;  %v995_v50 = vmul.f32 %v1601_v1, %v1601_v1 }
 0x171   : > { %v910_v20 = vadd.f32 %v1505_v41, %v909_v16  ;;  %v1040_v54 = vadd.f32 %v1039_v6, %v977_v2  ;;  %v992_v16 = vmul.f32 %v1585_v61, %v1585_v61  ;;  %v996_v6 = vmul.f32 %v1617_v5, %v1617_v5 }
 0x173   : > { %v911_v26 = vadd.f32 %v1521_v45, %v910_v20  ;;  %v1041_v23 = vadd.f32 %v1040_v54, %v978_v35  ;;  %v997_v54 = vmul.f32 %v1641_v11, %v1641_v11 }
 0x175   : > { %v912_v30 = vadd.f32 %v911_v26, %v1545_v51  ;;  %v1042_v4 = vadd.f32 %v1041_v23, %v979_v39  ;;  %v998_v23 = vmul.f32 %v1657_v15, %v1657_v15 }
 0x177   : > { %v913_v24 = vadd.f32 %v912_v30, %v1561_v55  ;;  %v1043_v29 = vadd.f32 %v1042_v4, %v980_v0  ;;  %v999_v4 = vmul.f32 %v1633_v9, %v1633_v9 }
 0x179   : > { %v914_v28 = vadd.f32 %v1537_v49, %v913_v24  ;;  %v1044_v31 = vadd.f32 %v1043_v29, %v981_v25  ;;  %v1000_v29 = vmul.f32 %v1649_v13, %v1649_v13 }
 0x17b   : > { %v915_v34 = vadd.f32 %v1553_v53, %v914_v28  ;;  %v1045_v14 = vadd.f32 %v1044_v31, %v982_v48 }
 0x17d   : > { %v916_v38 = vadd.f32 %v915_v34, %v1577_v59  ;;  %v1046_v27 = vadd.f32 %v1045_v14, %v983_v10 }
 0x17f   : > { %v917_v32 = vadd.f32 %v916_v38, %v1593_v63  ;;  %v1047_v58 = vadd.f32 %v1046_v27, %v984_v52  ;;  %v2015_v63 = vld [vmem:[#allocation3_spill] sm:$0xff] }
 0x180   : > { %v1001_v31 = vmul.f32 %v2015_v63, %v2015_v63 }
 0x181   : > { %v918_v36 = vadd.f32 %v1569_v57, %v917_v32  ;;  %v1048_v12 = vadd.f32 %v1047_v58, %v985_v19  ;;  %v2016_v57 = vld [vmem:[#allocation5_spill] sm:$0xff] }
 0x182   : > { %v1002_v14 = vmul.f32 %v2016_v57, %v2016_v57 }
 0x183   : > { %v919_v43 = vadd.f32 %v1585_v61, %v918_v36  ;;  %v1049_v62 = vadd.f32 %v1048_v12, %v986_v8  ;;  %v2017_v61 = vld [vmem:[#allocation2_spill] sm:$0xff] }
 0x184   : > { %v1003_v27 = vmul.f32 %v2017_v61, %v2017_v61 }
 0x185   : > { %v920_v47 = vadd.f32 %v919_v43, %v1609_v3  ;;  %v1050_v21 = vadd.f32 %v1049_v62, %v987_v42  ;;  %v2018_v3 = vld [vmem:[#allocation4_spill] sm:$0xff] }
 0x186   : > { %v1004_v58 = vmul.f32 %v2018_v3, %v2018_v3  ;;  %v2026_v42 = vld [vmem:[#allocation12_spill] sm:$0xff] }
 0x187   : > { %v921_v41 = vadd.f32 %v920_v47, %v1625_v7  ;;  %v1051_v22 = vadd.f32 %v1050_v21, %v988_v46  ;;  %v2019_v7 = vld [vmem:[#allocation7_spill] sm:$0xff] }
 0x189   : > { %v922_v45 = vadd.f32 %v1601_v1, %v921_v41  ;;  %v1052_v37 = vadd.f32 %v1051_v22, %v989_v18  ;;  %v2020_v1 = vld [vmem:[#allocation9_spill] sm:$0xff] }
 0x18b   : > { %v923_v51 = vadd.f32 %v1617_v5, %v922_v45  ;;  %v1053_v44 = vadd.f32 %v1052_v37, %v990_v40  ;;  %v2021_v5 = vld [vmem:[#allocation6_spill] sm:$0xff]  ;;  %v1005_v45 = vmul.f32 %v2019_v7, %v2019_v7 }
 0x18d   : > { %v924_v55 = vadd.f32 %v923_v51, %v1641_v11  ;;  %v1054_v20 = vadd.f32 %v1053_v44, %v991_v56  ;;  %v2022_v11 = vld [vmem:[#allocation8_spill] sm:$0xff]  ;;  %v1006_v51 = vmul.f32 %v2020_v1, %v2020_v1 }
 0x18f   : > { %v925_v49 = vadd.f32 %v924_v55, %v1657_v15  ;;  %v1055_v26 = vadd.f32 %v1054_v20, %v992_v16  ;;  %v2023_v15 = vld [vmem:[#allocation11_spill] sm:$0xff]  ;;  %v1007_v55 = vmul.f32 %v2021_v5, %v2021_v5  ;;  %v876_v20 = vld [vmem:[%s1977_s3] sm:$0x1] }
 0x191   : > { %v926_v53 = vadd.f32 %v1633_v9, %v925_v49  ;;  %v1056_v30 = vadd.f32 %v1055_v26, %v993_v60  ;;  %v2024_v9 = vld [vmem:[#allocation13_spill] sm:$0xff]  ;;  %v1008_v49 = vmul.f32 %v2022_v11, %v2022_v11 }
 0x193   : > { %v927_v59 = vadd.f32 %v1649_v13, %v926_v53  ;;  %v1057_v24 = vadd.f32 %v1056_v30, %v994_v33  ;;  %v2025_v13 = vld [vmem:[#allocation10_spill] sm:$0xff]  ;;  %v1009_v53 = vmul.f32 %v2023_v15, %v2023_v15 }
 0x195   : > { %v928_v17 = vadd.f32 %v927_v59, %v2015_v63  ;;  %v1058_v28 = vadd.f32 %v1057_v24, %v995_v50  ;;  %v1010_v59 = vmul.f32 %v2024_v9, %v2024_v9 }
 0x197   : > { %v929_v2 = vadd.f32 %v928_v17, %v2016_v57  ;;  %v1059_v34 = vadd.f32 %v1058_v28, %v996_v6  ;;  %v1011_v17 = vmul.f32 %v2025_v13, %v2025_v13  ;;  %v1012_v57 = vmul.f32 %v2026_v42, %v2026_v42 }
 0x199   : > { %v930_v35 = vadd.f32 %v2017_v61, %v929_v2  ;;  %v1060_v38 = vadd.f32 %v1059_v34, %v997_v54 }
 0x19b   : > { %v931_v39 = vadd.f32 %v2018_v3, %v930_v35  ;;  %v1061_v32 = vadd.f32 %v1060_v38, %v998_v23 }
 0x19d   : > { %v932_v0 = vadd.f32 %v931_v39, %v2019_v7  ;;  %v1062_v36 = vadd.f32 %v1061_v32, %v999_v4  ;;  %v948_v39 = vld [vmem:[%s1978_s4] sm:$0x1] }
 0x19f   : > { %v933_v25 = vadd.f32 %v932_v0, %v2020_v1  ;;  %v1063_v43 = vadd.f32 %v1062_v36, %v1000_v29 }
 0x1a1   : > { %v934_v48 = vadd.f32 %v2021_v5, %v933_v25  ;;  %v1064_v47 = vadd.f32 %v1063_v43, %v1001_v31 }
 0x1a3   : > { %v935_v10 = vadd.f32 %v2022_v11, %v934_v48  ;;  %v1065_v41 = vadd.f32 %v1064_v47, %v1002_v14 }
 0x1a5   : > { %v936_v52 = vadd.f32 %v935_v10, %v2023_v15  ;;  %v1066_v46 = vadd.f32 %v1065_v41, %v1003_v27 }
 0x1a7   : > { %v937_v19 = vadd.f32 %v936_v52, %v2024_v9  ;;  %v1067_v18 = vadd.f32 %v1066_v46, %v1004_v58 }
 0x1a9   : > { %v938_v8 = vadd.f32 %v2025_v13, %v937_v19  ;;  %v1068_v40 = vadd.f32 %v1067_v18, %v1005_v45 }
 0x1ab   : > { %v939_v12 = vadd.f32 %v2026_v42, %v938_v8  ;;  %v1069_v56 = vadd.f32 %v1068_v40, %v1006_v51 }
 0x1ad   : > { %v940_v62 = vrot.slane %v939_v12, 4  ;;  %v1070_v16 = vadd.f32 %v1069_v56, %v1007_v55 }
 0x1af   : > { %v941_v21 = vadd.f32 %v940_v62, %v939_v12  ;;  %v1071_v60 = vadd.f32 %v1070_v16, %v1008_v49 }
 0x1b1   : > { %v942_v22 = vrot.slane %v941_v21, 2  ;;  %v1072_v33 = vadd.f32 %v1071_v60, %v1009_v53 }
 0x1b3   : > { %v943_v37 = vadd.f32 %v942_v22, %v941_v21  ;;  %v1073_v2 = vadd.f32 %v1072_v33, %v1010_v59 }
 0x1b5   : > { %v944_v44 = vrot.slane %v943_v37, 1  ;;  %v1074_v50 = vadd.f32 %v1073_v2, %v1011_v17 }
 0x1b7   : > { %v945_v63 = vadd.f32 %v944_v44, %v943_v37  ;;  %v1075_v30 = vadd.f32 %v1074_v50, %v1012_v57 }
 0x1b9   : > { %v946_v26 = vadd.f32 %v945_v63, %v876_v20  ;;  %v1076_v61 = vrot.slane %v1075_v30, 4 }
 0x1bb   : > { %947 = vst [vmem:[%s1977_s3] sm:$0x1] %v946_v26  ;;  %v1077_v35 = vadd.f32 %v1076_v61, %v1075_v30 }
 0x1bd   : > { %v1078_v6 = vrot.slane %v1077_v35, 2 }
 0x1bf   : > { %v1079_v24 = vadd.f32 %v1078_v6, %v1077_v35 }
 0x1c1   : > { %v1080_v3 = vrot.slane %v1079_v24, 1 }
 0x1c3   : > { %v1081_v54 = vadd.f32 %v1080_v3, %v1079_v24 }
 0x1c5   : > { %v1082_v28 = vadd.f32 %v1081_v54, %v948_v39 }
 0x1c7   : > { %1083 = vst [vmem:[%s1978_s4] sm:$0x1] %v1082_v28 }
 0x1c8 PF: > { %s15_s15 = sadd.s32 1, %s1395_s15  }
 0x1c9   : > { %p12_p5 = scmp.ge.s32.totalorder %s15_s15, 6  }
 0x1cb   :  { %14 = sbr.rel (!%p12_p5) target bundleno = 1 (0x1), region = 78 }

// kernel: _lambda_.16
= control target key start
LH: loop header
LB: loop body
LE: loop exit
PB: predicated region body
PF: predicated region fallthrough
CT: control target
= control target key end

     0   :  { %s1316_s12 = smov 0   ;;  %s1576_s0 = inlined_call_operand.vmem [shape: f32[2048,128], index: 0, kind: input, shape index: {}]   ;;  %s1577_s1 = inlined_call_operand.vmem [shape: f32[1,128], index: 1, kind: input, shape index: {}]   ;;  %s1578_s2 = inlined_call_operand.vmem [shape: f32[1,128], index: 2, kind: input, shape index: {}]   ;;  %s1579_s3 = inlined_call_operand.vmem [shape: bf16[2048,128], index: 3, kind: output, shape index: {}]  }
   0x1 LB: > { %s948_s13 = sadd.s32 4294967295, %s1294_s12   ;;  %p952_p0 = scmp.ge.s32.totalorder %s1294_s12, 1  ;;  %s1294_s12 = sphi %s1316_s12, %s13_s12  }
   0x2   : > { %p138_p1 = scmp.lt.s32.totalorder %s1294_s12, 5 }
   0x4   : > { %p139_p2 = pnand %p952_p0, %p138_p1 }
   0x5   : > { %s953_s14 = sshll.u32 (!%p139_p2), %s948_s13, 6 }
   0x6   : > { %142 = sbr.rel (%p139_p2) target bundleno = 109 (0x6d), region = 32  ;;  %p163_p3 = scmp.lt.s32.totalorder (!%p139_p2), %s953_s14, 255 }
   0xb   : > { %s1581_s14 = smov (!%p163_p3, %s953_s14), 255  ;;  %v1330_v0 = vld [vmem:[%s1577_s1] ss:$0 sm:$0xff] }
   0xc   : > { %s954_s15 = sshll.u32 %s1581_s14, 3  ;;  %v1340_v1 = vld [vmem:[%s1578_s2] ss:$0 sm:$0xff]  ;;  %s956_s23 = sshll.u32 %s1581_s14, 2 }
   0xd   : > { %s1335_s20 = scalar_lea.vmem %s1576_s0, %s954_s15  ;;  %s1368_s26 = scalar_lea.vmem %s1579_s3, %s956_s23 }
   0xe   : > { %v174_v2 = vld [vmem:[%s1335_s20] sm:$0xff]  ;;  %v175_v3 = vld [vmem:[%s1335_s20 + $0x8] sm:$0xff]  ;;  %v176_v4 = vld [vmem:[%s1335_s20 + $0x10] sm:$0xff] }
   0xf   : > { %v245_v5 = vmul.f32 %v1330_v0, %v174_v2  ;;  %v246_v6 = vmul.f32 %v1330_v0, %v175_v3  ;;  %v177_v7 = vld [vmem:[%s1335_s20 + $0x18] sm:$0xff]  ;;  %v247_v8 = vmul.f32 %v1330_v0, %v176_v4  ;;  %v178_v9 = vld [vmem:[%s1335_s20 + $0x20] sm:$0xff]  ;;  %v179_v10 = vld [vmem:[%s1335_s20 + $0x28] sm:$0xff] }
  0x10   : > { %v248_v11 = vmul.f32 %v1330_v0, %v177_v7  ;;  %v249_v12 = vmul.f32 %v1330_v0, %v178_v9  ;;  %v250_v13 = vmul.f32 %v1330_v0, %v179_v10  ;;  %v180_v14 = vld [vmem:[%s1335_s20 + $0x30] sm:$0xff]  ;;  %v181_v15 = vld [vmem:[%s1335_s20 + $0x38] sm:$0xff]  ;;  %v182_v30 = vld [vmem:[%s1335_s20 + $0x40] sm:$0xff] }
  0x11   : > { %v316_v16 = vadd.f32 %v1340_v1, %v245_v5  ;;  %v317_v17 = vadd.f32 %v1340_v1, %v246_v6  ;;  %v318_v18 = vadd.f32 %v1340_v1, %v247_v8  ;;  %v251_v19 = vmul.f32 %v1330_v0, %v180_v14  ;;  %v183_v31 = vld [vmem:[%s1335_s20 + $0x48] sm:$0xff]  ;;  %v184_v32 = vld [vmem:[%s1335_s20 + $0x50] sm:$0xff]  ;;  %v185_v44 = vld [vmem:[%s1335_s20 + $0x58] sm:$0xff] }
  0x12   : > { %v319_v20 = vadd.f32 %v1340_v1, %v248_v11  ;;  %v320_v21 = vadd.f32 %v1340_v1, %v249_v12  ;;  %v321_v22 = vadd.f32 %v1340_v1, %v250_v13  ;;  %v252_v23 = vmul.f32 %v1330_v0, %v181_v15  ;;  %v186_v46 = vld [vmem:[%s1335_s20 + $0x60] sm:$0xff]  ;;  %v187_v56 = vld [vmem:[%s1335_s20 + $0x68] sm:$0xff]  ;;  %v188_v60 = vld [vmem:[%s1335_s20 + $0x70] sm:$0xff] }
  0x13   : > { %vm380_vm0 = vcmp.ge.f32.partialorder %v316_v16, 0.0  ;;  %vm381_vm1 = vcmp.ge.f32.partialorder %v317_v17, 0.0  ;;  %v444_v24 = vmul.f32 0.1, %v316_v16  ;;  %v445_v25 = vmul.f32 0.1, %v317_v17 }
  0x14   : > { %vm382_vm2 = vcmp.ge.f32.partialorder %v318_v18, 0.0  ;;  %vm383_vm3 = vcmp.ge.f32.partialorder %v319_v20, 0.0  ;;  %v446_v26 = vmul.f32 0.1, %v318_v18  ;;  %v447_v27 = vmul.f32 0.1, %v319_v20 }
  0x15   : > { %v508_v28 = vsel %vm380_vm0, %v316_v16, %v444_v24  ;;  %v509_v29 = vsel %vm381_vm1, %v317_v17, %v445_v25  ;;  %vm384_vm4 = vcmp.ge.f32.partialorder %v320_v21, 0.0  ;;  %vm385_vm5 = vcmp.ge.f32.partialorder %v321_v22, 0.0  ;;  %v189_v6 = vld [vmem:[%s1335_s20 + $0x78] sm:$0xff]  ;;  %v190_v10 = vld [vmem:[%s1335_s20 + $0x80] sm:$0xff] }
  0x16   : > { %v1092_v33 = vpack.c.bf16 %v509_v29, %v508_v28  ;;  %v510_v34 = vsel %vm382_vm2, %v318_v18, %v446_v26  ;;  %v511_v35 = vsel %vm383_vm3, %v319_v20, %v447_v27  ;;  %v448_v36 = vmul.f32 0.1, %v320_v21  ;;  %v191_v18 = vld [vmem:[%s1335_s20 + $0x88] sm:$0xff]  ;;  %v193_v26 = vld [vmem:[%s1335_s20 + $0x98] sm:$0xff] }
  0x17   : > { %v1097_v37 = vpack.c.bf16 %v511_v35, %v510_v34  ;;  %v449_v38 = vmul.f32 0.1, %v321_v22  ;;  %v322_v39 = vadd.f32 %v1340_v1, %v251_v19  ;;  %v323_v40 = vadd.f32 %v1340_v1, %v252_v23  ;;  %v192_v19 = vld [vmem:[%s1335_s20 + $0x90] sm:$0xff] }
  0x18   : > { %1093 = vst [vmem:[%s1368_s26] sm:$0xff] %v1092_v33   ;;  %v512_v41 = vsel %vm384_vm4, %v320_v21, %v448_v36  ;;  %v253_v42 = vmul.f32 %v1330_v0, %v182_v30  ;;  %v254_v43 = vmul.f32 %v1330_v0, %v183_v31  ;;  %v255_v45 = vmul.f32 %v1330_v0, %v184_v32  ;;  %v194_v31 = vld [vmem:[%s1335_s20 + $0xa0] sm:$0xff]  ;;  %v195_v32 = vld [vmem:[%s1335_s20 + $0xa8] sm:$0xff] }
  0x19   : > { %1249 = vst [vmem:[%s1368_s26 + $0x8] sm:$0xff] %v1097_v37   ;;  %v513_v47 = vsel %vm385_vm5, %v321_v22, %v449_v38  ;;  %vm386_vm6 = vcmp.ge.f32.partialorder %v322_v39, 0.0  ;;  %vm387_vm7 = vcmp.ge.f32.partialorder %v323_v40, 0.0  ;;  %v450_v48 = vmul.f32 0.1, %v322_v39 }
  0x1a   : > { %v1102_v49 = vpack.c.bf16 %v513_v47, %v512_v41  ;;  %v451_v50 = vmul.f32 0.1, %v323_v40  ;;  %v324_v51 = vadd.f32 %v1340_v1, %v253_v42  ;;  %v325_v52 = vadd.f32 %v1340_v1, %v254_v43  ;;  %v196_v43 = vld [vmem:[%s1335_s20 + $0xb0] sm:$0xff] }
  0x1b   : > { %v514_v53 = vsel %vm386_vm6, %v322_v39, %v450_v48  ;;  %v256_v54 = vmul.f32 %v1330_v0, %v185_v44  ;;  %v326_v55 = vadd.f32 %v1340_v1, %v255_v45  ;;  %v257_v57 = vmul.f32 %v1330_v0, %v186_v46  ;;  %v197_v44 = vld [vmem:[%s1335_s20 + $0xb8] sm:$0xff] }
  0x1c   : > { %1250 = vst [vmem:[%s1368_s26 + $0x10] sm:$0xff] %v1102_v49   ;;  %v515_v58 = vsel %vm387_vm7, %v323_v40, %v451_v50  ;;  %vm388_vm8 = vcmp.ge.f32.partialorder %v324_v51, 0.0  ;;  %vm389_vm9 = vcmp.ge.f32.partialorder %v325_v52, 0.0  ;;  %v452_v59 = vmul.f32 0.1, %v324_v51 }
  0x1d   : > { %v1107_v61 = vpack.c.bf16 %v515_v58, %v514_v53  ;;  %v453_v62 = vmul.f32 0.1, %v325_v52  ;;  %v327_v63 = vadd.f32 %v1340_v1, %v256_v54  ;;  %vm390_vm10 = vcmp.ge.f32.partialorder %v326_v55, 0.0 }
  0x1e   : > { %v516_v2 = vsel %vm388_vm8, %v324_v51, %v452_v59  ;;  %v454_v3 = vmul.f32 0.1, %v326_v55  ;;  %v258_v4 = vmul.f32 %v1330_v0, %v187_v56  ;;  %v328_v5 = vadd.f32 %v1340_v1, %v257_v57  ;;  %v199_v59 = vld [vmem:[%s1335_s20 + $0xc8] sm:$0xff] }
  0x1f   : > { %1251 = vst [vmem:[%s1368_s26 + $0x18] sm:$0xff] %v1107_v61   ;;  %v517_v7 = vsel %vm389_vm9, %v325_v52, %v453_v62  ;;  %vm391_vm11 = vcmp.ge.f32.partialorder %v327_v63, 0.0  ;;  %v455_v8 = vmul.f32 0.1, %v327_v63  ;;  %v259_v9 = vmul.f32 %v1330_v0, %v188_v60 }
  0x20   : > { %v1112_v11 = vpack.c.bf16 %v517_v7, %v516_v2  ;;  %v518_v12 = vsel %vm390_vm10, %v326_v55, %v454_v3  ;;  %v329_v13 = vadd.f32 %v1340_v1, %v258_v4  ;;  %vm392_vm12 = vcmp.ge.f32.partialorder %v328_v5, 0.0  ;;  %v198_v55 = vld [vmem:[%s1335_s20 + $0xc0] sm:$0xff]  ;;  %v200_v4 = vld [vmem:[%s1335_s20 + $0xd0] sm:$0xff] }
  0x21   : > { %v519_v14 = vsel %vm391_vm11, %v327_v63, %v455_v8  ;;  %v456_v15 = vmul.f32 0.1, %v328_v5  ;;  %v260_v16 = vmul.f32 %v1330_v0, %v189_v6  ;;  %v330_v17 = vadd.f32 %v1340_v1, %v259_v9  ;;  %v201_v9 = vld [vmem:[%s1335_s20 + $0xd8] sm:$0xff] }
  0x22   : > { %1252 = vst [vmem:[%s1368_s26 + $0x20] sm:$0xff] %v1112_v11   ;;  %v1117_v20 = vpack.c.bf16 %v519_v14, %v518_v12  ;;  %vm393_vm13 = vcmp.ge.f32.partialorder %v329_v13, 0.0  ;;  %v457_v21 = vmul.f32 0.1, %v329_v13  ;;  %v261_v22 = vmul.f32 %v1330_v0, %v190_v10  ;;  %v202_v10 = vld [vmem:[%s1335_s20 + $0xe0] sm:$0xff]  ;;  %v203_v11 = vld [vmem:[%s1335_s20 + $0xe8] sm:$0xff] }
  0x23   : > { %v520_v23 = vsel %vm392_vm12, %v328_v5, %v456_v15  ;;  %v331_v24 = vadd.f32 %v1340_v1, %v260_v16  ;;  %vm394_vm14 = vcmp.ge.f32.partialorder %v330_v17, 0.0  ;;  %v458_v25 = vmul.f32 0.1, %v330_v17 }
  0x24   : > { %1253 = vst [vmem:[%s1368_s26 + $0x28] sm:$0xff] %v1117_v20   ;;  %v521_v27 = vsel %vm393_vm13, %v329_v13, %v457_v21  ;;  %v262_v28 = vmul.f32 %v1330_v0, %v191_v18  ;;  %v332_v29 = vadd.f32 %v1340_v1, %v261_v22  ;;  %v263_v30 = vmul.f32 %v1330_v0, %v192_v19  ;;  %v204_v22 = vld [vmem:[%s1335_s20 + $0xf0] sm:$0xff] }
  0x25   : > { %v1122_v33 = vpack.c.bf16 %v521_v27, %v520_v23  ;;  %vm395_vm15 = vcmp.ge.f32.partialorder %v331_v24, 0.0  ;;  %v459_v34 = vmul.f32 0.1, %v331_v24  ;;  %v522_v35 = vsel %vm394_vm14, %v330_v17, %v458_v25 }
  0x26   : > { %v333_v36 = vadd.f32 %v1340_v1, %v262_v28  ;;  %vm396_vm0 = vcmp.ge.f32.partialorder %v332_v29, 0.0  ;;  %v460_v37 = vmul.f32 0.1, %v332_v29  ;;  %v264_v38 = vmul.f32 %v1330_v0, %v193_v26 }
  0x27   : > { %1254 = vst [vmem:[%s1368_s26 + $0x30] sm:$0xff] %v1122_v33   ;;  %v523_v39 = vsel %vm395_vm15, %v331_v24, %v459_v34  ;;  %v334_v40 = vadd.f32 %v1340_v1, %v263_v30  ;;  %v265_v41 = vmul.f32 %v1330_v0, %v194_v31  ;;  %v266_v42 = vmul.f32 %v1330_v0, %v195_v32  ;;  %v205_v32 = vld [vmem:[%s1335_s20 + $0xf8] sm:$0xff] }
  0x28   : > { %v1127_v45 = vpack.c.bf16 %v523_v39, %v522_v35  ;;  %vm397_vm1 = vcmp.ge.f32.partialorder %v333_v36, 0.0  ;;  %v461_v46 = vmul.f32 0.1, %v333_v36  ;;  %v524_v47 = vsel %vm396_vm0, %v332_v29, %v460_v37  ;;  %v207_v37 = vld [vmem:[%s1335_s20 + $0x108] sm:$0xff] }
  0x29   : > { %v335_v48 = vadd.f32 %v1340_v1, %v264_v38  ;;  %vm398_vm2 = vcmp.ge.f32.partialorder %v334_v40, 0.0  ;;  %v462_v49 = vmul.f32 0.1, %v334_v40  ;;  %v336_v50 = vadd.f32 %v1340_v1, %v265_v41 }
  0x2a   : > { %1255 = vst [vmem:[%s1368_s26 + $0x38] sm:$0xff] %v1127_v45   ;;  %v525_v51 = vsel %vm397_vm1, %v333_v36, %v461_v46  ;;  %v337_v52 = vadd.f32 %v1340_v1, %v266_v42  ;;  %v267_v53 = vmul.f32 %v1330_v0, %v196_v43  ;;  %v268_v54 = vmul.f32 %v1330_v0, %v197_v44  ;;  %v206_v36 = vld [vmem:[%s1335_s20 + $0x100] sm:$0xff] }
  0x2b   : > { %v1132_v56 = vpack.c.bf16 %v525_v51, %v524_v47  ;;  %vm399_vm3 = vcmp.ge.f32.partialorder %v335_v48, 0.0  ;;  %v463_v57 = vmul.f32 0.1, %v335_v48  ;;  %v526_v58 = vsel %vm398_vm2, %v334_v40, %v462_v49 }
  0x2c   : > { %vm400_vm4 = vcmp.ge.f32.partialorder %v336_v50, 0.0  ;;  %vm401_vm5 = vcmp.ge.f32.partialorder %v337_v52, 0.0  ;;  %v464_v60 = vmul.f32 0.1, %v336_v50  ;;  %v465_v61 = vmul.f32 0.1, %v337_v52 }
  0x2d   : > { %1256 = vst [vmem:[%s1368_s26 + $0x40] sm:$0xff] %v1132_v56   ;;  %v527_v62 = vsel %vm399_vm3, %v335_v48, %v463_v57  ;;  %v338_v63 = vadd.f32 %v1340_v1, %v267_v53  ;;  %v339_v2 = vadd.f32 %v1340_v1, %v268_v54  ;;  %v269_v3 = vmul.f32 %v1330_v0, %v198_v55  ;;  %v208_v48 = vld [vmem:[%s1335_s20 + $0x110] sm:$0xff]  ;;  %v209_v53 = vld [vmem:[%s1335_s20 + $0x118] sm:$0xff] }
  0x2e   : > { %v1137_v5 = vpack.c.bf16 %v527_v62, %v526_v58  ;;  %v528_v6 = vsel %vm400_vm4, %v336_v50, %v464_v60  ;;  %v529_v7 = vsel %vm401_vm5, %v337_v52, %v465_v61  ;;  %v270_v8 = vmul.f32 %v1330_v0, %v199_v59  ;;  %v210_v60 = vld [vmem:[%s1335_s20 + $0x120] sm:$0xff] }
  0x2f   : > { %v1142_v12 = vpack.c.bf16 %v529_v7, %v528_v6  ;;  %vm402_vm6 = vcmp.ge.f32.partialorder %v338_v63, 0.0  ;;  %vm403_vm7 = vcmp.ge.f32.partialorder %v339_v2, 0.0  ;;  %v466_v13 = vmul.f32 0.1, %v338_v63 }
  0x30   : > { %1257 = vst [vmem:[%s1368_s26 + $0x48] sm:$0xff] %v1137_v5   ;;  %v467_v14 = vmul.f32 0.1, %v339_v2  ;;  %v340_v15 = vadd.f32 %v1340_v1, %v269_v3  ;;  %v341_v16 = vadd.f32 %v1340_v1, %v270_v8  ;;  %v271_v17 = vmul.f32 %v1330_v0, %v200_v4 }
  0x31   : > { %1258 = vst [vmem:[%s1368_s26 + $0x50] sm:$0xff] %v1142_v12   ;;  %v530_v18 = vsel %vm402_vm6, %v338_v63, %v466_v13  ;;  %v272_v19 = vmul.f32 %v1330_v0, %v201_v9  ;;  %v273_v20 = vmul.f32 %v1330_v0, %v202_v10  ;;  %v274_v21 = vmul.f32 %v1330_v0, %v203_v11  ;;  %v212_v10 = vld [vmem:[%s1335_s20 + $0x130] sm:$0xff]  ;;  %v213_v11 = vld [vmem:[%s1335_s20 + $0x138] sm:$0xff] }
  0x32   : > { %v531_v23 = vsel %vm403_vm7, %v339_v2, %v467_v14  ;;  %vm404_vm8 = vcmp.ge.f32.partialorder %v340_v15, 0.0  ;;  %vm405_vm9 = vcmp.ge.f32.partialorder %v341_v16, 0.0  ;;  %v468_v24 = vmul.f32 0.1, %v340_v15  ;;  %v211_v2 = vld [vmem:[%s1335_s20 + $0x128] sm:$0xff] }
  0x33   : > { %v1147_v25 = vpack.c.bf16 %v531_v23, %v530_v18  ;;  %v469_v26 = vmul.f32 0.1, %v341_v16  ;;  %v342_v27 = vadd.f32 %v1340_v1, %v271_v17  ;;  %v343_v28 = vadd.f32 %v1340_v1, %v272_v19  ;;  %v215_v23 = vld [vmem:[%s1335_s20 + $0x148] sm:$0xff] }
  0x34   : > { %v532_v29 = vsel %vm404_vm8, %v340_v15, %v468_v24  ;;  %v344_v30 = vadd.f32 %v1340_v1, %v273_v20  ;;  %v345_v31 = vadd.f32 %v1340_v1, %v274_v21  ;;  %v275_v33 = vmul.f32 %v1330_v0, %v204_v22  ;;  %v214_v15 = vld [vmem:[%s1335_s20 + $0x140] sm:$0xff] }
  0x35   : > { %1259 = vst [vmem:[%s1368_s26 + $0x58] sm:$0xff] %v1147_v25   ;;  %v533_v34 = vsel %vm405_vm9, %v341_v16, %v469_v26  ;;  %vm406_vm10 = vcmp.ge.f32.partialorder %v342_v27, 0.0  ;;  %vm407_vm11 = vcmp.ge.f32.partialorder %v343_v28, 0.0  ;;  %v470_v35 = vmul.f32 0.1, %v342_v27 }
  0x36   : > { %v1152_v38 = vpack.c.bf16 %v533_v34, %v532_v29  ;;  %v471_v39 = vmul.f32 0.1, %v343_v28  ;;  %vm408_vm12 = vcmp.ge.f32.partialorder %v344_v30, 0.0  ;;  %vm409_vm13 = vcmp.ge.f32.partialorder %v345_v31, 0.0 }
  0x37   : > { %v534_v40 = vsel %vm406_vm10, %v342_v27, %v470_v35  ;;  %v472_v41 = vmul.f32 0.1, %v344_v30  ;;  %v473_v42 = vmul.f32 0.1, %v345_v31  ;;  %v276_v43 = vmul.f32 %v1330_v0, %v205_v32  ;;  %v216_v27 = vld [vmem:[%s1335_s20 + $0x150] sm:$0xff]  ;;  %v217_v35 = vld [vmem:[%s1335_s20 + $0x158] sm:$0xff] }
  0x38   : > { %1260 = vst [vmem:[%s1368_s26 + $0x60] sm:$0xff] %v1152_v38   ;;  %v535_v44 = vsel %vm407_vm11, %v343_v28, %v471_v39  ;;  %v346_v45 = vadd.f32 %v1340_v1, %v275_v33  ;;  %v277_v46 = vmul.f32 %v1330_v0, %v206_v36  ;;  %v278_v47 = vmul.f32 %v1330_v0, %v207_v37 }
  0x39   : > { %v1157_v49 = vpack.c.bf16 %v535_v44, %v534_v40  ;;  %v536_v50 = vsel %vm408_vm12, %v344_v30, %v472_v41  ;;  %v537_v51 = vsel %vm409_vm13, %v345_v31, %v473_v42  ;;  %v347_v52 = vadd.f32 %v1340_v1, %v276_v43  ;;  %v218_v42 = vld [vmem:[%s1335_s20 + $0x160] sm:$0xff] }
  0x3a   : > { %v1162_v54 = vpack.c.bf16 %v537_v51, %v536_v50  ;;  %vm410_vm14 = vcmp.ge.f32.partialorder %v346_v45, 0.0  ;;  %v474_v55 = vmul.f32 0.1, %v346_v45  ;;  %v348_v56 = vadd.f32 %v1340_v1, %v277_v46  ;;  %v219_v46 = vld [vmem:[%s1335_s20 + $0x168] sm:$0xff] }
  0x3b   : > { %1261 = vst [vmem:[%s1368_s26 + $0x68] sm:$0xff] %v1157_v49   ;;  %vm411_vm15 = vcmp.ge.f32.partialorder %v347_v52, 0.0  ;;  %v475_v57 = vmul.f32 0.1, %v347_v52  ;;  %v349_v58 = vadd.f32 %v1340_v1, %v278_v47  ;;  %v279_v59 = vmul.f32 %v1330_v0, %v208_v48 }
  0x3c   : > { %1262 = vst [vmem:[%s1368_s26 + $0x70] sm:$0xff] %v1162_v54   ;;  %v538_v61 = vsel %vm410_vm14, %v346_v45, %v474_v55  ;;  %vm412_vm0 = vcmp.ge.f32.partialorder %v348_v56, 0.0  ;;  %v476_v62 = vmul.f32 0.1, %v348_v56  ;;  %v280_v63 = vmul.f32 %v1330_v0, %v209_v53  ;;  %v220_v54 = vld [vmem:[%s1335_s20 + $0x170] sm:$0xff]  ;;  %v221_v55 = vld [vmem:[%s1335_s20 + $0x178] sm:$0xff] }
  0x3d   : > { %v539_v3 = vsel %vm411_vm15, %v347_v52, %v475_v57  ;;  %vm413_vm1 = vcmp.ge.f32.partialorder %v349_v58, 0.0  ;;  %v477_v4 = vmul.f32 0.1, %v349_v58  ;;  %v350_v5 = vadd.f32 %v1340_v1, %v279_v59  ;;  %v222_v59 = vld [vmem:[%s1335_s20 + $0x180] sm:$0xff] }
  0x3e   : > { %v1167_v6 = vpack.c.bf16 %v539_v3, %v538_v61  ;;  %v540_v7 = vsel %vm412_vm0, %v348_v56, %v476_v62  ;;  %v351_v8 = vadd.f32 %v1340_v1, %v280_v63  ;;  %v281_v9 = vmul.f32 %v1330_v0, %v210_v60 }
  0x3f   : > { %v541_v12 = vsel %vm413_vm1, %v349_v58, %v477_v4  ;;  %vm414_vm2 = vcmp.ge.f32.partialorder %v350_v5, 0.0  ;;  %v478_v13 = vmul.f32 0.1, %v350_v5  ;;  %v282_v14 = vmul.f32 %v1330_v0, %v211_v2 }
  0x40   : > { %1263 = vst [vmem:[%s1368_s26 + $0x78] sm:$0xff] %v1167_v6   ;;  %v1172_v16 = vpack.c.bf16 %v541_v12, %v540_v7  ;;  %vm415_vm3 = vcmp.ge.f32.partialorder %v351_v8, 0.0  ;;  %v479_v17 = vmul.f32 0.1, %v351_v8  ;;  %v352_v18 = vadd.f32 %v1340_v1, %v281_v9  ;;  %v224_v9 = vld [vmem:[%s1335_s20 + $0x190] sm:$0xff] }
  0x41   : > { %v542_v19 = vsel %vm414_vm2, %v350_v5, %v478_v13  ;;  %v353_v20 = vadd.f32 %v1340_v1, %v282_v14  ;;  %v283_v21 = vmul.f32 %v1330_v0, %v212_v10  ;;  %v284_v22 = vmul.f32 %v1330_v0, %v213_v11  ;;  %v223_v5 = vld [vmem:[%s1335_s20 + $0x188] sm:$0xff] }
  0x42   : > { %1264 = vst [vmem:[%s1368_s26 + $0x80] sm:$0xff] %v1172_v16   ;;  %v543_v24 = vsel %vm415_vm3, %v351_v8, %v479_v17  ;;  %vm416_vm4 = vcmp.ge.f32.partialorder %v352_v18, 0.0  ;;  %v480_v25 = vmul.f32 0.1, %v352_v18  ;;  %v285_v26 = vmul.f32 %v1330_v0, %v214_v15  ;;  %v225_v17 = vld [vmem:[%s1335_s20 + $0x198] sm:$0xff] }
  0x43   : > { %v1177_v28 = vpack.c.bf16 %v543_v24, %v542_v19  ;;  %vm417_vm5 = vcmp.ge.f32.partialorder %v353_v20, 0.0  ;;  %v481_v29 = vmul.f32 0.1, %v353_v20  ;;  %v354_v30 = vadd.f32 %v1340_v1, %v283_v21  ;;  %v226_v24 = vld [vmem:[%s1335_s20 + $0x1a0] sm:$0xff] }
  0x44   : > { %v544_v31 = vsel %vm416_vm4, %v352_v18, %v480_v25  ;;  %v355_v32 = vadd.f32 %v1340_v1, %v284_v22  ;;  %v286_v33 = vmul.f32 %v1330_v0, %v215_v23  ;;  %v356_v34 = vadd.f32 %v1340_v1, %v285_v26 }
  0x45   : > { %1265 = vst [vmem:[%s1368_s26 + $0x88] sm:$0xff] %v1177_v28   ;;  %v545_v36 = vsel %vm417_vm5, %v353_v20, %v481_v29  ;;  %vm418_vm6 = vcmp.ge.f32.partialorder %v354_v30, 0.0  ;;  %v482_v37 = vmul.f32 0.1, %v354_v30  ;;  %v287_v38 = vmul.f32 %v1330_v0, %v216_v27  ;;  %v227_v28 = vld [vmem:[%s1335_s20 + $0x1a8] sm:$0xff] }
  0x46   : > { %v1182_v39 = vpack.c.bf16 %v545_v36, %v544_v31  ;;  %vm419_vm7 = vcmp.ge.f32.partialorder %v355_v32, 0.0  ;;  %v483_v40 = vmul.f32 0.1, %v355_v32  ;;  %v357_v41 = vadd.f32 %v1340_v1, %v286_v33  ;;  %v228_v36 = vld [vmem:[%s1335_s20 + $0x1b0] sm:$0xff] }
  0x47   : > { %v546_v43 = vsel %vm418_vm6, %v354_v30, %v482_v37  ;;  %vm420_vm8 = vcmp.ge.f32.partialorder %v356_v34, 0.0  ;;  %v484_v44 = vmul.f32 0.1, %v356_v34  ;;  %v288_v45 = vmul.f32 %v1330_v0, %v217_v35  ;;  %v229_v37 = vld [vmem:[%s1335_s20 + $0x1b8] sm:$0xff] }
  0x48   : > { %1266 = vst [vmem:[%s1368_s26 + $0x90] sm:$0xff] %v1182_v39   ;;  %v547_v47 = vsel %vm419_vm7, %v355_v32, %v483_v40  ;;  %vm421_vm9 = vcmp.ge.f32.partialorder %v357_v41, 0.0  ;;  %v485_v48 = vmul.f32 0.1, %v357_v41  ;;  %v358_v49 = vadd.f32 %v1340_v1, %v287_v38 }
  0x49   : > { %v1187_v50 = vpack.c.bf16 %v547_v47, %v546_v43  ;;  %v548_v51 = vsel %vm420_vm8, %v356_v34, %v484_v44  ;;  %v359_v52 = vadd.f32 %v1340_v1, %v288_v45  ;;  %v289_v53 = vmul.f32 %v1330_v0, %v218_v42 }
  0x4a   : > { %v549_v56 = vsel %vm421_vm9, %v357_v41, %v485_v48  ;;  %vm422_vm10 = vcmp.ge.f32.partialorder %v358_v49, 0.0  ;;  %v486_v57 = vmul.f32 0.1, %v358_v49  ;;  %v290_v58 = vmul.f32 %v1330_v0, %v219_v46  ;;  %v230_v41 = vld [vmem:[%s1335_s20 + $0x1c0] sm:$0xff] }
  0x4b   : > { %1267 = vst [vmem:[%s1368_s26 + $0x98] sm:$0xff] %v1187_v50   ;;  %v1192_v60 = vpack.c.bf16 %v549_v56, %v548_v51  ;;  %vm423_vm11 = vcmp.ge.f32.partialorder %v359_v52, 0.0  ;;  %v487_v61 = vmul.f32 0.1, %v359_v52  ;;  %v360_v62 = vadd.f32 %v1340_v1, %v289_v53  ;;  %v232_v53 = vld [vmem:[%s1335_s20 + $0x1d0] sm:$0xff] }
  0x4c   : > { %v550_v63 = vsel %vm422_vm10, %v358_v49, %v486_v57  ;;  %v361_v2 = vadd.f32 %v1340_v1, %v290_v58  ;;  %v291_v3 = vmul.f32 %v1330_v0, %v220_v54  ;;  %v292_v4 = vmul.f32 %v1330_v0, %v221_v55  ;;  %v231_v49 = vld [vmem:[%s1335_s20 + $0x1c8] sm:$0xff] }
  0x4d   : > { %1268 = vst [vmem:[%s1368_s26 + $0xa0] sm:$0xff] %v1192_v60   ;;  %v551_v6 = vsel %vm423_vm11, %v359_v52, %v487_v61  ;;  %vm424_vm12 = vcmp.ge.f32.partialorder %v360_v62, 0.0  ;;  %v488_v7 = vmul.f32 0.1, %v360_v62  ;;  %v293_v8 = vmul.f32 %v1330_v0, %v222_v59  ;;  %v233_v61 = vld [vmem:[%s1335_s20 + $0x1d8] sm:$0xff] }
  0x4e   : > { %v1197_v10 = vpack.c.bf16 %v551_v6, %v550_v63  ;;  %vm425_vm13 = vcmp.ge.f32.partialorder %v361_v2, 0.0  ;;  %v489_v11 = vmul.f32 0.1, %v361_v2  ;;  %v362_v12 = vadd.f32 %v1340_v1, %v291_v3  ;;  %v234_v6 = vld [vmem:[%s1335_s20 + $0x1e0] sm:$0xff] }
  0x4f   : > { %v552_v13 = vsel %vm424_vm12, %v360_v62, %v488_v7  ;;  %v363_v14 = vadd.f32 %v1340_v1, %v292_v4  ;;  %v294_v15 = vmul.f32 %v1330_v0, %v223_v5  ;;  %v364_v16 = vadd.f32 %v1340_v1, %v293_v8 }
  0x50   : > { %1269 = vst [vmem:[%s1368_s26 + $0xa8] sm:$0xff] %v1197_v10   ;;  %v553_v18 = vsel %vm425_vm13, %v361_v2, %v489_v11  ;;  %vm426_vm14 = vcmp.ge.f32.partialorder %v362_v12, 0.0  ;;  %v490_v19 = vmul.f32 0.1, %v362_v12  ;;  %v295_v20 = vmul.f32 %v1330_v0, %v224_v9  ;;  %v235_v10 = vld [vmem:[%s1335_s20 + $0x1e8] sm:$0xff] }
  0x51   : > { %v1202_v21 = vpack.c.bf16 %v553_v18, %v552_v13  ;;  %vm427_vm15 = vcmp.ge.f32.partialorder %v363_v14, 0.0  ;;  %v491_v22 = vmul.f32 0.1, %v363_v14  ;;  %v365_v23 = vadd.f32 %v1340_v1, %v294_v15  ;;  %v236_v18 = vld [vmem:[%s1335_s20 + $0x1f0] sm:$0xff] }
  0x52   : > { %v554_v25 = vsel %vm426_vm14, %v362_v12, %v490_v19  ;;  %vm428_vm0 = vcmp.ge.f32.partialorder %v364_v16, 0.0  ;;  %v492_v26 = vmul.f32 0.1, %v364_v16  ;;  %v296_v27 = vmul.f32 %v1330_v0, %v225_v17  ;;  %v237_v19 = vld [vmem:[%s1335_s20 + $0x1f8] sm:$0xff] }
  0x53   : > { %1270 = vst [vmem:[%s1368_s26 + $0xb0] sm:$0xff] %v1202_v21   ;;  %v555_v29 = vsel %vm427_vm15, %v363_v14, %v491_v22  ;;  %vm429_vm1 = vcmp.ge.f32.partialorder %v365_v23, 0.0  ;;  %v493_v30 = vmul.f32 0.1, %v365_v23  ;;  %v366_v31 = vadd.f32 %v1340_v1, %v295_v20 }
  0x54   : > { %v1207_v32 = vpack.c.bf16 %v555_v29, %v554_v25  ;;  %v556_v33 = vsel %vm428_vm0, %v364_v16, %v492_v26  ;;  %v367_v34 = vadd.f32 %v1340_v1, %v296_v27  ;;  %v297_v35 = vmul.f32 %v1330_v0, %v226_v24 }
  0x55   : > { %v557_v38 = vsel %vm429_vm1, %v365_v23, %v493_v30  ;;  %vm430_vm2 = vcmp.ge.f32.partialorder %v366_v31, 0.0  ;;  %v494_v39 = vmul.f32 0.1, %v366_v31  ;;  %v298_v40 = vmul.f32 %v1330_v0, %v227_v28 }
  0x56   : > { %1271 = vst [vmem:[%s1368_s26 + $0xb8] sm:$0xff] %v1207_v32   ;;  %v1212_v42 = vpack.c.bf16 %v557_v38, %v556_v33  ;;  %vm431_vm3 = vcmp.ge.f32.partialorder %v367_v34, 0.0  ;;  %v495_v43 = vmul.f32 0.1, %v367_v34  ;;  %v368_v44 = vadd.f32 %v1340_v1, %v297_v35 }
  0x57   : > { %v558_v45 = vsel %vm430_vm2, %v366_v31, %v494_v39  ;;  %v369_v46 = vadd.f32 %v1340_v1, %v298_v40  ;;  %v299_v47 = vmul.f32 %v1330_v0, %v228_v36  ;;  %v300_v48 = vmul.f32 %v1330_v0, %v229_v37 }
  0x58   : > { %1272 = vst [vmem:[%s1368_s26 + $0xc0] sm:$0xff] %v1212_v42   ;;  %v559_v50 = vsel %vm431_vm3, %v367_v34, %v495_v43  ;;  %vm432_vm4 = vcmp.ge.f32.partialorder %v368_v44, 0.0  ;;  %v496_v51 = vmul.f32 0.1, %v368_v44  ;;  %v301_v52 = vmul.f32 %v1330_v0, %v230_v41 }
  0x59   : > { %v1217_v54 = vpack.c.bf16 %v559_v50, %v558_v45  ;;  %vm433_vm5 = vcmp.ge.f32.partialorder %v369_v46, 0.0  ;;  %v497_v55 = vmul.f32 0.1, %v369_v46  ;;  %v370_v56 = vadd.f32 %v1340_v1, %v299_v47 }
  0x5a   : > { %v560_v57 = vsel %vm432_vm4, %v368_v44, %v496_v51  ;;  %v371_v58 = vadd.f32 %v1340_v1, %v300_v48  ;;  %v302_v59 = vmul.f32 %v1330_v0, %v231_v49  ;;  %v372_v60 = vadd.f32 %v1340_v1, %v301_v52 }
  0x5b   : > { %1273 = vst [vmem:[%s1368_s26 + $0xc8] sm:$0xff] %v1217_v54   ;;  %v561_v62 = vsel %vm433_vm5, %v369_v46, %v497_v55  ;;  %vm434_vm6 = vcmp.ge.f32.partialorder %v370_v56, 0.0  ;;  %v498_v63 = vmul.f32 0.1, %v370_v56  ;;  %v303_v2 = vmul.f32 %v1330_v0, %v232_v53 }
  0x5c   : > { %v1222_v3 = vpack.c.bf16 %v561_v62, %v560_v57  ;;  %vm435_vm7 = vcmp.ge.f32.partialorder %v371_v58, 0.0  ;;  %v499_v4 = vmul.f32 0.1, %v371_v58  ;;  %v373_v5 = vadd.f32 %v1340_v1, %v302_v59 }
  0x5d   : > { %v562_v7 = vsel %vm434_vm6, %v370_v56, %v498_v63  ;;  %vm436_vm8 = vcmp.ge.f32.partialorder %v372_v60, 0.0  ;;  %v500_v8 = vmul.f32 0.1, %v372_v60  ;;  %v304_v9 = vmul.f32 %v1330_v0, %v233_v61 }
  0x5e   : > { %1274 = vst [vmem:[%s1368_s26 + $0xd0] sm:$0xff] %v1222_v3   ;;  %v563_v11 = vsel %vm435_vm7, %v371_v58, %v499_v4  ;;  %vm437_vm9 = vcmp.ge.f32.partialorder %v373_v5, 0.0  ;;  %v501_v12 = vmul.f32 0.1, %v373_v5  ;;  %v374_v13 = vadd.f32 %v1340_v1, %v303_v2 }
  0x5f   : > { %v1227_v14 = vpack.c.bf16 %v563_v11, %v562_v7  ;;  %v564_v15 = vsel %vm436_vm8, %v372_v60, %v500_v8  ;;  %v375_v16 = vadd.f32 %v1340_v1, %v304_v9  ;;  %v305_v17 = vmul.f32 %v1330_v0, %v234_v6 }
  0x60   : > { %v565_v20 = vsel %vm437_vm9, %v373_v5, %v501_v12  ;;  %vm438_vm10 = vcmp.ge.f32.partialorder %v374_v13, 0.0  ;;  %v502_v21 = vmul.f32 0.1, %v374_v13  ;;  %v306_v22 = vmul.f32 %v1330_v0, %v235_v10 }
  0x61   : > { %1275 = vst [vmem:[%s1368_s26 + $0xd8] sm:$0xff] %v1227_v14   ;;  %v1232_v23 = vpack.c.bf16 %v565_v20, %v564_v15  ;;  %vm439_vm11 = vcmp.ge.f32.partialorder %v375_v16, 0.0  ;;  %v503_v24 = vmul.f32 0.1, %v375_v16  ;;  %v376_v25 = vadd.f32 %v1340_v1, %v305_v17 }
  0x62   : > { %v566_v26 = vsel %vm438_vm10, %v374_v13, %v502_v21  ;;  %v377_v27 = vadd.f32 %v1340_v1, %v306_v22  ;;  %v307_v28 = vmul.f32 %v1330_v0, %v236_v18  ;;  %v308_v29 = vmul.f32 %v1330_v0, %v237_v19 }
  0x63   : > { %1276 = vst [vmem:[%s1368_s26 + $0xe0] sm:$0xff] %v1232_v23   ;;  %v567_v30 = vsel %vm439_vm11, %v375_v16, %v503_v24  ;;  %vm440_vm12 = vcmp.ge.f32.partialorder %v376_v25, 0.0  ;;  %v504_v31 = vmul.f32 0.1, %v376_v25 }
  0x64   : > { %v1237_v32 = vpack.c.bf16 %v567_v30, %v566_v26  ;;  %vm441_vm13 = vcmp.ge.f32.partialorder %v377_v27, 0.0  ;;  %v505_v33 = vmul.f32 0.1, %v377_v27  ;;  %v378_v34 = vadd.f32 %v1340_v1, %v307_v28 }
  0x65   : > { %v568_v35 = vsel %vm440_vm12, %v376_v25, %v504_v31  ;;  %v379_v36 = vadd.f32 %v1340_v1, %v308_v29 }
  0x66   : > { %1277 = vst [vmem:[%s1368_s26 + $0xe8] sm:$0xff] %v1237_v32   ;;  %v569_v37 = vsel %vm441_vm13, %v377_v27, %v505_v33  ;;  %vm442_vm14 = vcmp.ge.f32.partialorder %v378_v34, 0.0  ;;  %v506_v38 = vmul.f32 0.1, %v378_v34 }
  0x67   : > { %v1242_v39 = vpack.c.bf16 %v569_v37, %v568_v35  ;;  %vm443_vm15 = vcmp.ge.f32.partialorder %v379_v36, 0.0  ;;  %v507_v0 = vmul.f32 0.1, %v379_v36 }
  0x68   : > { %v570_v40 = vsel %vm442_vm14, %v378_v34, %v506_v38 }
  0x69   : > { %1278 = vst [vmem:[%s1368_s26 + $0xf0] sm:$0xff] %v1242_v39   ;;  %v571_v41 = vsel %vm443_vm15, %v379_v36, %v507_v0 }
  0x6a   : > { %v1247_v42 = vpack.c.bf16 %v571_v41, %v570_v40 }
  0x6c   : > { %1279 = vst [vmem:[%s1368_s26 + $0xf8] sm:$0xff] %v1247_v42  }
  0x6d PF: > { %s13_s12 = sadd.s32 1, %s1294_s12  }
  0x6e   : > { %p10_p4 = scmp.ge.s32.totalorder %s13_s12, 6  }
  0x70   :  { %12 = sbr.rel (!%p10_p4) target bundleno = 1 (0x1), region = 62 }

// kernel: _lambda_.18
= control target key start
LH: loop header
LB: loop body
LE: loop exit
PB: predicated region body
PF: predicated region fallthrough
CT: control target
= control target key end

     0   :  { %s1503_s0 = inlined_call_operand.vmem [shape: f32[512,128], index: 0, kind: input, shape index: {}]   ;;  %s1504_s1 = inlined_call_operand.vmem [shape: f32[1,128], index: 1, kind: input, shape index: {}]   ;;  %s1505_s2 = inlined_call_operand.vmem [shape: f32[1,128], index: 2, kind: input, shape index: {}]   ;;  %s1506_s3 = inlined_call_operand.vmem [shape: bf16[512,128], index: 3, kind: output, shape index: {}]  }
   0x1   :  { %v14_v0 = vld [vmem:[%s1503_s0] sm:$0xff]  ;;  %v15_v1 = vld [vmem:[%s1503_s0 + $0x8] sm:$0xff]  ;;  %v16_v6 = vld [vmem:[%s1503_s0 + $0x10] sm:$0xff] }
   0x2   :  { %v1086_v2 = vld [vmem:[%s1504_s1] ss:$0 sm:$0xff]  ;;  %v17_v7 = vld [vmem:[%s1503_s0 + $0x18] sm:$0xff]  ;;  %v19_v11 = vld [vmem:[%s1503_s0 + $0x28] sm:$0xff] }
   0x3   :  { %v85_v3 = vmul.f32 %v1086_v2, %v14_v0  ;;  %v86_v4 = vmul.f32 %v1086_v2, %v15_v1  ;;  %v1093_v5 = vld [vmem:[%s1505_s2] ss:$0 sm:$0xff]  ;;  %v87_v8 = vmul.f32 %v1086_v2, %v16_v6  ;;  %v88_v9 = vmul.f32 %v1086_v2, %v17_v7  ;;  %v20_v12 = vld [vmem:[%s1503_s0 + $0x30] sm:$0xff]  ;;  %v21_v17 = vld [vmem:[%s1503_s0 + $0x38] sm:$0xff] }
   0x4   :  { %v18_v10 = vld [vmem:[%s1503_s0 + $0x20] sm:$0xff]  ;;  %v90_v16 = vmul.f32 %v1086_v2, %v19_v11  ;;  %v91_v20 = vmul.f32 %v1086_v2, %v20_v12  ;;  %v92_v21 = vmul.f32 %v1086_v2, %v21_v17  ;;  %v23_v35 = vld [vmem:[%s1503_s0 + $0x48] sm:$0xff]  ;;  %v24_v36 = vld [vmem:[%s1503_s0 + $0x50] sm:$0xff] }
   0x5   :  { %v156_v13 = vadd.f32 %v1093_v5, %v85_v3  ;;  %v157_v14 = vadd.f32 %v1093_v5, %v86_v4  ;;  %v89_v15 = vmul.f32 %v1086_v2, %v18_v10  ;;  %v158_v18 = vadd.f32 %v1093_v5, %v87_v8  ;;  %v22_v34 = vld [vmem:[%s1503_s0 + $0x40] sm:$0xff]  ;;  %v25_v42 = vld [vmem:[%s1503_s0 + $0x58] sm:$0xff]  ;;  %v27_v48 = vld [vmem:[%s1503_s0 + $0x68] sm:$0xff] }
   0x6   :  { %v159_v19 = vadd.f32 %v1093_v5, %v88_v9  ;;  %v161_v29 = vadd.f32 %v1093_v5, %v90_v16  ;;  %v162_v33 = vadd.f32 %v1093_v5, %v91_v20  ;;  %v163_v40 = vadd.f32 %v1093_v5, %v92_v21  ;;  %v26_v47 = vld [vmem:[%s1503_s0 + $0x60] sm:$0xff]  ;;  %v28_v60 = vld [vmem:[%s1503_s0 + $0x70] sm:$0xff]  ;;  %v29_v7 = vld [vmem:[%s1503_s0 + $0x78] sm:$0xff] }
   0x7   :  { %vm220_vm0 = vcmp.ge.f32.partialorder %v156_v13, 0.0  ;;  %vm221_vm1 = vcmp.ge.f32.partialorder %v157_v14, 0.0  ;;  %v284_v22 = vmul.f32 0.1, %v156_v13  ;;  %v285_v23 = vmul.f32 0.1, %v157_v14 }
   0x8   :  { %vm222_vm2 = vcmp.ge.f32.partialorder %v158_v18, 0.0  ;;  %vm223_vm3 = vcmp.ge.f32.partialorder %v159_v19, 0.0  ;;  %v286_v24 = vmul.f32 0.1, %v158_v18  ;;  %v287_v25 = vmul.f32 0.1, %v159_v19 }
   0x9   :  { %v348_v26 = vsel %vm220_vm0, %v156_v13, %v284_v22  ;;  %v349_v27 = vsel %vm221_vm1, %v157_v14, %v285_v23  ;;  %v160_v28 = vadd.f32 %v1093_v5, %v89_v15  ;;  %vm225_vm5 = vcmp.ge.f32.partialorder %v161_v29, 0.0  ;;  %v30_v12 = vld [vmem:[%s1503_s0 + $0x80] sm:$0xff]  ;;  %v31_v13 = vld [vmem:[%s1503_s0 + $0x88] sm:$0xff]  ;;  %v32_v20 = vld [vmem:[%s1503_s0 + $0x90] sm:$0xff] }
   0xa   :  { %v869_v30 = vpack.c.bf16 %v349_v27, %v348_v26  ;;  %v350_v31 = vsel %vm222_vm2, %v158_v18, %v286_v24  ;;  %v351_v32 = vsel %vm223_vm3, %v159_v19, %v287_v25  ;;  %v289_v39 = vmul.f32 0.1, %v161_v29  ;;  %v33_v25 = vld [vmem:[%s1503_s0 + $0x98] sm:$0xff] }
   0xb   :  { %v874_v37 = vpack.c.bf16 %v351_v32, %v350_v31  ;;  %vm224_vm4 = vcmp.ge.f32.partialorder %v160_v28, 0.0  ;;  %v288_v38 = vmul.f32 0.1, %v160_v28  ;;  %vm226_vm6 = vcmp.ge.f32.partialorder %v162_v33, 0.0 }
   0xc   :  { %870 = vst [vmem:[%s1506_s3] sm:$0xff] %v869_v30   ;;  %v290_v41 = vmul.f32 0.1, %v162_v33  ;;  %v93_v44 = vmul.f32 %v1086_v2, %v22_v34  ;;  %v94_v45 = vmul.f32 %v1086_v2, %v23_v35  ;;  %v95_v46 = vmul.f32 %v1086_v2, %v24_v36 }
   0xd   :  { %1026 = vst [vmem:[%s1506_s3 + $0x8] sm:$0xff] %v874_v37   ;;  %v352_v43 = vsel %vm224_vm4, %v160_v28, %v288_v38  ;;  %v353_v49 = vsel %vm225_vm5, %v161_v29, %v289_v39  ;;  %vm227_vm7 = vcmp.ge.f32.partialorder %v163_v40, 0.0  ;;  %v291_v50 = vmul.f32 0.1, %v163_v40  ;;  %v35_v37 = vld [vmem:[%s1503_s0 + $0xa8] sm:$0xff] }
   0xe   :  { %v354_v51 = vsel %vm226_vm6, %v162_v33, %v290_v41  ;;  %v879_v52 = vpack.c.bf16 %v353_v49, %v352_v43  ;;  %v164_v53 = vadd.f32 %v1093_v5, %v93_v44  ;;  %v165_v54 = vadd.f32 %v1093_v5, %v94_v45  ;;  %v34_v33 = vld [vmem:[%s1503_s0 + $0xa0] sm:$0xff]  ;;  %v36_v44 = vld [vmem:[%s1503_s0 + $0xb0] sm:$0xff]  ;;  %v37_v49 = vld [vmem:[%s1503_s0 + $0xb8] sm:$0xff] }
   0xf   :  { %v96_v55 = vmul.f32 %v1086_v2, %v25_v42  ;;  %v355_v56 = vsel %vm227_vm7, %v163_v40, %v291_v50  ;;  %v166_v57 = vadd.f32 %v1093_v5, %v95_v46  ;;  %v97_v58 = vmul.f32 %v1086_v2, %v26_v47  ;;  %v38_v50 = vld [vmem:[%s1503_s0 + $0xc0] sm:$0xff] }
  0x10   :  { %v98_v59 = vmul.f32 %v1086_v2, %v27_v48  ;;  %1027 = vst [vmem:[%s1506_s3 + $0x10] sm:$0xff] %v879_v52   ;;  %v884_v61 = vpack.c.bf16 %v355_v56, %v354_v51  ;;  %vm228_vm8 = vcmp.ge.f32.partialorder %v164_v53, 0.0  ;;  %vm229_vm9 = vcmp.ge.f32.partialorder %v165_v54, 0.0  ;;  %v39_v51 = vld [vmem:[%s1503_s0 + $0xc8] sm:$0xff] }
  0x11   :  { %v292_v62 = vmul.f32 0.1, %v164_v53  ;;  %v293_v63 = vmul.f32 0.1, %v165_v54  ;;  %v167_v0 = vadd.f32 %v1093_v5, %v96_v55  ;;  %vm230_vm10 = vcmp.ge.f32.partialorder %v166_v57, 0.0 }
  0x12   :  { %v294_v1 = vmul.f32 0.1, %v166_v57  ;;  %1028 = vst [vmem:[%s1506_s3 + $0x18] sm:$0xff] %v884_v61   ;;  %v168_v4 = vadd.f32 %v1093_v5, %v97_v58  ;;  %v169_v6 = vadd.f32 %v1093_v5, %v98_v59  ;;  %v99_v8 = vmul.f32 %v1086_v2, %v28_v60 }
  0x13   :  { %v356_v3 = vsel %vm228_vm8, %v164_v53, %v292_v62  ;;  %v357_v9 = vsel %vm229_vm9, %v165_v54, %v293_v63  ;;  %vm231_vm11 = vcmp.ge.f32.partialorder %v167_v0, 0.0  ;;  %v295_v10 = vmul.f32 0.1, %v167_v0  ;;  %v40_v62 = vld [vmem:[%s1503_s0 + $0xd0] sm:$0xff] }
  0x14   :  { %v358_v11 = vsel %vm230_vm10, %v166_v57, %v294_v1  ;;  %v889_v14 = vpack.c.bf16 %v357_v9, %v356_v3  ;;  %vm232_vm12 = vcmp.ge.f32.partialorder %v168_v4, 0.0  ;;  %vm233_vm13 = vcmp.ge.f32.partialorder %v169_v6, 0.0 }
  0x15   :  { %v296_v15 = vmul.f32 0.1, %v168_v4  ;;  %v359_v16 = vsel %vm231_vm11, %v167_v0, %v295_v10  ;;  %v297_v17 = vmul.f32 0.1, %v169_v6  ;;  %v100_v18 = vmul.f32 %v1086_v2, %v29_v7  ;;  %v41_v10 = vld [vmem:[%s1503_s0 + $0xd8] sm:$0xff] }
  0x16   :  { %v170_v19 = vadd.f32 %v1093_v5, %v99_v8  ;;  %1029 = vst [vmem:[%s1506_s3 + $0x20] sm:$0xff] %v889_v14   ;;  %v894_v21 = vpack.c.bf16 %v359_v16, %v358_v11  ;;  %v101_v23 = vmul.f32 %v1086_v2, %v30_v12  ;;  %v102_v24 = vmul.f32 %v1086_v2, %v31_v13  ;;  %v42_v14 = vld [vmem:[%s1503_s0 + $0xe0] sm:$0xff] }
  0x17   :  { %v360_v22 = vsel %vm232_vm12, %v168_v4, %v296_v15  ;;  %v361_v26 = vsel %vm233_vm13, %v169_v6, %v297_v17  ;;  %v171_v27 = vadd.f32 %v1093_v5, %v100_v18  ;;  %v103_v32 = vmul.f32 %v1086_v2, %v32_v20  ;;  %v43_v15 = vld [vmem:[%s1503_s0 + $0xe8] sm:$0xff] }
  0x18   :  { %vm234_vm14 = vcmp.ge.f32.partialorder %v170_v19, 0.0  ;;  %v298_v28 = vmul.f32 0.1, %v170_v19  ;;  %1030 = vst [vmem:[%s1506_s3 + $0x28] sm:$0xff] %v894_v21   ;;  %v899_v29 = vpack.c.bf16 %v361_v26, %v360_v22  ;;  %v172_v30 = vadd.f32 %v1093_v5, %v101_v23  ;;  %v44_v26 = vld [vmem:[%s1503_s0 + $0xf0] sm:$0xff] }
  0x19   :  { %v173_v31 = vadd.f32 %v1093_v5, %v102_v24  ;;  %vm235_vm15 = vcmp.ge.f32.partialorder %v171_v27, 0.0  ;;  %v299_v34 = vmul.f32 0.1, %v171_v27  ;;  %v104_v36 = vmul.f32 %v1086_v2, %v33_v25 }
  0x1a   :  { %v362_v35 = vsel %vm234_vm14, %v170_v19, %v298_v28  ;;  %1031 = vst [vmem:[%s1506_s3 + $0x30] sm:$0xff] %v899_v29   ;;  %vm236_vm0 = vcmp.ge.f32.partialorder %v172_v30, 0.0  ;;  %v300_v38 = vmul.f32 0.1, %v172_v30  ;;  %v174_v41 = vadd.f32 %v1093_v5, %v103_v32 }
  0x1b   :  { %vm237_vm1 = vcmp.ge.f32.partialorder %v173_v31, 0.0  ;;  %v301_v39 = vmul.f32 0.1, %v173_v31  ;;  %v363_v40 = vsel %vm235_vm15, %v171_v27, %v299_v34  ;;  %v175_v42 = vadd.f32 %v1093_v5, %v104_v36 }
  0x1c   :  { %v105_v43 = vmul.f32 %v1086_v2, %v34_v33  ;;  %v904_v45 = vpack.c.bf16 %v363_v40, %v362_v35  ;;  %v364_v46 = vsel %vm236_vm0, %v172_v30, %v300_v38  ;;  %v106_v48 = vmul.f32 %v1086_v2, %v35_v37  ;;  %v46_v38 = vld [vmem:[%s1503_s0 + $0x100] sm:$0xff] }
  0x1d   :  { %v365_v47 = vsel %vm237_vm1, %v173_v31, %v301_v39  ;;  %vm238_vm2 = vcmp.ge.f32.partialorder %v174_v41, 0.0  ;;  %vm239_vm3 = vcmp.ge.f32.partialorder %v175_v42, 0.0  ;;  %v302_v53 = vmul.f32 0.1, %v174_v41  ;;  %v45_v31 = vld [vmem:[%s1503_s0 + $0xf8] sm:$0xff] }
  0x1e   :  { %v909_v52 = vpack.c.bf16 %v365_v47, %v364_v46  ;;  %1032 = vst [vmem:[%s1506_s3 + $0x38] sm:$0xff] %v904_v45   ;;  %v303_v54 = vmul.f32 0.1, %v175_v42  ;;  %v176_v55 = vadd.f32 %v1093_v5, %v105_v43  ;;  %v177_v56 = vadd.f32 %v1093_v5, %v106_v48 }
  0x1f   :  { %v107_v57 = vmul.f32 %v1086_v2, %v36_v44  ;;  %v366_v58 = vsel %vm238_vm2, %v174_v41, %v302_v53  ;;  %v108_v59 = vmul.f32 %v1086_v2, %v37_v49  ;;  %v109_v60 = vmul.f32 %v1086_v2, %v38_v50  ;;  %v48_v50 = vld [vmem:[%s1503_s0 + $0x110] sm:$0xff] }
  0x20   :  { %1033 = vst [vmem:[%s1506_s3 + $0x40] sm:$0xff] %v909_v52   ;;  %v110_v61 = vmul.f32 %v1086_v2, %v39_v51  ;;  %v367_v63 = vsel %vm239_vm3, %v175_v42, %v303_v54  ;;  %vm240_vm4 = vcmp.ge.f32.partialorder %v176_v55, 0.0  ;;  %vm241_vm5 = vcmp.ge.f32.partialorder %v177_v56, 0.0  ;;  %v47_v42 = vld [vmem:[%s1503_s0 + $0x108] sm:$0xff]  ;;  %v49_v51 = vld [vmem:[%s1503_s0 + $0x118] sm:$0xff] }
  0x21   :  { %v304_v0 = vmul.f32 0.1, %v176_v55  ;;  %v914_v1 = vpack.c.bf16 %v367_v63, %v366_v58  ;;  %v305_v3 = vmul.f32 0.1, %v177_v56  ;;  %v178_v4 = vadd.f32 %v1093_v5, %v107_v57  ;;  %v51_v63 = vld [vmem:[%s1503_s0 + $0x128] sm:$0xff] }
  0x22   :  { %v179_v6 = vadd.f32 %v1093_v5, %v108_v59  ;;  %v180_v8 = vadd.f32 %v1093_v5, %v109_v60  ;;  %v181_v9 = vadd.f32 %v1093_v5, %v110_v61  ;;  %v111_v11 = vmul.f32 %v1086_v2, %v40_v62 }
  0x23   :  { %v368_v7 = vsel %vm240_vm4, %v176_v55, %v304_v0  ;;  %1034 = vst [vmem:[%s1506_s3 + $0x48] sm:$0xff] %v914_v1   ;;  %v369_v12 = vsel %vm241_vm5, %v177_v56, %v305_v3  ;;  %vm242_vm6 = vcmp.ge.f32.partialorder %v178_v4, 0.0  ;;  %v306_v13 = vmul.f32 0.1, %v178_v4  ;;  %v50_v55 = vld [vmem:[%s1503_s0 + $0x120] sm:$0xff] }
  0x24   :  { %vm243_vm7 = vcmp.ge.f32.partialorder %v179_v6, 0.0  ;;  %v919_v16 = vpack.c.bf16 %v369_v12, %v368_v7  ;;  %v307_v17 = vmul.f32 0.1, %v179_v6  ;;  %vm244_vm8 = vcmp.ge.f32.partialorder %v180_v8, 0.0 }
  0x25   :  { %vm245_vm9 = vcmp.ge.f32.partialorder %v181_v9, 0.0  ;;  %v370_v18 = vsel %vm242_vm6, %v178_v4, %v306_v13  ;;  %v308_v19 = vmul.f32 0.1, %v180_v8  ;;  %v309_v20 = vmul.f32 0.1, %v181_v9  ;;  %v52_v4 = vld [vmem:[%s1503_s0 + $0x130] sm:$0xff] }
  0x26   :  { %v112_v21 = vmul.f32 %v1086_v2, %v41_v10  ;;  %1035 = vst [vmem:[%s1506_s3 + $0x50] sm:$0xff] %v919_v16   ;;  %v371_v22 = vsel %vm243_vm7, %v179_v6, %v307_v17  ;;  %v182_v23 = vadd.f32 %v1093_v5, %v111_v11  ;;  %v113_v24 = vmul.f32 %v1086_v2, %v42_v14  ;;  %v53_v13 = vld [vmem:[%s1503_s0 + $0x138] sm:$0xff] }
  0x27   :  { %v114_v25 = vmul.f32 %v1086_v2, %v43_v15  ;;  %v924_v27 = vpack.c.bf16 %v371_v22, %v370_v18  ;;  %v372_v28 = vsel %vm244_vm8, %v180_v8, %v308_v19  ;;  %v373_v29 = vsel %vm245_vm9, %v181_v9, %v309_v20  ;;  %v54_v20 = vld [vmem:[%s1503_s0 + $0x140] sm:$0xff] }
  0x28   :  { %v183_v30 = vadd.f32 %v1093_v5, %v112_v21  ;;  %v929_v32 = vpack.c.bf16 %v373_v29, %v372_v28  ;;  %vm246_vm10 = vcmp.ge.f32.partialorder %v182_v23, 0.0  ;;  %v310_v33 = vmul.f32 0.1, %v182_v23 }
  0x29   :  { %v184_v34 = vadd.f32 %v1093_v5, %v113_v24  ;;  %1036 = vst [vmem:[%s1506_s3 + $0x58] sm:$0xff] %v924_v27   ;;  %v185_v36 = vadd.f32 %v1093_v5, %v114_v25  ;;  %v115_v37 = vmul.f32 %v1086_v2, %v44_v26  ;;  %v116_v41 = vmul.f32 %v1086_v2, %v45_v31  ;;  %v55_v24 = vld [vmem:[%s1503_s0 + $0x148] sm:$0xff] }
  0x2a   :  { %vm247_vm11 = vcmp.ge.f32.partialorder %v183_v30, 0.0  ;;  %v311_v35 = vmul.f32 0.1, %v183_v30  ;;  %1037 = vst [vmem:[%s1506_s3 + $0x60] sm:$0xff] %v929_v32   ;;  %v374_v39 = vsel %vm246_vm10, %v182_v23, %v310_v33  ;;  %v117_v49 = vmul.f32 %v1086_v2, %v46_v38  ;;  %v56_v32 = vld [vmem:[%s1503_s0 + $0x150] sm:$0xff]  ;;  %v57_v33 = vld [vmem:[%s1503_s0 + $0x158] sm:$0xff] }
  0x2b   :  { %vm248_vm12 = vcmp.ge.f32.partialorder %v184_v34, 0.0  ;;  %v312_v40 = vmul.f32 0.1, %v184_v34  ;;  %vm249_vm13 = vcmp.ge.f32.partialorder %v185_v36, 0.0  ;;  %v313_v44 = vmul.f32 0.1, %v185_v36 }
  0x2c   :  { %v375_v43 = vsel %vm247_vm11, %v183_v30, %v311_v35  ;;  %v186_v45 = vadd.f32 %v1093_v5, %v115_v37  ;;  %v187_v48 = vadd.f32 %v1093_v5, %v116_v41  ;;  %v118_v54 = vmul.f32 %v1086_v2, %v47_v42  ;;  %v58_v37 = vld [vmem:[%s1503_s0 + $0x160] sm:$0xff] }
  0x2d   :  { %v934_v46 = vpack.c.bf16 %v375_v43, %v374_v39  ;;  %v376_v47 = vsel %vm248_vm12, %v184_v34, %v312_v40  ;;  %v377_v52 = vsel %vm249_vm13, %v185_v36, %v313_v44  ;;  %v188_v58 = vadd.f32 %v1093_v5, %v117_v49  ;;  %v60_v49 = vld [vmem:[%s1503_s0 + $0x170] sm:$0xff] }
  0x2e   :  { %vm250_vm14 = vcmp.ge.f32.partialorder %v186_v45, 0.0  ;;  %v314_v53 = vmul.f32 0.1, %v186_v45  ;;  %v939_v56 = vpack.c.bf16 %v377_v52, %v376_v47  ;;  %vm251_vm15 = vcmp.ge.f32.partialorder %v187_v48, 0.0 }
  0x2f   :  { %1038 = vst [vmem:[%s1506_s3 + $0x68] sm:$0xff] %v934_v46   ;;  %v315_v57 = vmul.f32 0.1, %v187_v48  ;;  %v189_v60 = vadd.f32 %v1093_v5, %v118_v54  ;;  %v119_v61 = vmul.f32 %v1086_v2, %v48_v50  ;;  %v120_v62 = vmul.f32 %v1086_v2, %v49_v51 }
  0x30   :  { %v378_v59 = vsel %vm250_vm14, %v186_v45, %v314_v53  ;;  %1039 = vst [vmem:[%s1506_s3 + $0x70] sm:$0xff] %v939_v56   ;;  %vm252_vm0 = vcmp.ge.f32.partialorder %v188_v58, 0.0  ;;  %v316_v1 = vmul.f32 0.1, %v188_v58  ;;  %v121_v3 = vmul.f32 %v1086_v2, %v50_v55  ;;  %v59_v45 = vld [vmem:[%s1503_s0 + $0x168] sm:$0xff] }
  0x31   :  { %v379_v0 = vsel %vm251_vm15, %v187_v48, %v315_v57  ;;  %vm253_vm1 = vcmp.ge.f32.partialorder %v189_v60, 0.0  ;;  %v317_v7 = vmul.f32 0.1, %v189_v60  ;;  %v190_v8 = vadd.f32 %v1093_v5, %v119_v61  ;;  %v61_v57 = vld [vmem:[%s1503_s0 + $0x178] sm:$0xff] }
  0x32   :  { %v944_v6 = vpack.c.bf16 %v379_v0, %v378_v59  ;;  %v380_v9 = vsel %vm252_vm0, %v188_v58, %v316_v1  ;;  %v191_v10 = vadd.f32 %v1093_v5, %v120_v62  ;;  %v122_v11 = vmul.f32 %v1086_v2, %v51_v63  ;;  %v62_v0 = vld [vmem:[%s1503_s0 + $0x180] sm:$0xff] }
  0x33   :  { %v192_v12 = vadd.f32 %v1093_v5, %v121_v3  ;;  %v381_v14 = vsel %vm253_vm1, %v189_v60, %v317_v7  ;;  %vm254_vm2 = vcmp.ge.f32.partialorder %v190_v8, 0.0  ;;  %v318_v15 = vmul.f32 0.1, %v190_v8 }
  0x34   :  { %1040 = vst [vmem:[%s1506_s3 + $0x78] sm:$0xff] %v944_v6   ;;  %v123_v16 = vmul.f32 %v1086_v2, %v52_v4  ;;  %v949_v17 = vpack.c.bf16 %v381_v14, %v380_v9  ;;  %vm255_vm3 = vcmp.ge.f32.partialorder %v191_v10, 0.0  ;;  %v319_v18 = vmul.f32 0.1, %v191_v10  ;;  %v63_v6 = vld [vmem:[%s1503_s0 + $0x188] sm:$0xff]  ;;  %v64_v14 = vld [vmem:[%s1503_s0 + $0x190] sm:$0xff] }
  0x35   :  { %v193_v19 = vadd.f32 %v1093_v5, %v122_v11  ;;  %v382_v21 = vsel %vm254_vm2, %v190_v8, %v318_v15  ;;  %vm256_vm4 = vcmp.ge.f32.partialorder %v192_v12, 0.0  ;;  %v320_v22 = vmul.f32 0.1, %v192_v12  ;;  %v65_v15 = vld [vmem:[%s1503_s0 + $0x198] sm:$0xff] }
  0x36   :  { %v124_v23 = vmul.f32 %v1086_v2, %v53_v13  ;;  %1041 = vst [vmem:[%s1506_s3 + $0x80] sm:$0xff] %v949_v17   ;;  %v383_v25 = vsel %vm255_vm3, %v191_v10, %v319_v18  ;;  %v194_v27 = vadd.f32 %v1093_v5, %v123_v16  ;;  %v125_v31 = vmul.f32 %v1086_v2, %v54_v20 }
  0x37   :  { %vm257_vm5 = vcmp.ge.f32.partialorder %v193_v19, 0.0  ;;  %v321_v26 = vmul.f32 0.1, %v193_v19  ;;  %v954_v28 = vpack.c.bf16 %v383_v25, %v382_v21  ;;  %v384_v29 = vsel %vm256_vm4, %v192_v12, %v320_v22 }
  0x38   :  { %v195_v30 = vadd.f32 %v1093_v5, %v124_v23  ;;  %vm258_vm6 = vcmp.ge.f32.partialorder %v194_v27, 0.0  ;;  %v322_v35 = vmul.f32 0.1, %v194_v27  ;;  %v126_v36 = vmul.f32 %v1086_v2, %v55_v24 }
  0x39   :  { %v385_v34 = vsel %vm257_vm5, %v193_v19, %v321_v26  ;;  %1042 = vst [vmem:[%s1506_s3 + $0x88] sm:$0xff] %v954_v28   ;;  %v196_v40 = vadd.f32 %v1093_v5, %v125_v31  ;;  %v127_v43 = vmul.f32 %v1086_v2, %v56_v32  ;;  %v128_v44 = vmul.f32 %v1086_v2, %v57_v33  ;;  %v66_v19 = vld [vmem:[%s1503_s0 + $0x1a0] sm:$0xff]  ;;  %v68_v31 = vld [vmem:[%s1503_s0 + $0x1b0] sm:$0xff] }
  0x3a   :  { %v959_v38 = vpack.c.bf16 %v385_v34, %v384_v29  ;;  %vm259_vm7 = vcmp.ge.f32.partialorder %v195_v30, 0.0  ;;  %v323_v39 = vmul.f32 0.1, %v195_v30  ;;  %v386_v41 = vsel %vm258_vm6, %v194_v27, %v322_v35  ;;  %v67_v27 = vld [vmem:[%s1503_s0 + $0x1a8] sm:$0xff] }
  0x3b   :  { %v197_v42 = vadd.f32 %v1093_v5, %v126_v36  ;;  %vm260_vm8 = vcmp.ge.f32.partialorder %v196_v40, 0.0  ;;  %v324_v47 = vmul.f32 0.1, %v196_v40  ;;  %v129_v48 = vmul.f32 %v1086_v2, %v58_v37 }
  0x3c   :  { %1043 = vst [vmem:[%s1506_s3 + $0x90] sm:$0xff] %v959_v38   ;;  %v387_v46 = vsel %vm259_vm7, %v195_v30, %v323_v39  ;;  %v198_v52 = vadd.f32 %v1093_v5, %v127_v43  ;;  %v199_v54 = vadd.f32 %v1093_v5, %v128_v44  ;;  %v130_v55 = vmul.f32 %v1086_v2, %v59_v45  ;;  %v69_v39 = vld [vmem:[%s1503_s0 + $0x1b8] sm:$0xff] }
  0x3d   :  { %v964_v50 = vpack.c.bf16 %v387_v46, %v386_v41  ;;  %vm261_vm9 = vcmp.ge.f32.partialorder %v197_v42, 0.0  ;;  %v325_v51 = vmul.f32 0.1, %v197_v42  ;;  %v388_v53 = vsel %vm260_vm8, %v196_v40, %v324_v47  ;;  %v70_v46 = vld [vmem:[%s1503_s0 + $0x1c0] sm:$0xff] }
  0x3e   :  { %v200_v56 = vadd.f32 %v1093_v5, %v129_v48  ;;  %vm262_vm10 = vcmp.ge.f32.partialorder %v198_v52, 0.0  ;;  %v326_v59 = vmul.f32 0.1, %v198_v52  ;;  %v131_v60 = vmul.f32 %v1086_v2, %v60_v49 }
  0x3f   :  { %1044 = vst [vmem:[%s1506_s3 + $0x98] sm:$0xff] %v964_v50   ;;  %v389_v58 = vsel %vm261_vm9, %v197_v42, %v325_v51  ;;  %vm263_vm11 = vcmp.ge.f32.partialorder %v199_v54, 0.0  ;;  %v327_v62 = vmul.f32 0.1, %v199_v54  ;;  %v201_v63 = vadd.f32 %v1093_v5, %v130_v55  ;;  %v71_v50 = vld [vmem:[%s1503_s0 + $0x1c8] sm:$0xff] }
  0x40   :  { %v969_v61 = vpack.c.bf16 %v389_v58, %v388_v53  ;;  %v390_v1 = vsel %vm262_vm10, %v198_v52, %v326_v59  ;;  %vm264_vm12 = vcmp.ge.f32.partialorder %v200_v56, 0.0  ;;  %v328_v3 = vmul.f32 0.1, %v200_v56  ;;  %v72_v58 = vld [vmem:[%s1503_s0 + $0x1d0] sm:$0xff]  ;;  %v73_v59 = vld [vmem:[%s1503_s0 + $0x1d8] sm:$0xff] }
  0x41   :  { %v132_v4 = vmul.f32 %v1086_v2, %v61_v57  ;;  %v391_v7 = vsel %vm263_vm11, %v199_v54, %v327_v62  ;;  %vm265_vm13 = vcmp.ge.f32.partialorder %v201_v63, 0.0  ;;  %v329_v8 = vmul.f32 0.1, %v201_v63 }
  0x42   :  { %1045 = vst [vmem:[%s1506_s3 + $0xa0] sm:$0xff] %v969_v61   ;;  %v202_v9 = vadd.f32 %v1093_v5, %v131_v60  ;;  %v974_v10 = vpack.c.bf16 %v391_v7, %v390_v1  ;;  %v392_v11 = vsel %vm264_vm12, %v200_v56, %v328_v3  ;;  %v133_v13 = vmul.f32 %v1086_v2, %v62_v0 }
  0x43   :  { %v203_v12 = vadd.f32 %v1093_v5, %v132_v4  ;;  %v393_v16 = vsel %vm265_vm13, %v201_v63, %v329_v8  ;;  %v134_v18 = vmul.f32 %v1086_v2, %v63_v6  ;;  %v135_v25 = vmul.f32 %v1086_v2, %v64_v14  ;;  %v74_v63 = vld [vmem:[%s1503_s0 + $0x1e0] sm:$0xff] }
  0x44   :  { %vm266_vm14 = vcmp.ge.f32.partialorder %v202_v9, 0.0  ;;  %v330_v17 = vmul.f32 0.1, %v202_v9  ;;  %1046 = vst [vmem:[%s1506_s3 + $0xa8] sm:$0xff] %v974_v10   ;;  %v979_v20 = vpack.c.bf16 %v393_v16, %v392_v11  ;;  %v204_v22 = vadd.f32 %v1093_v5, %v133_v13  ;;  %v76_v13 = vld [vmem:[%s1503_s0 + $0x1f0] sm:$0xff] }
  0x45   :  { %vm267_vm15 = vcmp.ge.f32.partialorder %v203_v12, 0.0  ;;  %v331_v21 = vmul.f32 0.1, %v203_v12  ;;  %v205_v24 = vadd.f32 %v1093_v5, %v134_v18  ;;  %v136_v26 = vmul.f32 %v1086_v2, %v65_v15 }
  0x46   :  { %v394_v23 = vsel %vm266_vm14, %v202_v9, %v330_v17  ;;  %1047 = vst [vmem:[%s1506_s3 + $0xb0] sm:$0xff] %v979_v20   ;;  %vm268_vm0 = vcmp.ge.f32.partialorder %v204_v22, 0.0  ;;  %v332_v29 = vmul.f32 0.1, %v204_v22  ;;  %v137_v30 = vmul.f32 %v1086_v2, %v66_v19  ;;  %v75_v9 = vld [vmem:[%s1503_s0 + $0x1e8] sm:$0xff] }
  0x47   :  { %v395_v28 = vsel %vm267_vm15, %v203_v12, %v331_v21  ;;  %vm269_vm1 = vcmp.ge.f32.partialorder %v205_v24, 0.0  ;;  %v333_v33 = vmul.f32 0.1, %v205_v24  ;;  %v206_v34 = vadd.f32 %v1093_v5, %v135_v25  ;;  %v77_v21 = vld [vmem:[%s1503_s0 + $0x1f8] sm:$0xff] }
  0x48   :  { %v984_v32 = vpack.c.bf16 %v395_v28, %v394_v23  ;;  %v396_v35 = vsel %vm268_vm0, %v204_v22, %v332_v29  ;;  %v207_v36 = vadd.f32 %v1093_v5, %v136_v26  ;;  %v138_v37 = vmul.f32 %v1086_v2, %v67_v27 }
  0x49   :  { %v208_v38 = vadd.f32 %v1093_v5, %v137_v30  ;;  %v397_v40 = vsel %vm269_vm1, %v205_v24, %v333_v33  ;;  %vm270_vm2 = vcmp.ge.f32.partialorder %v206_v34, 0.0  ;;  %v334_v41 = vmul.f32 0.1, %v206_v34 }
  0x4a   :  { %1048 = vst [vmem:[%s1506_s3 + $0xb8] sm:$0xff] %v984_v32   ;;  %v139_v42 = vmul.f32 %v1086_v2, %v68_v31  ;;  %v989_v43 = vpack.c.bf16 %v397_v40, %v396_v35  ;;  %vm271_vm3 = vcmp.ge.f32.partialorder %v207_v36, 0.0  ;;  %v335_v44 = vmul.f32 0.1, %v207_v36 }
  0x4b   :  { %v209_v45 = vadd.f32 %v1093_v5, %v138_v37  ;;  %v398_v47 = vsel %vm270_vm2, %v206_v34, %v334_v41  ;;  %vm272_vm4 = vcmp.ge.f32.partialorder %v208_v38, 0.0  ;;  %v336_v48 = vmul.f32 0.1, %v208_v38 }
  0x4c   :  { %v140_v49 = vmul.f32 %v1086_v2, %v69_v39  ;;  %1049 = vst [vmem:[%s1506_s3 + $0xc0] sm:$0xff] %v989_v43   ;;  %v399_v51 = vsel %vm271_vm3, %v207_v36, %v335_v44  ;;  %v210_v53 = vadd.f32 %v1093_v5, %v139_v42  ;;  %v141_v57 = vmul.f32 %v1086_v2, %v70_v46 }
  0x4d   :  { %vm273_vm5 = vcmp.ge.f32.partialorder %v209_v45, 0.0  ;;  %v337_v52 = vmul.f32 0.1, %v209_v45  ;;  %v994_v54 = vpack.c.bf16 %v399_v51, %v398_v47  ;;  %v400_v55 = vsel %vm272_vm4, %v208_v38, %v336_v48 }
  0x4e   :  { %v211_v56 = vadd.f32 %v1093_v5, %v140_v49  ;;  %vm274_vm6 = vcmp.ge.f32.partialorder %v210_v53, 0.0  ;;  %v338_v61 = vmul.f32 0.1, %v210_v53  ;;  %v142_v62 = vmul.f32 %v1086_v2, %v71_v50 }
  0x4f   :  { %v401_v60 = vsel %vm273_vm5, %v209_v45, %v337_v52  ;;  %1050 = vst [vmem:[%s1506_s3 + $0xc8] sm:$0xff] %v994_v54   ;;  %v212_v3 = vadd.f32 %v1093_v5, %v141_v57  ;;  %v143_v7 = vmul.f32 %v1086_v2, %v72_v58  ;;  %v144_v8 = vmul.f32 %v1086_v2, %v73_v59 }
  0x50   :  { %v999_v0 = vpack.c.bf16 %v401_v60, %v400_v55  ;;  %vm275_vm7 = vcmp.ge.f32.partialorder %v211_v56, 0.0  ;;  %v339_v1 = vmul.f32 0.1, %v211_v56  ;;  %v402_v4 = vsel %vm274_vm6, %v210_v53, %v338_v61 }
  0x51   :  { %v213_v6 = vadd.f32 %v1093_v5, %v142_v62  ;;  %vm276_vm8 = vcmp.ge.f32.partialorder %v212_v3, 0.0  ;;  %v340_v11 = vmul.f32 0.1, %v212_v3  ;;  %v145_v12 = vmul.f32 %v1086_v2, %v74_v63 }
  0x52   :  { %1051 = vst [vmem:[%s1506_s3 + $0xd0] sm:$0xff] %v999_v0   ;;  %v403_v10 = vsel %vm275_vm7, %v211_v56, %v339_v1  ;;  %v214_v16 = vadd.f32 %v1093_v5, %v143_v7  ;;  %v215_v18 = vadd.f32 %v1093_v5, %v144_v8  ;;  %v146_v19 = vmul.f32 %v1086_v2, %v75_v9 }
  0x53   :  { %v1004_v14 = vpack.c.bf16 %v403_v10, %v402_v4  ;;  %vm277_vm9 = vcmp.ge.f32.partialorder %v213_v6, 0.0  ;;  %v341_v15 = vmul.f32 0.1, %v213_v6  ;;  %v404_v17 = vsel %vm276_vm8, %v212_v3, %v340_v11 }
  0x54   :  { %v216_v20 = vadd.f32 %v1093_v5, %v145_v12  ;;  %vm278_vm10 = vcmp.ge.f32.partialorder %v214_v16, 0.0  ;;  %v342_v23 = vmul.f32 0.1, %v214_v16  ;;  %v147_v24 = vmul.f32 %v1086_v2, %v76_v13 }
  0x55   :  { %1052 = vst [vmem:[%s1506_s3 + $0xd8] sm:$0xff] %v1004_v14   ;;  %v405_v22 = vsel %vm277_vm9, %v213_v6, %v341_v15  ;;  %vm279_vm11 = vcmp.ge.f32.partialorder %v215_v18, 0.0  ;;  %v343_v26 = vmul.f32 0.1, %v215_v18  ;;  %v217_v27 = vadd.f32 %v1093_v5, %v146_v19 }
  0x56   :  { %v1009_v25 = vpack.c.bf16 %v405_v22, %v404_v17  ;;  %v406_v28 = vsel %vm278_vm10, %v214_v16, %v342_v23  ;;  %vm280_vm12 = vcmp.ge.f32.partialorder %v216_v20, 0.0  ;;  %v344_v29 = vmul.f32 0.1, %v216_v20 }
  0x57   :  { %v148_v30 = vmul.f32 %v1086_v2, %v77_v21  ;;  %v407_v31 = vsel %vm279_vm11, %v215_v18, %v343_v26  ;;  %vm281_vm13 = vcmp.ge.f32.partialorder %v217_v27, 0.0  ;;  %v345_v32 = vmul.f32 0.1, %v217_v27 }
  0x58   :  { %1053 = vst [vmem:[%s1506_s3 + $0xe0] sm:$0xff] %v1009_v25   ;;  %v218_v33 = vadd.f32 %v1093_v5, %v147_v24  ;;  %v1014_v34 = vpack.c.bf16 %v407_v31, %v406_v28  ;;  %v408_v35 = vsel %vm280_vm12, %v216_v20, %v344_v29 }
  0x59   :  { %v219_v36 = vadd.f32 %v1093_v5, %v148_v30  ;;  %v409_v37 = vsel %vm281_vm13, %v217_v27, %v345_v32 }
  0x5a   :  { %vm282_vm14 = vcmp.ge.f32.partialorder %v218_v33, 0.0  ;;  %v346_v38 = vmul.f32 0.1, %v218_v33  ;;  %1054 = vst [vmem:[%s1506_s3 + $0xe8] sm:$0xff] %v1014_v34   ;;  %v1019_v2 = vpack.c.bf16 %v409_v37, %v408_v35 }
  0x5b   :  { %vm283_vm15 = vcmp.ge.f32.partialorder %v219_v36, 0.0  ;;  %v347_v39 = vmul.f32 0.1, %v219_v36 }
  0x5c   :  { %v410_v40 = vsel %vm282_vm14, %v218_v33, %v346_v38  ;;  %1055 = vst [vmem:[%s1506_s3 + $0xf0] sm:$0xff] %v1019_v2  }
  0x5d   :  { %v411_v41 = vsel %vm283_vm15, %v219_v36, %v347_v39 }
  0x5e   :  { %v1024_v42 = vpack.c.bf16 %v411_v41, %v410_v40 }
  0x60   :  { %1056 = vst [vmem:[%s1506_s3 + $0xf8] sm:$0xff] %v1024_v42  }

// kernel: _lambda_.17
= control target key start
LH: loop header
LB: loop body
LE: loop exit
PB: predicated region body
PF: predicated region fallthrough
CT: control target
= control target key end

     0   :  { %v1131_v42 = vmov 0.0   ;;  %s1679_s1 = inlined_call_operand.vmem [shape: bf16[128,128], index: 1, kind: input, shape index: {}]   ;;  %s1680_s0 = inlined_call_operand.vmem [shape: bf16[512,128], index: 0, kind: input, shape index: {}]   ;;  %s1681_s2 = inlined_call_operand.vmem [shape: f32[512,128], index: 2, kind: output, shape index: {0}]   ;;  %s1682_s3 = inlined_call_operand.vmem [shape: f32[1,128], index: 3, kind: output, shape index: {1}]   ;;  %s1683_s4 = inlined_call_operand.vmem [shape: f32[1,128], index: 4, kind: output, shape index: {2}]  }
   0x1   :  { %v1091_v0 = vld [vmem:[%s1679_s1 + $0x38] sm:$0xff]   ;;  %v1092_v1 = vld [vmem:[%s1679_s1 + $0x30] sm:$0xff]   ;;  %v1093_v2 = vld [vmem:[%s1679_s1 + $0x28] sm:$0xff]   ;;  %692 = vst [vmem:[%s1682_s3] sm:$0x1] %v1131_v42 }
   0x2   :  { %994 = vmatprep.subr.bf16.mxu0 %v1091_v0  ;;  %1074 = vmatprep.subr.bf16.mxu1 %v1091_v0  ;;  %v1094_v3 = vld [vmem:[%s1679_s1 + $0x20] sm:$0xff]   ;;  %v1095_v5 = vld [vmem:[%s1679_s1 + $0x18] sm:$0xff]   ;;  %v1096_v6 = vld [vmem:[%s1679_s1 + $0x10] sm:$0xff]   ;;  %693 = vst [vmem:[%s1683_s4] sm:$0x1] %v1131_v42 }
   0x3   :  { %995 = vmatpush3.bf16.msra.mxu0 %v1091_v0  ;;  %1082 = vmatpush3.bf16.msra.mxu1 %v1091_v0  ;;  %v1099_v4 = vld [vmem:[%s1680_s0] sm:$0xff]   ;;  %v1097_v7 = vld [vmem:[%s1679_s1 + $0x8] sm:$0xff]   ;;  %v1101_v11 = vld [vmem:[%s1680_s0 + $0x10] sm:$0xff]  }
   0x4   :  { %996 = vmatprep.subr.bf16.mxu0 %v1092_v1  ;;  %1075 = vmatprep.subr.bf16.mxu1 %v1092_v1  ;;  %v1098_v8 = vld [vmem:[%s1679_s1] sm:$0xff]   ;;  %v1100_v10 = vld [vmem:[%s1680_s0 + $0x8] sm:$0xff]   ;;  %v1117_v13 = vld [vmem:[%s1680_s0 + $0x90] sm:$0xff]  }
   0x5   :  { %1010 = vmatprep.mubr.bf16.mxu0 %v1099_v4  ;;  %v1115_v9 = vld [vmem:[%s1680_s0 + $0x80] sm:$0xff]   ;;  %v1116_v12 = vld [vmem:[%s1680_s0 + $0x88] sm:$0xff]   ;;  %v1102_v14 = vld [vmem:[%s1680_s0 + $0x18] sm:$0xff]  }
   0x6   :  { %1042 = vmatprep.mubr.bf16.mxu1 %v1115_v9  ;;  %v1103_v15 = vld [vmem:[%s1680_s0 + $0x20] sm:$0xff]   ;;  %v1118_v16 = vld [vmem:[%s1680_s0 + $0x98] sm:$0xff]   ;;  %v1104_v18 = vld [vmem:[%s1680_s0 + $0x28] sm:$0xff]  }
   0x7   :  { %997 = vmatpush3.bf16.msra.mxu0 %v1092_v1  ;;  %1083 = vmatpush3.bf16.msra.mxu1 %v1092_v1  ;;  %v1119_v17 = vld [vmem:[%s1680_s0 + $0xa0] sm:$0xff]   ;;  %v1120_v19 = vld [vmem:[%s1680_s0 + $0xa8] sm:$0xff]   ;;  %v1105_v20 = vld [vmem:[%s1680_s0 + $0x30] sm:$0xff]  }
   0x8   :  { %998 = vmatprep.subr.bf16.mxu0 %v1093_v2  ;;  %1076 = vmatprep.subr.bf16.mxu1 %v1093_v2  ;;  %v1121_v21 = vld [vmem:[%s1680_s0 + $0xb0] sm:$0xff]   ;;  %v1106_v22 = vld [vmem:[%s1680_s0 + $0x38] sm:$0xff]   ;;  %v1107_v24 = vld [vmem:[%s1680_s0 + $0x40] sm:$0xff]  }
   0x9   :  { %v1122_v23 = vld [vmem:[%s1680_s0 + $0xb8] sm:$0xff]   ;;  %v1123_v25 = vld [vmem:[%s1680_s0 + $0xc0] sm:$0xff]   ;;  %v1108_v26 = vld [vmem:[%s1680_s0 + $0x48] sm:$0xff]  }
   0xa   :  { %v1124_v27 = vld [vmem:[%s1680_s0 + $0xc8] sm:$0xff]   ;;  %v1109_v28 = vld [vmem:[%s1680_s0 + $0x50] sm:$0xff]   ;;  %v1110_v30 = vld [vmem:[%s1680_s0 + $0x58] sm:$0xff]  }
   0xb   :  { %999 = vmatpush3.bf16.msra.mxu0 %v1093_v2  ;;  %1084 = vmatpush3.bf16.msra.mxu1 %v1093_v2  ;;  %v1125_v29 = vld [vmem:[%s1680_s0 + $0xd0] sm:$0xff]   ;;  %v1126_v31 = vld [vmem:[%s1680_s0 + $0xd8] sm:$0xff]   ;;  %v1111_v32 = vld [vmem:[%s1680_s0 + $0x60] sm:$0xff]  }
   0xc   :  { %1000 = vmatprep.subr.bf16.mxu0 %v1094_v3  ;;  %1077 = vmatprep.subr.bf16.mxu1 %v1094_v3  ;;  %v1127_v33 = vld [vmem:[%s1680_s0 + $0xe0] sm:$0xff]   ;;  %v1112_v34 = vld [vmem:[%s1680_s0 + $0x68] sm:$0xff]   ;;  %v1113_v36 = vld [vmem:[%s1680_s0 + $0x70] sm:$0xff]  }
   0xd   :  { %v1128_v35 = vld [vmem:[%s1680_s0 + $0xe8] sm:$0xff]   ;;  %v1129_v37 = vld [vmem:[%s1680_s0 + $0xf0] sm:$0xff]   ;;  %v1114_v38 = vld [vmem:[%s1680_s0 + $0x78] sm:$0xff]  }
   0xe   :  { %v1130_v39 = vld [vmem:[%s1680_s0 + $0xf8] sm:$0xff]  }
   0xf   :  { %1001 = vmatpush3.bf16.msra.mxu0 %v1094_v3  ;;  %1085 = vmatpush3.bf16.msra.mxu1 %v1094_v3 }
  0x10   :  { %1002 = vmatprep.subr.bf16.mxu0 %v1095_v5  ;;  %1078 = vmatprep.subr.bf16.mxu1 %v1095_v5 }
  0x13   :  { %1003 = vmatpush3.bf16.msra.mxu0 %v1095_v5  ;;  %1086 = vmatpush3.bf16.msra.mxu1 %v1095_v5 }
  0x14   :  { %1004 = vmatprep.subr.bf16.mxu0 %v1096_v6  ;;  %1079 = vmatprep.subr.bf16.mxu1 %v1096_v6 }
  0x17   :  { %1005 = vmatpush3.bf16.msra.mxu0 %v1096_v6  ;;  %1087 = vmatpush3.bf16.msra.mxu1 %v1096_v6 }
  0x18   :  { %1006 = vmatprep.subr.bf16.mxu0 %v1097_v7  ;;  %1080 = vmatprep.subr.bf16.mxu1 %v1097_v7 }
  0x1b   :  { %1007 = vmatpush3.bf16.msra.mxu0 %v1097_v7  ;;  %1088 = vmatpush3.bf16.msra.mxu1 %v1097_v7 }
  0x1c   :  { %1008 = vmatprep.subr.bf16.mxu0 %v1098_v8  ;;  %1081 = vmatprep.subr.bf16.mxu1 %v1098_v8 }
  0x1f   :  { %1009 = vmatpush3.bf16.msra.mxu0 %v1098_v8  ;;  %1089 = vmatpush3.bf16.msra.mxu1 %v1098_v8 }
  0x22   :  { %1011 = vmatmul.mubr.bf16.vlgmr.msra.gmra.mxu0 %v1100_v10  ;;  %1043 = vmatmul.mubr.bf16.vlgmr.msra.gmra.mxu1 %v1116_v12 }
  0x23   :  { %1014 = vmatprep.mubr.bf16.mxu0 %v1101_v11  ;;  %1046 = vmatprep.mubr.bf16.mxu1 %v1117_v13 }
  0x2a   :  { %1015 = vmatmul.mubr.bf16.gmra.mxu0 %v1102_v14  ;;  %1047 = vmatmul.mubr.bf16.gmra.mxu1 %v1118_v16 }
  0x2b   :  { %1018 = vmatprep.mubr.bf16.mxu0 %v1103_v15  ;;  %1050 = vmatprep.mubr.bf16.mxu1 %v1119_v17 }
  0x32   :  { %1019 = vmatmul.mubr.bf16.gmra.mxu0 %v1104_v18  ;;  %1051 = vmatmul.mubr.bf16.gmra.mxu1 %v1120_v19 }
  0x33   :  { %1022 = vmatprep.mubr.bf16.mxu0 %v1105_v20  ;;  %1054 = vmatprep.mubr.bf16.mxu1 %v1121_v21 }
  0x3a   :  { %1023 = vmatmul.mubr.bf16.gmra.mxu0 %v1106_v22  ;;  %1055 = vmatmul.mubr.bf16.gmra.mxu1 %v1122_v23 }
  0x3b   :  { %1026 = vmatprep.mubr.bf16.mxu0 %v1107_v24  ;;  %1058 = vmatprep.mubr.bf16.mxu1 %v1123_v25 }
  0x42   :  { %1027 = vmatmul.mubr.bf16.gmra.mxu0 %v1108_v26  ;;  %1059 = vmatmul.mubr.bf16.gmra.mxu1 %v1124_v27 }
  0x43   :  { %1030 = vmatprep.mubr.bf16.mxu0 %v1109_v28  ;;  %1062 = vmatprep.mubr.bf16.mxu1 %v1125_v29 }
  0x4a   :  { %1031 = vmatmul.mubr.bf16.gmra.mxu0 %v1110_v30  ;;  %1063 = vmatmul.mubr.bf16.gmra.mxu1 %v1126_v31 }
  0x4b   :  { %1034 = vmatprep.mubr.bf16.mxu0 %v1111_v32  ;;  %1066 = vmatprep.mubr.bf16.mxu1 %v1127_v33 }
  0x52   :  { %1035 = vmatmul.mubr.bf16.gmra.mxu0 %v1112_v34  ;;  %1067 = vmatmul.mubr.bf16.gmra.mxu1 %v1128_v35 }
  0x53   :  { %1038 = vmatprep.mubr.bf16.mxu0 %v1113_v36  ;;  %1070 = vmatprep.mubr.bf16.mxu1 %v1129_v37 }
  0x5a   :  { %1039 = vmatmul.mubr.bf16.gmra.mxu0 %v1114_v38  ;;  %1071 = vmatmul.mubr.bf16.gmra.mxu1 %v1130_v39 }
  0xe2   :  { %v1012_v40 = vpop.f32.mrf.mxu0  ;;  %v1277_v41 = vpop.f32.mrf.mxu1 }
  0xe3   :  { %626 = vst [vmem:[%s1681_s2 + $0x10] sm:$0xff] %v1012_v40  ;;  %658 = vst [vmem:[%s1681_s2 + $0x110] sm:$0xff] %v1277_v41  ;;  %v769_v54 = vmul.f32 %v1012_v40, %v1012_v40 }
  0xe4   :  { %v369_v43 = vpop.f32.mrf.mxu0  ;;  %v1292_v44 = vpop.f32.mrf.mxu1 }
  0xe5   :  { %624 = vst [vmem:[%s1681_s2] sm:$0xff] %v369_v43  ;;  %656 = vst [vmem:[%s1681_s2 + $0x100] sm:$0xff] %v1292_v44  ;;  %v767_v49 = vmul.f32 %v369_v43, %v369_v43 }
  0xe6   :  { %v1013_v45 = vpop.f32.mrf.mxu0  ;;  %v1301_v46 = vpop.f32.mrf.mxu1 }
  0xe7   :  { %627 = vst [vmem:[%s1681_s2 + $0x18] sm:$0xff] %v1013_v45  ;;  %659 = vst [vmem:[%s1681_s2 + $0x118] sm:$0xff] %v1301_v46  ;;  %v770_v59 = vmul.f32 %v1013_v45, %v1013_v45 }
  0xe8   :  { %v372_v47 = vpop.f32.mrf.mxu0  ;;  %v1310_v48 = vpop.f32.mrf.mxu1 }
  0xe9   :  { %625 = vst [vmem:[%s1681_s2 + $0x8] sm:$0xff] %v372_v47  ;;  %v695_v50 = vadd.f32 %v372_v47, %v369_v43  ;;  %v768_v51 = vmul.f32 %v372_v47, %v372_v47  ;;  %657 = vst [vmem:[%s1681_s2 + $0x108] sm:$0xff] %v1310_v48 }
  0xea   :  { %v1016_v52 = vpop.f32.mrf.mxu0  ;;  %v1319_v53 = vpop.f32.mrf.mxu1 }
  0xeb   :  { %v696_v55 = vadd.f32 %v1012_v40, %v695_v50  ;;  %v831_v56 = vadd.f32 %v768_v51, %v767_v49  ;;  %630 = vst [vmem:[%s1681_s2 + $0x30] sm:$0xff] %v1016_v52  ;;  %662 = vst [vmem:[%s1681_s2 + $0x130] sm:$0xff] %v1319_v53  ;;  %v773_v10 = vmul.f32 %v1016_v52, %v1016_v52 }
  0xec   :  { %v385_v57 = vpop.f32.mrf.mxu0  ;;  %v1328_v58 = vpop.f32.mrf.mxu1 }
  0xed   :  { %v832_v60 = vadd.f32 %v831_v56, %v769_v54  ;;  %628 = vst [vmem:[%s1681_s2 + $0x20] sm:$0xff] %v385_v57  ;;  %v697_v61 = vadd.f32 %v1013_v45, %v696_v55  ;;  %660 = vst [vmem:[%s1681_s2 + $0x120] sm:$0xff] %v1328_v58  ;;  %v771_v1 = vmul.f32 %v385_v57, %v385_v57 }
  0xee   :  { %v1017_v62 = vpop.f32.mrf.mxu0  ;;  %v1337_v63 = vpop.f32.mrf.mxu1 }
  0xef   :  { %v698_v0 = vadd.f32 %v697_v61, %v385_v57  ;;  %v833_v2 = vadd.f32 %v832_v60, %v770_v59  ;;  %631 = vst [vmem:[%s1681_s2 + $0x38] sm:$0xff] %v1017_v62  ;;  %663 = vst [vmem:[%s1681_s2 + $0x138] sm:$0xff] %v1337_v63  ;;  %v774_v15 = vmul.f32 %v1017_v62, %v1017_v62 }
  0xf0   :  { %v388_v3 = vpop.f32.mrf.mxu0  ;;  %v1346_v4 = vpop.f32.mrf.mxu1 }
  0xf1   :  { %v834_v5 = vadd.f32 %v833_v2, %v771_v1  ;;  %629 = vst [vmem:[%s1681_s2 + $0x28] sm:$0xff] %v388_v3  ;;  %v699_v6 = vadd.f32 %v698_v0, %v388_v3  ;;  %v772_v7 = vmul.f32 %v388_v3, %v388_v3  ;;  %661 = vst [vmem:[%s1681_s2 + $0x128] sm:$0xff] %v1346_v4 }
  0xf2   :  { %v1020_v8 = vpop.f32.mrf.mxu0  ;;  %v1355_v9 = vpop.f32.mrf.mxu1 }
  0xf3   :  { %v700_v11 = vadd.f32 %v1016_v52, %v699_v6  ;;  %v835_v12 = vadd.f32 %v834_v5, %v772_v7  ;;  %634 = vst [vmem:[%s1681_s2 + $0x50] sm:$0xff] %v1020_v8  ;;  %666 = vst [vmem:[%s1681_s2 + $0x150] sm:$0xff] %v1355_v9  ;;  %v777_v30 = vmul.f32 %v1020_v8, %v1020_v8 }
  0xf4   :  { %v401_v13 = vpop.f32.mrf.mxu0  ;;  %v1364_v14 = vpop.f32.mrf.mxu1 }
  0xf5   :  { %v836_v16 = vadd.f32 %v835_v12, %v773_v10  ;;  %632 = vst [vmem:[%s1681_s2 + $0x40] sm:$0xff] %v401_v13  ;;  %v701_v17 = vadd.f32 %v1017_v62, %v700_v11  ;;  %664 = vst [vmem:[%s1681_s2 + $0x140] sm:$0xff] %v1364_v14  ;;  %v775_v21 = vmul.f32 %v401_v13, %v401_v13 }
  0xf6   :  { %v1021_v18 = vpop.f32.mrf.mxu0  ;;  %v1373_v19 = vpop.f32.mrf.mxu1 }
  0xf7   :  { %v702_v20 = vadd.f32 %v701_v17, %v401_v13  ;;  %v837_v22 = vadd.f32 %v836_v16, %v774_v15  ;;  %635 = vst [vmem:[%s1681_s2 + $0x58] sm:$0xff] %v1021_v18  ;;  %667 = vst [vmem:[%s1681_s2 + $0x158] sm:$0xff] %v1373_v19  ;;  %v778_v35 = vmul.f32 %v1021_v18, %v1021_v18 }
  0xf8   :  { %v404_v23 = vpop.f32.mrf.mxu0  ;;  %v1382_v24 = vpop.f32.mrf.mxu1 }
  0xf9   :  { %v838_v25 = vadd.f32 %v837_v22, %v775_v21  ;;  %633 = vst [vmem:[%s1681_s2 + $0x48] sm:$0xff] %v404_v23  ;;  %v703_v26 = vadd.f32 %v702_v20, %v404_v23  ;;  %v776_v27 = vmul.f32 %v404_v23, %v404_v23  ;;  %665 = vst [vmem:[%s1681_s2 + $0x148] sm:$0xff] %v1382_v24 }
  0xfa   :  { %v1024_v28 = vpop.f32.mrf.mxu0  ;;  %v1391_v29 = vpop.f32.mrf.mxu1 }
  0xfb   :  { %v704_v31 = vadd.f32 %v1020_v8, %v703_v26  ;;  %v839_v32 = vadd.f32 %v838_v25, %v776_v27  ;;  %638 = vst [vmem:[%s1681_s2 + $0x70] sm:$0xff] %v1024_v28  ;;  %670 = vst [vmem:[%s1681_s2 + $0x170] sm:$0xff] %v1391_v29  ;;  %v781_v55 = vmul.f32 %v1024_v28, %v1024_v28 }
  0xfc   :  { %v417_v33 = vpop.f32.mrf.mxu0  ;;  %v1400_v34 = vpop.f32.mrf.mxu1 }
  0xfd   :  { %v840_v36 = vadd.f32 %v839_v32, %v777_v30  ;;  %636 = vst [vmem:[%s1681_s2 + $0x60] sm:$0xff] %v417_v33  ;;  %v705_v37 = vadd.f32 %v1021_v18, %v704_v31  ;;  %668 = vst [vmem:[%s1681_s2 + $0x160] sm:$0xff] %v1400_v34  ;;  %v779_v42 = vmul.f32 %v417_v33, %v417_v33 }
  0xfe   :  { %v1025_v38 = vpop.f32.mrf.mxu0  ;;  %v1409_v39 = vpop.f32.mrf.mxu1 }
  0xff   :  { %v706_v40 = vadd.f32 %v705_v37, %v417_v33  ;;  %v841_v43 = vadd.f32 %v840_v36, %v778_v35  ;;  %639 = vst [vmem:[%s1681_s2 + $0x78] sm:$0xff] %v1025_v38  ;;  %671 = vst [vmem:[%s1681_s2 + $0x178] sm:$0xff] %v1409_v39  ;;  %v782_v61 = vmul.f32 %v1025_v38, %v1025_v38 }
 0x100   :  { %v420_v45 = vpop.f32.mrf.mxu0  ;;  %v1418_v47 = vpop.f32.mrf.mxu1 }
 0x101   :  { %v842_v49 = vadd.f32 %v841_v43, %v779_v42  ;;  %637 = vst [vmem:[%s1681_s2 + $0x68] sm:$0xff] %v420_v45  ;;  %v707_v50 = vadd.f32 %v706_v40, %v420_v45  ;;  %v780_v51 = vmul.f32 %v420_v45, %v420_v45  ;;  %669 = vst [vmem:[%s1681_s2 + $0x168] sm:$0xff] %v1418_v47 }
 0x102   :  { %v1028_v52 = vpop.f32.mrf.mxu0  ;;  %v1427_v54 = vpop.f32.mrf.mxu1 }
 0x103   :  { %v708_v56 = vadd.f32 %v1024_v28, %v707_v50  ;;  %v843_v57 = vadd.f32 %v842_v49, %v780_v51  ;;  %642 = vst [vmem:[%s1681_s2 + $0x90] sm:$0xff] %v1028_v52  ;;  %674 = vst [vmem:[%s1681_s2 + $0x190] sm:$0xff] %v1427_v54  ;;  %v785_v16 = vmul.f32 %v1028_v52, %v1028_v52 }
 0x104   :  { %v433_v59 = vpop.f32.mrf.mxu0  ;;  %v1436_v60 = vpop.f32.mrf.mxu1 }
 0x105   :  { %v844_v62 = vadd.f32 %v843_v57, %v781_v55  ;;  %640 = vst [vmem:[%s1681_s2 + $0x80] sm:$0xff] %v433_v59  ;;  %v709_v0 = vadd.f32 %v1025_v38, %v708_v56  ;;  %672 = vst [vmem:[%s1681_s2 + $0x180] sm:$0xff] %v1436_v60  ;;  %v783_v5 = vmul.f32 %v433_v59, %v433_v59 }
 0x106   :  { %v1029_v1 = vpop.f32.mrf.mxu0  ;;  %v1445_v2 = vpop.f32.mrf.mxu1 }
 0x107   :  { %v710_v3 = vadd.f32 %v709_v0, %v433_v59  ;;  %v845_v6 = vadd.f32 %v844_v62, %v782_v61  ;;  %643 = vst [vmem:[%s1681_s2 + $0x98] sm:$0xff] %v1029_v1  ;;  %675 = vst [vmem:[%s1681_s2 + $0x198] sm:$0xff] %v1445_v2  ;;  %v786_v22 = vmul.f32 %v1029_v1, %v1029_v1 }
 0x108   :  { %v436_v7 = vpop.f32.mrf.mxu0  ;;  %v1454_v8 = vpop.f32.mrf.mxu1 }
 0x109   :  { %v846_v10 = vadd.f32 %v845_v6, %v783_v5  ;;  %641 = vst [vmem:[%s1681_s2 + $0x88] sm:$0xff] %v436_v7  ;;  %v711_v11 = vadd.f32 %v710_v3, %v436_v7  ;;  %v784_v12 = vmul.f32 %v436_v7, %v436_v7  ;;  %673 = vst [vmem:[%s1681_s2 + $0x188] sm:$0xff] %v1454_v8 }
 0x10a   :  { %v1032_v13 = vpop.f32.mrf.mxu0  ;;  %v1463_v15 = vpop.f32.mrf.mxu1 }
 0x10b   :  { %v712_v17 = vadd.f32 %v1028_v52, %v711_v11  ;;  %v847_v18 = vadd.f32 %v846_v10, %v784_v12  ;;  %646 = vst [vmem:[%s1681_s2 + $0xb0] sm:$0xff] %v1032_v13  ;;  %678 = vst [vmem:[%s1681_s2 + $0x1b0] sm:$0xff] %v1463_v15  ;;  %v789_v42 = vmul.f32 %v1032_v13, %v1032_v13 }
 0x10c   :  { %v449_v20 = vpop.f32.mrf.mxu0  ;;  %v1472_v21 = vpop.f32.mrf.mxu1 }
 0x10d   :  { %v848_v23 = vadd.f32 %v847_v18, %v785_v16  ;;  %644 = vst [vmem:[%s1681_s2 + $0xa0] sm:$0xff] %v449_v20  ;;  %v713_v25 = vadd.f32 %v1029_v1, %v712_v17  ;;  %676 = vst [vmem:[%s1681_s2 + $0x1a0] sm:$0xff] %v1472_v21  ;;  %v787_v30 = vmul.f32 %v449_v20, %v449_v20 }
 0x10e   :  { %v1033_v26 = vpop.f32.mrf.mxu0  ;;  %v1481_v27 = vpop.f32.mrf.mxu1 }
 0x10f   :  { %v714_v28 = vadd.f32 %v713_v25, %v449_v20  ;;  %v849_v31 = vadd.f32 %v848_v23, %v786_v22  ;;  %647 = vst [vmem:[%s1681_s2 + $0xb8] sm:$0xff] %v1033_v26  ;;  %679 = vst [vmem:[%s1681_s2 + $0x1b8] sm:$0xff] %v1481_v27  ;;  %v790_v51 = vmul.f32 %v1033_v26, %v1033_v26 }
 0x110   :  { %v452_v32 = vpop.f32.mrf.mxu0  ;;  %v1490_v33 = vpop.f32.mrf.mxu1 }
 0x111   :  { %v850_v35 = vadd.f32 %v849_v31, %v787_v30  ;;  %645 = vst [vmem:[%s1681_s2 + $0xa8] sm:$0xff] %v452_v32  ;;  %v715_v36 = vadd.f32 %v714_v28, %v452_v32  ;;  %v788_v37 = vmul.f32 %v452_v32, %v452_v32  ;;  %677 = vst [vmem:[%s1681_s2 + $0x1a8] sm:$0xff] %v1490_v33 }
 0x112   :  { %v1036_v38 = vpop.f32.mrf.mxu0  ;;  %v1499_v40 = vpop.f32.mrf.mxu1 }
 0x113   :  { %v716_v43 = vadd.f32 %v1032_v13, %v715_v36  ;;  %v851_v45 = vadd.f32 %v850_v35, %v788_v37  ;;  %650 = vst [vmem:[%s1681_s2 + $0xd0] sm:$0xff] %v1036_v38  ;;  %682 = vst [vmem:[%s1681_s2 + $0x1d0] sm:$0xff] %v1499_v40  ;;  %v793_v11 = vmul.f32 %v1036_v38, %v1036_v38 }
 0x114   :  { %v465_v49 = vpop.f32.mrf.mxu0  ;;  %v1508_v50 = vpop.f32.mrf.mxu1 }
 0x115   :  { %v852_v52 = vadd.f32 %v851_v45, %v789_v42  ;;  %648 = vst [vmem:[%s1681_s2 + $0xc0] sm:$0xff] %v465_v49  ;;  %v717_v55 = vadd.f32 %v1033_v26, %v716_v43  ;;  %680 = vst [vmem:[%s1681_s2 + $0x1c0] sm:$0xff] %v1508_v50  ;;  %v791_v61 = vmul.f32 %v465_v49, %v465_v49 }
 0x116   :  { %v1037_v56 = vpop.f32.mrf.mxu0  ;;  %v1517_v57 = vpop.f32.mrf.mxu1 }
 0x117   :  { %v718_v59 = vadd.f32 %v717_v55, %v465_v49  ;;  %v853_v62 = vadd.f32 %v852_v52, %v790_v51  ;;  %651 = vst [vmem:[%s1681_s2 + $0xd8] sm:$0xff] %v1037_v56  ;;  %683 = vst [vmem:[%s1681_s2 + $0x1d8] sm:$0xff] %v1517_v57  ;;  %v794_v18 = vmul.f32 %v1037_v56, %v1037_v56 }
 0x118   :  { %v468_v0 = vpop.f32.mrf.mxu0  ;;  %v1526_v1 = vpop.f32.mrf.mxu1  ;;  %v799_v52 = vmul.f32 %v1292_v44, %v1292_v44 }
 0x119   :  { %v854_v3 = vadd.f32 %v853_v62, %v791_v61  ;;  %649 = vst [vmem:[%s1681_s2 + $0xc8] sm:$0xff] %v468_v0  ;;  %v719_v5 = vadd.f32 %v718_v59, %v468_v0  ;;  %v792_v6 = vmul.f32 %v468_v0, %v468_v0  ;;  %681 = vst [vmem:[%s1681_s2 + $0x1c8] sm:$0xff] %v1526_v1 }
 0x11a   :  { %v1040_v7 = vpop.f32.mrf.mxu0  ;;  %v1535_v10 = vpop.f32.mrf.mxu1  ;;  %v800_v61 = vmul.f32 %v1310_v48, %v1310_v48  ;;  %v801_v0 = vmul.f32 %v1277_v41, %v1277_v41 }
 0x11b   :  { %v720_v12 = vadd.f32 %v1036_v38, %v719_v5  ;;  %v855_v13 = vadd.f32 %v854_v3, %v792_v6  ;;  %654 = vst [vmem:[%s1681_s2 + $0xf0] sm:$0xff] %v1040_v7  ;;  %686 = vst [vmem:[%s1681_s2 + $0x1f0] sm:$0xff] %v1535_v10  ;;  %v797_v38 = vmul.f32 %v1040_v7, %v1040_v7 }
 0x11c   :  { %v481_v16 = vpop.f32.mrf.mxu0  ;;  %v1544_v17 = vpop.f32.mrf.mxu1  ;;  %v802_v6 = vmul.f32 %v1301_v46, %v1301_v46 }
 0x11d   :  { %v856_v20 = vadd.f32 %v855_v13, %v793_v11  ;;  %652 = vst [vmem:[%s1681_s2 + $0xe0] sm:$0xff] %v481_v16  ;;  %v721_v22 = vadd.f32 %v1037_v56, %v720_v12  ;;  %684 = vst [vmem:[%s1681_s2 + $0x1e0] sm:$0xff] %v1544_v17  ;;  %v795_v28 = vmul.f32 %v481_v16, %v481_v16 }
 0x11e   :  { %v1041_v23 = vpop.f32.mrf.mxu0  ;;  %v1553_v25 = vpop.f32.mrf.mxu1  ;;  %v803_v12 = vmul.f32 %v1328_v58, %v1328_v58 }
 0x11f   :  { %v722_v26 = vadd.f32 %v721_v22, %v481_v16  ;;  %v857_v30 = vadd.f32 %v856_v20, %v794_v18  ;;  %655 = vst [vmem:[%s1681_s2 + $0xf8] sm:$0xff] %v1041_v23  ;;  %687 = vst [vmem:[%s1681_s2 + $0x1f8] sm:$0xff] %v1553_v25  ;;  %v798_v45 = vmul.f32 %v1041_v23, %v1041_v23 }
 0x120   :  { %v484_v31 = vpop.f32.mrf.mxu0  ;;  %v1562_v32 = vpop.f32.mrf.mxu1  ;;  %v804_v18 = vmul.f32 %v1346_v4, %v1346_v4 }
 0x121   :  { %v858_v35 = vadd.f32 %v857_v30, %v795_v28  ;;  %653 = vst [vmem:[%s1681_s2 + $0xe8] sm:$0xff] %v484_v31  ;;  %v723_v36 = vadd.f32 %v722_v26, %v484_v31  ;;  %v796_v37 = vmul.f32 %v484_v31, %v484_v31  ;;  %685 = vst [vmem:[%s1681_s2 + $0x1e8] sm:$0xff] %v1562_v32 }
 0x122   :  { %v807_v28 = vmul.f32 %v1364_v14, %v1364_v14 }
 0x123   :  { %v724_v42 = vadd.f32 %v1040_v7, %v723_v36  ;;  %v859_v43 = vadd.f32 %v858_v35, %v796_v37  ;;  %v808_v35 = vmul.f32 %v1382_v24, %v1382_v24 }
 0x125   :  { %v725_v49 = vadd.f32 %v1041_v23, %v724_v42  ;;  %v860_v51 = vadd.f32 %v859_v43, %v797_v38  ;;  %v811_v43 = vmul.f32 %v1400_v34, %v1400_v34 }
 0x127   :  { %v861_v55 = vadd.f32 %v860_v51, %v798_v45  ;;  %v726_v56 = vadd.f32 %v725_v49, %v1292_v44  ;;  %v812_v51 = vmul.f32 %v1418_v47, %v1418_v47 }
 0x129   :  { %v727_v59 = vadd.f32 %v726_v56, %v1310_v48  ;;  %v862_v62 = vadd.f32 %v861_v55, %v799_v52 }
 0x12b   :  { %v728_v3 = vadd.f32 %v1277_v41, %v727_v59  ;;  %v863_v5 = vadd.f32 %v862_v62, %v800_v61  ;;  %v805_v41 = vmul.f32 %v1319_v53, %v1319_v53  ;;  %v815_v61 = vmul.f32 %v1436_v60, %v1436_v60 }
 0x12d   :  { %v864_v7 = vadd.f32 %v863_v5, %v801_v0  ;;  %v729_v11 = vadd.f32 %v1301_v46, %v728_v3  ;;  %v806_v46 = vmul.f32 %v1337_v63, %v1337_v63  ;;  %v816_v3 = vmul.f32 %v1454_v8, %v1454_v8 }
 0x12f   :  { %v730_v44 = vadd.f32 %v729_v11, %v1328_v58  ;;  %v865_v13 = vadd.f32 %v864_v7, %v802_v6 }
 0x131   :  { %v866_v48 = vadd.f32 %v865_v13, %v803_v12  ;;  %v731_v16 = vadd.f32 %v730_v44, %v1346_v4  ;;  %v819_v44 = vmul.f32 %v1472_v21, %v1472_v21 }
 0x133   :  { %v732_v20 = vadd.f32 %v1319_v53, %v731_v16  ;;  %v867_v22 = vadd.f32 %v866_v48, %v804_v18  ;;  %v809_v53 = vmul.f32 %v1355_v9, %v1355_v9  ;;  %v820_v48 = vmul.f32 %v1490_v33, %v1490_v33 }
 0x135   :  { %v868_v23 = vadd.f32 %v867_v22, %v805_v41  ;;  %v733_v26 = vadd.f32 %v1337_v63, %v732_v20  ;;  %v810_v63 = vmul.f32 %v1373_v19, %v1373_v19  ;;  %v823_v22 = vmul.f32 %v1508_v50, %v1508_v50 }
 0x137   :  { %v734_v58 = vadd.f32 %v733_v26, %v1364_v14  ;;  %v869_v30 = vadd.f32 %v868_v23, %v806_v46  ;;  %v824_v26 = vmul.f32 %v1526_v1, %v1526_v1 }
 0x139   :  { %v870_v31 = vadd.f32 %v869_v30, %v807_v28  ;;  %v735_v4 = vadd.f32 %v734_v58, %v1382_v24 }
 0x13b   :  { %v736_v36 = vadd.f32 %v1355_v9, %v735_v4  ;;  %v871_v37 = vadd.f32 %v870_v31, %v808_v35  ;;  %v813_v9 = vmul.f32 %v1391_v29, %v1391_v29  ;;  %v827_v4 = vmul.f32 %v1544_v17, %v1544_v17 }
 0x13d   :  { %v872_v38 = vadd.f32 %v871_v37, %v809_v53  ;;  %v737_v42 = vadd.f32 %v1373_v19, %v736_v36  ;;  %v814_v19 = vmul.f32 %v1409_v39, %v1409_v39  ;;  %v828_v36 = vmul.f32 %v1562_v32, %v1562_v32 }
 0x13f   :  { %v738_v14 = vadd.f32 %v737_v42, %v1400_v34  ;;  %v873_v45 = vadd.f32 %v872_v38, %v810_v63 }
 0x141   :  { %v874_v49 = vadd.f32 %v873_v45, %v811_v43  ;;  %v739_v24 = vadd.f32 %v738_v14, %v1418_v47 }
 0x143   :  { %v740_v52 = vadd.f32 %v1391_v29, %v739_v24  ;;  %v875_v55 = vadd.f32 %v874_v49, %v812_v51  ;;  %v817_v29 = vmul.f32 %v1427_v54, %v1427_v54 }
 0x145   :  { %v876_v56 = vadd.f32 %v875_v55, %v813_v9  ;;  %v741_v59 = vadd.f32 %v1409_v39, %v740_v52  ;;  %v818_v39 = vmul.f32 %v1445_v2, %v1445_v2 }
 0x147   :  { %v742_v34 = vadd.f32 %v741_v59, %v1436_v60  ;;  %v877_v62 = vadd.f32 %v876_v56, %v814_v19 }
 0x149   :  { %v878_v0 = vadd.f32 %v877_v62, %v815_v61  ;;  %v743_v47 = vadd.f32 %v742_v34, %v1454_v8 }
 0x14b   :  { %v744_v5 = vadd.f32 %v1427_v54, %v743_v47  ;;  %v879_v6 = vadd.f32 %v878_v0, %v816_v3  ;;  %v821_v54 = vmul.f32 %v1463_v15, %v1463_v15 }
 0x14d   :  { %v880_v7 = vadd.f32 %v879_v6, %v817_v29  ;;  %v745_v11 = vadd.f32 %v1445_v2, %v744_v5  ;;  %v822_v2 = vmul.f32 %v1481_v27, %v1481_v27 }
 0x14f   :  { %v746_v60 = vadd.f32 %v745_v11, %v1472_v21  ;;  %v881_v12 = vadd.f32 %v880_v7, %v818_v39 }
 0x151   :  { %v882_v13 = vadd.f32 %v881_v12, %v819_v44  ;;  %v747_v8 = vadd.f32 %v746_v60, %v1490_v33 }
 0x153   :  { %v748_v16 = vadd.f32 %v1463_v15, %v747_v8  ;;  %v883_v18 = vadd.f32 %v882_v13, %v820_v48  ;;  %v825_v15 = vmul.f32 %v1499_v40, %v1499_v40 }
 0x155   :  { %v884_v41 = vadd.f32 %v883_v18, %v821_v54  ;;  %v749_v20 = vadd.f32 %v1481_v27, %v748_v16  ;;  %v826_v27 = vmul.f32 %v1517_v57, %v1517_v57 }
 0x157   :  { %v750_v21 = vadd.f32 %v749_v20, %v1508_v50  ;;  %v885_v46 = vadd.f32 %v884_v41, %v822_v2 }
 0x159   :  { %v886_v23 = vadd.f32 %v885_v46, %v823_v22  ;;  %v751_v33 = vadd.f32 %v750_v21, %v1526_v1 }
 0x15b   :  { %v752_v58 = vadd.f32 %v1499_v40, %v751_v33  ;;  %v887_v28 = vadd.f32 %v886_v23, %v824_v26  ;;  %v829_v40 = vmul.f32 %v1535_v10, %v1535_v10 }
 0x15d   :  { %v888_v30 = vadd.f32 %v887_v28, %v825_v15  ;;  %v753_v31 = vadd.f32 %v1517_v57, %v752_v58  ;;  %v830_v57 = vmul.f32 %v1553_v25, %v1553_v25 }
 0x15f   :  { %v754_v50 = vadd.f32 %v753_v31, %v1544_v17  ;;  %v889_v35 = vadd.f32 %v888_v30, %v826_v27 }
 0x161   :  { %v890_v53 = vadd.f32 %v889_v35, %v827_v4  ;;  %v755_v1 = vadd.f32 %v754_v50, %v1562_v32 }
 0x163   :  { %v756_v37 = vadd.f32 %v1535_v10, %v755_v1  ;;  %v891_v63 = vadd.f32 %v890_v53, %v828_v36  ;;  %v694_v10 = vld [vmem:[%s1682_s3] sm:$0x1] }
 0x165   :  { %v757_v38 = vadd.f32 %v1553_v25, %v756_v37  ;;  %v892_v42 = vadd.f32 %v891_v63, %v829_v40  ;;  %v766_v25 = vld [vmem:[%s1683_s4] sm:$0x1] }
 0x167   :  { %v758_v17 = vrot.slane %v757_v38, 4  ;;  %v893_v14 = vadd.f32 %v892_v42, %v830_v57 }
 0x169   :  { %v759_v43 = vadd.f32 %v758_v17, %v757_v38  ;;  %v894_v45 = vrot.slane %v893_v14, 4 }
 0x16b   :  { %v760_v49 = vrot.slane %v759_v43, 2  ;;  %v895_v24 = vadd.f32 %v894_v45, %v893_v14 }
 0x16d   :  { %v761_v51 = vadd.f32 %v760_v49, %v759_v43  ;;  %v896_v32 = vrot.slane %v895_v24, 2 }
 0x16f   :  { %v762_v9 = vrot.slane %v761_v51, 1  ;;  %v897_v52 = vadd.f32 %v896_v32, %v895_v24 }
 0x171   :  { %v763_v55 = vadd.f32 %v762_v9, %v761_v51  ;;  %v898_v19 = vrot.slane %v897_v52, 1 }
 0x173   :  { %v764_v56 = vadd.f32 %v763_v55, %v694_v10  ;;  %v899_v59 = vadd.f32 %v898_v19, %v897_v52 }
 0x175   :  { %765 = vst [vmem:[%s1682_s3] sm:$0x1] %v764_v56  ;;  %v900_v34 = vadd.f32 %v899_v59, %v766_v25 }
 0x177   :  { %901 = vst [vmem:[%s1683_s4] sm:$0x1] %v900_v34 }

// kernel: _lambda_.21
= control target key start
LH: loop header
LB: loop body
LE: loop exit
PB: predicated region body
PF: predicated region fallthrough
CT: control target
= control target key end

     0   :  { %v587_v32 = vmov 0.0   ;;  %s799_s1 = inlined_call_operand.vmem [shape: bf16[256,128], index: 1, kind: input, shape index: {}]   ;;  %s800_s0 = inlined_call_operand.vmem [shape: bf16[128,256], index: 0, kind: input, shape index: {}]   ;;  %s801_s3 = inlined_call_operand.vmem [shape: f32[1,128], index: 3, kind: output, shape index: {1}]   ;;  %s802_s4 = inlined_call_operand.vmem [shape: f32[1,128], index: 4, kind: output, shape index: {2}]   ;;  %s803_s2 = inlined_call_operand.vmem [shape: f32[128,128], index: 2, kind: output, shape index: {0}]  }
   0x1   :  { %v547_v0 = vld [vmem:[%s799_s1 + $0x78] sm:$0xff]   ;;  %v549_v2 = vld [vmem:[%s799_s1 + $0x70] sm:$0xff]   ;;  %v551_v4 = vld [vmem:[%s799_s1 + $0x68] sm:$0xff]   ;;  %356 = vst [vmem:[%s801_s3] sm:$0x1] %v587_v32 }
   0x2   :  { %v548_v1 = vld [vmem:[%s799_s1 + $0x38] sm:$0xff]   ;;  %466 = vmatprep.subr.bf16.mxu0 %v547_v0  ;;  %530 = vmatprep.subr.bf16.mxu1 %v547_v0  ;;  %v550_v3 = vld [vmem:[%s799_s1 + $0x30] sm:$0xff]   ;;  %v552_v5 = vld [vmem:[%s799_s1 + $0x28] sm:$0xff]   ;;  %357 = vst [vmem:[%s802_s4] sm:$0x1] %v587_v32 }
   0x3   :  { %467 = vmatpush3.bf16.msra.mxu0 %v548_v1  ;;  %538 = vmatpush3.bf16.msra.mxu1 %v548_v1  ;;  %v553_v6 = vld [vmem:[%s799_s1 + $0x60] sm:$0xff]   ;;  %v555_v8 = vld [vmem:[%s799_s1 + $0x58] sm:$0xff]   ;;  %v557_v10 = vld [vmem:[%s799_s1 + $0x50] sm:$0xff]  }
   0x4   :  { %468 = vmatprep.subr.bf16.mxu0 %v549_v2  ;;  %531 = vmatprep.subr.bf16.mxu1 %v549_v2  ;;  %v554_v7 = vld [vmem:[%s799_s1 + $0x20] sm:$0xff]   ;;  %v556_v9 = vld [vmem:[%s799_s1 + $0x18] sm:$0xff]   ;;  %v558_v12 = vld [vmem:[%s799_s1 + $0x10] sm:$0xff]  }
   0x5   :  { %v565_v11 = vld [vmem:[%s800_s0 + $0x4] ss:$8 sps:$4 sm:$0xff]   ;;  %v563_v18 = vld [vmem:[%s800_s0] ss:$8 sps:$4 sm:$0xff]   ;;  %v566_v20 = vld [vmem:[%s800_s0 + $0x14] ss:$8 sps:$4 sm:$0xff]  }
   0x6   :  { %v571_v13 = vld [vmem:[%s800_s0 + $0x44] ss:$8 sps:$4 sm:$0xff]   ;;  %271 = vmatprep.mubr.bf16.mxu0 %v565_v11  ;;  %v569_v19 = vld [vmem:[%s800_s0 + $0x40] ss:$8 sps:$4 sm:$0xff]   ;;  %v575_v21 = vld [vmem:[%s800_s0 + $0x54] ss:$8 sps:$4 sm:$0xff]  }
   0x7   :  { %469 = vmatpush3.bf16.msra.mxu0 %v550_v3  ;;  %539 = vmatpush3.bf16.msra.mxu1 %v550_v3  ;;  %v559_v14 = vld [vmem:[%s799_s1 + $0x48] sm:$0xff]   ;;  %v561_v16 = vld [vmem:[%s799_s1 + $0x40] sm:$0xff]   ;;  %v568_v22 = vld [vmem:[%s800_s0 + $0x10] ss:$8 sps:$4 sm:$0xff]  }
   0x8   :  { %470 = vmatprep.subr.bf16.mxu0 %v551_v4  ;;  %532 = vmatprep.subr.bf16.mxu1 %v551_v4  ;;  %v560_v15 = vld [vmem:[%s799_s1 + $0x8] sm:$0xff]   ;;  %v562_v17 = vld [vmem:[%s799_s1] sm:$0xff]   ;;  %v577_v23 = vld [vmem:[%s800_s0 + $0x50] ss:$8 sps:$4 sm:$0xff]  }
   0x9   :  { %303 = vmatprep.mubr.bf16.mxu1 %v571_v13  ;;  %v572_v24 = vld [vmem:[%s800_s0 + $0x24] ss:$8 sps:$4 sm:$0xff]   ;;  %v574_v26 = vld [vmem:[%s800_s0 + $0x20] ss:$8 sps:$4 sm:$0xff]   ;;  %v578_v28 = vld [vmem:[%s800_s0 + $0x34] ss:$8 sps:$4 sm:$0xff]  }
   0xa   :  { %v581_v25 = vld [vmem:[%s800_s0 + $0x64] ss:$8 sps:$4 sm:$0xff]   ;;  %v583_v27 = vld [vmem:[%s800_s0 + $0x60] ss:$8 sps:$4 sm:$0xff]   ;;  %v584_v29 = vld [vmem:[%s800_s0 + $0x74] ss:$8 sps:$4 sm:$0xff]  }
   0xb   :  { %471 = vmatpush3.bf16.msra.mxu0 %v552_v5  ;;  %540 = vmatpush3.bf16.msra.mxu1 %v552_v5  ;;  %v580_v30 = vld [vmem:[%s800_s0 + $0x30] ss:$8 sps:$4 sm:$0xff]  }
   0xc   :  { %472 = vmatprep.subr.bf16.mxu0 %v553_v6  ;;  %533 = vmatprep.subr.bf16.mxu1 %v553_v6  ;;  %v586_v31 = vld [vmem:[%s800_s0 + $0x70] ss:$8 sps:$4 sm:$0xff]  }
   0xf   :  { %473 = vmatpush3.bf16.msra.mxu0 %v554_v7  ;;  %541 = vmatpush3.bf16.msra.mxu1 %v554_v7 }
  0x10   :  { %474 = vmatprep.subr.bf16.mxu0 %v555_v8  ;;  %534 = vmatprep.subr.bf16.mxu1 %v555_v8 }
  0x13   :  { %475 = vmatpush3.bf16.msra.mxu0 %v556_v9  ;;  %542 = vmatpush3.bf16.msra.mxu1 %v556_v9 }
  0x14   :  { %476 = vmatprep.subr.bf16.mxu0 %v557_v10  ;;  %535 = vmatprep.subr.bf16.mxu1 %v557_v10 }
  0x17   :  { %477 = vmatpush3.bf16.msra.mxu0 %v558_v12  ;;  %543 = vmatpush3.bf16.msra.mxu1 %v558_v12 }
  0x18   :  { %478 = vmatprep.subr.bf16.mxu0 %v559_v14  ;;  %536 = vmatprep.subr.bf16.mxu1 %v559_v14 }
  0x1b   :  { %479 = vmatpush3.bf16.msra.mxu0 %v560_v15  ;;  %544 = vmatpush3.bf16.msra.mxu1 %v560_v15 }
  0x1c   :  { %480 = vmatprep.subr.bf16.mxu0 %v561_v16  ;;  %537 = vmatprep.subr.bf16.mxu1 %v561_v16 }
  0x1f   :  { %481 = vmatpush3.bf16.msra.mxu0 %v562_v17  ;;  %545 = vmatpush3.bf16.msra.mxu1 %v562_v17 }
  0x22   :  { %272 = vmatmul.mubr.bf16.vlgmr.msra.gmra.mxu0 %v563_v18  ;;  %304 = vmatmul.mubr.bf16.vlgmr.msra.gmra.mxu1 %v569_v19 }
  0x23   :  { %279 = vmatprep.mubr.bf16.mxu0 %v566_v20  ;;  %311 = vmatprep.mubr.bf16.mxu1 %v575_v21 }
  0x2a   :  { %280 = vmatmul.mubr.bf16.gmra.mxu0 %v568_v22  ;;  %312 = vmatmul.mubr.bf16.gmra.mxu1 %v577_v23 }
  0x2b   :  { %287 = vmatprep.mubr.bf16.mxu0 %v572_v24  ;;  %319 = vmatprep.mubr.bf16.mxu1 %v581_v25 }
  0x32   :  { %288 = vmatmul.mubr.bf16.gmra.mxu0 %v574_v26  ;;  %320 = vmatmul.mubr.bf16.gmra.mxu1 %v583_v27 }
  0x33   :  { %295 = vmatprep.mubr.bf16.mxu0 %v578_v28  ;;  %327 = vmatprep.mubr.bf16.mxu1 %v584_v29 }
  0x3a   :  { %296 = vmatmul.mubr.bf16.gmra.mxu0 %v580_v30  ;;  %328 = vmatmul.mubr.bf16.gmra.mxu1 %v586_v31 }
  0xe2   :  { %v482_v33 = vpop.f32.mrf.mxu0  ;;  %v506_v34 = vpop.f32.mrf.mxu1 }
  0xe4   :  { %v483_v35 = vpop.f32.mrf.mxu0  ;;  %v507_v36 = vpop.f32.mrf.mxu1 }
  0xe5   :  { %v484_v37 = vadd.f32 %v483_v35, %v482_v33  ;;  %v715_v38 = vadd.f32 %v507_v36, %v506_v34 }
  0xe6   :  { %v485_v39 = vpop.f32.mrf.mxu0  ;;  %v509_v40 = vpop.f32.mrf.mxu1 }
  0xe7   :  { %336 = vst [vmem:[%s803_s2] sm:$0xff] %v484_v37  ;;  %344 = vst [vmem:[%s803_s2 + $0x40] sm:$0xff] %v715_v38  ;;  %v383_v0 = vmul.f32 %v484_v37, %v484_v37 }
  0xe8   :  { %v486_v41 = vpop.f32.mrf.mxu0  ;;  %v510_v42 = vpop.f32.mrf.mxu1 }
  0xe9   :  { %v487_v43 = vadd.f32 %v486_v41, %v485_v39  ;;  %v724_v44 = vadd.f32 %v510_v42, %v509_v40  ;;  %v391_v39 = vmul.f32 %v715_v38, %v715_v38 }
  0xea   :  { %v488_v45 = vpop.f32.mrf.mxu0  ;;  %v512_v46 = vpop.f32.mrf.mxu1 }
  0xeb   :  { %337 = vst [vmem:[%s803_s2 + $0x8] sm:$0xff] %v487_v43  ;;  %345 = vst [vmem:[%s803_s2 + $0x48] sm:$0xff] %v724_v44  ;;  %v384_v59 = vmul.f32 %v487_v43, %v487_v43  ;;  %v359_v4 = vadd.f32 %v487_v43, %v484_v37  ;;  %v392_v42 = vmul.f32 %v724_v44, %v724_v44 }
  0xec   :  { %v489_v47 = vpop.f32.mrf.mxu0  ;;  %v513_v48 = vpop.f32.mrf.mxu1 }
  0xed   :  { %v490_v49 = vadd.f32 %v489_v47, %v488_v45  ;;  %v733_v50 = vadd.f32 %v513_v48, %v512_v46  ;;  %v399_v5 = vadd.f32 %v384_v59, %v383_v0 }
  0xee   :  { %v491_v51 = vpop.f32.mrf.mxu0  ;;  %v515_v52 = vpop.f32.mrf.mxu1 }
  0xef   :  { %338 = vst [vmem:[%s803_s2 + $0x10] sm:$0xff] %v490_v49  ;;  %346 = vst [vmem:[%s803_s2 + $0x50] sm:$0xff] %v733_v50  ;;  %v385_v1 = vmul.f32 %v490_v49, %v490_v49  ;;  %v360_v9 = vadd.f32 %v490_v49, %v359_v4  ;;  %v393_v46 = vmul.f32 %v733_v50, %v733_v50 }
  0xf0   :  { %v492_v53 = vpop.f32.mrf.mxu0  ;;  %v516_v54 = vpop.f32.mrf.mxu1 }
  0xf1   :  { %v493_v55 = vadd.f32 %v492_v53, %v491_v51  ;;  %v742_v56 = vadd.f32 %v516_v54, %v515_v52  ;;  %v400_v12 = vadd.f32 %v399_v5, %v385_v1 }
  0xf2   :  { %v494_v57 = vpop.f32.mrf.mxu0  ;;  %v518_v58 = vpop.f32.mrf.mxu1 }
  0xf3   :  { %339 = vst [vmem:[%s803_s2 + $0x18] sm:$0xff] %v493_v55  ;;  %347 = vst [vmem:[%s803_s2 + $0x58] sm:$0xff] %v742_v56  ;;  %v386_v6 = vmul.f32 %v493_v55, %v493_v55  ;;  %v361_v15 = vadd.f32 %v493_v55, %v360_v9  ;;  %v394_v49 = vmul.f32 %v742_v56, %v742_v56 }
  0xf4   :  { %v495_v60 = vpop.f32.mrf.mxu0  ;;  %v519_v61 = vpop.f32.mrf.mxu1 }
  0xf5   :  { %v496_v62 = vadd.f32 %v495_v60, %v494_v57  ;;  %v520_v63 = vadd.f32 %v519_v61, %v518_v58  ;;  %v401_v17 = vadd.f32 %v400_v12, %v386_v6 }
  0xf6   :  { %v497_v2 = vpop.f32.mrf.mxu0  ;;  %v521_v3 = vpop.f32.mrf.mxu1 }
  0xf7   :  { %340 = vst [vmem:[%s803_s2 + $0x20] sm:$0xff] %v496_v62  ;;  %348 = vst [vmem:[%s803_s2 + $0x60] sm:$0xff] %v520_v63  ;;  %v387_v16 = vmul.f32 %v496_v62, %v496_v62  ;;  %v362_v20 = vadd.f32 %v496_v62, %v361_v15 }
  0xf8   :  { %v498_v7 = vpop.f32.mrf.mxu0  ;;  %v522_v8 = vpop.f32.mrf.mxu1 }
  0xf9   :  { %v499_v10 = vadd.f32 %v498_v7, %v497_v2  ;;  %v523_v11 = vadd.f32 %v522_v8, %v521_v3  ;;  %v402_v26 = vadd.f32 %v401_v17, %v387_v16  ;;  %v358_v8 = vld [vmem:[%s801_s3] sm:$0x1] }
  0xfa   :  { %v500_v13 = vpop.f32.mrf.mxu0  ;;  %v524_v14 = vpop.f32.mrf.mxu1 }
  0xfb   :  { %341 = vst [vmem:[%s803_s2 + $0x28] sm:$0xff] %v499_v10  ;;  %349 = vst [vmem:[%s803_s2 + $0x68] sm:$0xff] %v523_v11  ;;  %v388_v21 = vmul.f32 %v499_v10, %v499_v10  ;;  %v363_v27 = vadd.f32 %v499_v10, %v362_v20  ;;  %v396_v57 = vmul.f32 %v523_v11, %v523_v11 }
  0xfc   :  { %v501_v18 = vpop.f32.mrf.mxu0  ;;  %v525_v19 = vpop.f32.mrf.mxu1 }
  0xfd   :  { %v502_v22 = vadd.f32 %v501_v18, %v500_v13  ;;  %v526_v23 = vadd.f32 %v525_v19, %v524_v14  ;;  %v403_v31 = vadd.f32 %v402_v26, %v388_v21 }
  0xfe   :  { %v503_v24 = vpop.f32.mrf.mxu0  ;;  %v527_v25 = vpop.f32.mrf.mxu1 }
  0xff   :  { %342 = vst [vmem:[%s803_s2 + $0x30] sm:$0xff] %v502_v22  ;;  %v389_v28 = vmul.f32 %v502_v22, %v502_v22  ;;  %350 = vst [vmem:[%s803_s2 + $0x70] sm:$0xff] %v526_v23  ;;  %v364_v32 = vadd.f32 %v502_v22, %v363_v27  ;;  %v397_v60 = vmul.f32 %v526_v23, %v526_v23 }
 0x100   :  { %v504_v29 = vpop.f32.mrf.mxu0  ;;  %v528_v30 = vpop.f32.mrf.mxu1 }
 0x101   :  { %v505_v33 = vadd.f32 %v504_v29, %v503_v24  ;;  %v529_v34 = vadd.f32 %v528_v30, %v527_v25  ;;  %v404_v35 = vadd.f32 %v403_v31, %v389_v28 }
 0x103   :  { %343 = vst [vmem:[%s803_s2 + $0x38] sm:$0xff] %v505_v33  ;;  %v365_v36 = vadd.f32 %v505_v33, %v364_v32  ;;  %v390_v37 = vmul.f32 %v505_v33, %v505_v33  ;;  %351 = vst [vmem:[%s803_s2 + $0x78] sm:$0xff] %v529_v34  ;;  %v398_v0 = vmul.f32 %v529_v34, %v529_v34 }
 0x105   :  { %v366_v40 = vadd.f32 %v715_v38, %v365_v36  ;;  %v405_v41 = vadd.f32 %v404_v35, %v390_v37  ;;  %v395_v38 = vmul.f32 %v520_v63, %v520_v63 }
 0x107   :  { %v367_v43 = vadd.f32 %v724_v44, %v366_v40  ;;  %v406_v45 = vadd.f32 %v405_v41, %v391_v39 }
 0x109   :  { %v407_v47 = vadd.f32 %v406_v45, %v392_v42  ;;  %v368_v48 = vadd.f32 %v733_v50, %v367_v43 }
 0x10b   :  { %v369_v51 = vadd.f32 %v742_v56, %v368_v48  ;;  %v408_v52 = vadd.f32 %v407_v47, %v393_v46 }
 0x10d   :  { %v370_v53 = vadd.f32 %v520_v63, %v369_v51  ;;  %v409_v54 = vadd.f32 %v408_v52, %v394_v49 }
 0x10f   :  { %v371_v55 = vadd.f32 %v523_v11, %v370_v53  ;;  %v410_v58 = vadd.f32 %v409_v54, %v395_v38  ;;  %v382_v11 = vld [vmem:[%s802_s4] sm:$0x1] }
 0x111   :  { %v411_v44 = vadd.f32 %v410_v58, %v396_v57  ;;  %v372_v59 = vadd.f32 %v526_v23, %v371_v55 }
 0x113   :  { %v412_v61 = vadd.f32 %v411_v44, %v397_v60  ;;  %v373_v62 = vadd.f32 %v529_v34, %v372_v59 }
 0x115   :  { %v374_v1 = vrot.slane %v373_v62, 4  ;;  %v413_v50 = vadd.f32 %v412_v61, %v398_v0 }
 0x117   :  { %v375_v2 = vadd.f32 %v374_v1, %v373_v62  ;;  %v414_v3 = vrot.slane %v413_v50, 4 }
 0x119   :  { %v376_v4 = vrot.slane %v375_v2, 2  ;;  %v415_v5 = vadd.f32 %v414_v3, %v413_v50 }
 0x11b   :  { %v377_v56 = vadd.f32 %v376_v4, %v375_v2  ;;  %v416_v6 = vrot.slane %v415_v5, 2 }
 0x11d   :  { %v378_v7 = vrot.slane %v377_v56, 1  ;;  %v417_v63 = vadd.f32 %v416_v6, %v415_v5 }
 0x11f   :  { %v379_v9 = vadd.f32 %v378_v7, %v377_v56  ;;  %v418_v10 = vrot.slane %v417_v63, 1 }
 0x121   :  { %v380_v12 = vadd.f32 %v379_v9, %v358_v8  ;;  %v419_v13 = vadd.f32 %v418_v10, %v417_v63 }
 0x123   :  { %381 = vst [vmem:[%s801_s3] sm:$0x1] %v380_v12  ;;  %v420_v14 = vadd.f32 %v419_v13, %v382_v11 }
 0x125   :  { %421 = vst [vmem:[%s802_s4] sm:$0x1] %v420_v14 }

// kernel: _lambda_.22
= control target key start
LH: loop header
LB: loop body
LE: loop exit
PB: predicated region body
PF: predicated region fallthrough
CT: control target
= control target key end

     0   :  { %s423_s0 = inlined_call_operand.vmem [shape: f32[128,128], index: 0, kind: input, shape index: {}]   ;;  %s424_s1 = inlined_call_operand.vmem [shape: f32[1,128], index: 1, kind: input, shape index: {}]   ;;  %s425_s2 = inlined_call_operand.vmem [shape: f32[1,128], index: 2, kind: input, shape index: {}]   ;;  %s426_s3 = inlined_call_operand.vmem [shape: bf16[128,128], index: 3, kind: output, shape index: {}]  }
   0x1   :  { %v14_v0 = vld [vmem:[%s423_s0] sm:$0xff]  ;;  %v15_v1 = vld [vmem:[%s423_s0 + $0x8] sm:$0xff]  ;;  %v16_v6 = vld [vmem:[%s423_s0 + $0x10] sm:$0xff] }
   0x2   :  { %v318_v2 = vld [vmem:[%s424_s1] ss:$0 sm:$0xff]  ;;  %v17_v7 = vld [vmem:[%s423_s0 + $0x18] sm:$0xff]  ;;  %v19_v11 = vld [vmem:[%s423_s0 + $0x28] sm:$0xff] }
   0x3   :  { %v37_v3 = vmul.f32 %v318_v2, %v14_v0  ;;  %v38_v4 = vmul.f32 %v318_v2, %v15_v1  ;;  %v325_v5 = vld [vmem:[%s425_s2] ss:$0 sm:$0xff]  ;;  %v39_v8 = vmul.f32 %v318_v2, %v16_v6  ;;  %v40_v9 = vmul.f32 %v318_v2, %v17_v7  ;;  %v20_v12 = vld [vmem:[%s423_s0 + $0x30] sm:$0xff]  ;;  %v21_v17 = vld [vmem:[%s423_s0 + $0x38] sm:$0xff] }
   0x4   :  { %v18_v10 = vld [vmem:[%s423_s0 + $0x20] sm:$0xff]  ;;  %v42_v16 = vmul.f32 %v318_v2, %v19_v11  ;;  %v43_v20 = vmul.f32 %v318_v2, %v20_v12  ;;  %v44_v21 = vmul.f32 %v318_v2, %v21_v17  ;;  %v23_v35 = vld [vmem:[%s423_s0 + $0x48] sm:$0xff]  ;;  %v24_v36 = vld [vmem:[%s423_s0 + $0x50] sm:$0xff] }
   0x5   :  { %v60_v13 = vadd.f32 %v325_v5, %v37_v3  ;;  %v61_v14 = vadd.f32 %v325_v5, %v38_v4  ;;  %v41_v15 = vmul.f32 %v318_v2, %v18_v10  ;;  %v62_v18 = vadd.f32 %v325_v5, %v39_v8  ;;  %v22_v34 = vld [vmem:[%s423_s0 + $0x40] sm:$0xff]  ;;  %v25_v42 = vld [vmem:[%s423_s0 + $0x58] sm:$0xff]  ;;  %v27_v48 = vld [vmem:[%s423_s0 + $0x68] sm:$0xff] }
   0x6   :  { %v63_v19 = vadd.f32 %v325_v5, %v40_v9  ;;  %v65_v29 = vadd.f32 %v325_v5, %v42_v16  ;;  %v66_v33 = vadd.f32 %v325_v5, %v43_v20  ;;  %v67_v40 = vadd.f32 %v325_v5, %v44_v21  ;;  %v26_v47 = vld [vmem:[%s423_s0 + $0x60] sm:$0xff]  ;;  %v28_v60 = vld [vmem:[%s423_s0 + $0x70] sm:$0xff]  ;;  %v29_v7 = vld [vmem:[%s423_s0 + $0x78] sm:$0xff] }
   0x7   :  { %vm76_vm0 = vcmp.ge.f32.partialorder %v60_v13, 0.0  ;;  %vm77_vm1 = vcmp.ge.f32.partialorder %v61_v14, 0.0  ;;  %v92_v22 = vmul.f32 0.1, %v60_v13  ;;  %v93_v23 = vmul.f32 0.1, %v61_v14 }
   0x8   :  { %vm78_vm2 = vcmp.ge.f32.partialorder %v62_v18, 0.0  ;;  %vm79_vm3 = vcmp.ge.f32.partialorder %v63_v19, 0.0  ;;  %v94_v24 = vmul.f32 0.1, %v62_v18  ;;  %v95_v25 = vmul.f32 0.1, %v63_v19 }
   0x9   :  { %v108_v26 = vsel %vm76_vm0, %v60_v13, %v92_v22  ;;  %v109_v27 = vsel %vm77_vm1, %v61_v14, %v93_v23  ;;  %v64_v28 = vadd.f32 %v325_v5, %v41_v15  ;;  %vm81_vm5 = vcmp.ge.f32.partialorder %v65_v29, 0.0 }
   0xa   :  { %v245_v30 = vpack.c.bf16 %v109_v27, %v108_v26  ;;  %v110_v31 = vsel %vm78_vm2, %v62_v18, %v94_v24  ;;  %v111_v32 = vsel %vm79_vm3, %v63_v19, %v95_v25  ;;  %v97_v39 = vmul.f32 0.1, %v65_v29 }
   0xb   :  { %v250_v37 = vpack.c.bf16 %v111_v32, %v110_v31  ;;  %vm80_vm4 = vcmp.ge.f32.partialorder %v64_v28, 0.0  ;;  %v96_v38 = vmul.f32 0.1, %v64_v28  ;;  %vm82_vm6 = vcmp.ge.f32.partialorder %v66_v33, 0.0 }
   0xc   :  { %246 = vst [vmem:[%s426_s3] sm:$0xff] %v245_v30   ;;  %v98_v41 = vmul.f32 0.1, %v66_v33  ;;  %v45_v44 = vmul.f32 %v318_v2, %v22_v34  ;;  %v46_v45 = vmul.f32 %v318_v2, %v23_v35  ;;  %v47_v46 = vmul.f32 %v318_v2, %v24_v36 }
   0xd   :  { %282 = vst [vmem:[%s426_s3 + $0x8] sm:$0xff] %v250_v37   ;;  %v112_v43 = vsel %vm80_vm4, %v64_v28, %v96_v38  ;;  %v113_v49 = vsel %vm81_vm5, %v65_v29, %v97_v39  ;;  %vm83_vm7 = vcmp.ge.f32.partialorder %v67_v40, 0.0  ;;  %v99_v50 = vmul.f32 0.1, %v67_v40 }
   0xe   :  { %v114_v51 = vsel %vm82_vm6, %v66_v33, %v98_v41  ;;  %v255_v52 = vpack.c.bf16 %v113_v49, %v112_v43  ;;  %v68_v53 = vadd.f32 %v325_v5, %v45_v44  ;;  %v69_v54 = vadd.f32 %v325_v5, %v46_v45 }
   0xf   :  { %v48_v55 = vmul.f32 %v318_v2, %v25_v42  ;;  %v115_v56 = vsel %vm83_vm7, %v67_v40, %v99_v50  ;;  %v70_v57 = vadd.f32 %v325_v5, %v47_v46  ;;  %v49_v58 = vmul.f32 %v318_v2, %v26_v47 }
  0x10   :  { %v50_v59 = vmul.f32 %v318_v2, %v27_v48  ;;  %283 = vst [vmem:[%s426_s3 + $0x10] sm:$0xff] %v255_v52   ;;  %v260_v61 = vpack.c.bf16 %v115_v56, %v114_v51  ;;  %vm84_vm8 = vcmp.ge.f32.partialorder %v68_v53, 0.0  ;;  %vm85_vm9 = vcmp.ge.f32.partialorder %v69_v54, 0.0 }
  0x11   :  { %v100_v62 = vmul.f32 0.1, %v68_v53  ;;  %v101_v63 = vmul.f32 0.1, %v69_v54  ;;  %v71_v0 = vadd.f32 %v325_v5, %v48_v55  ;;  %vm86_vm10 = vcmp.ge.f32.partialorder %v70_v57, 0.0 }
  0x12   :  { %v102_v1 = vmul.f32 0.1, %v70_v57  ;;  %284 = vst [vmem:[%s426_s3 + $0x18] sm:$0xff] %v260_v61   ;;  %v72_v4 = vadd.f32 %v325_v5, %v49_v58  ;;  %v73_v6 = vadd.f32 %v325_v5, %v50_v59  ;;  %v51_v8 = vmul.f32 %v318_v2, %v28_v60 }
  0x13   :  { %v116_v3 = vsel %vm84_vm8, %v68_v53, %v100_v62  ;;  %v117_v9 = vsel %vm85_vm9, %v69_v54, %v101_v63  ;;  %vm87_vm11 = vcmp.ge.f32.partialorder %v71_v0, 0.0  ;;  %v103_v10 = vmul.f32 0.1, %v71_v0 }
  0x14   :  { %v118_v11 = vsel %vm86_vm10, %v70_v57, %v102_v1  ;;  %v265_v12 = vpack.c.bf16 %v117_v9, %v116_v3  ;;  %vm88_vm12 = vcmp.ge.f32.partialorder %v72_v4, 0.0  ;;  %vm89_vm13 = vcmp.ge.f32.partialorder %v73_v6, 0.0 }
  0x15   :  { %v104_v13 = vmul.f32 0.1, %v72_v4  ;;  %v119_v14 = vsel %vm87_vm11, %v71_v0, %v103_v10  ;;  %v105_v15 = vmul.f32 0.1, %v73_v6  ;;  %v52_v16 = vmul.f32 %v318_v2, %v29_v7 }
  0x16   :  { %v74_v17 = vadd.f32 %v325_v5, %v51_v8  ;;  %285 = vst [vmem:[%s426_s3 + $0x20] sm:$0xff] %v265_v12   ;;  %v270_v18 = vpack.c.bf16 %v119_v14, %v118_v11 }
  0x17   :  { %v120_v19 = vsel %vm88_vm12, %v72_v4, %v104_v13  ;;  %v121_v20 = vsel %vm89_vm13, %v73_v6, %v105_v15  ;;  %v75_v21 = vadd.f32 %v325_v5, %v52_v16 }
  0x18   :  { %vm90_vm14 = vcmp.ge.f32.partialorder %v74_v17, 0.0  ;;  %v106_v22 = vmul.f32 0.1, %v74_v17  ;;  %286 = vst [vmem:[%s426_s3 + $0x28] sm:$0xff] %v270_v18   ;;  %v275_v23 = vpack.c.bf16 %v121_v20, %v120_v19 }
  0x19   :  { %vm91_vm15 = vcmp.ge.f32.partialorder %v75_v21, 0.0  ;;  %v107_v2 = vmul.f32 0.1, %v75_v21 }
  0x1a   :  { %v122_v24 = vsel %vm90_vm14, %v74_v17, %v106_v22  ;;  %287 = vst [vmem:[%s426_s3 + $0x30] sm:$0xff] %v275_v23  }
  0x1b   :  { %v123_v25 = vsel %vm91_vm15, %v75_v21, %v107_v2 }
  0x1c   :  { %v280_v26 = vpack.c.bf16 %v123_v25, %v122_v24 }
  0x1e   :  { %288 = vst [vmem:[%s426_s3 + $0x38] sm:$0xff] %v280_v26  }

// kernel: _lambda_.25
= control target key start
LH: loop header
LB: loop body
LE: loop exit
PB: predicated region body
PF: predicated region fallthrough
CT: control target
= control target key end

     0   :  { %v608_v40 = vmov 0.0   ;;  %s784_s1 = inlined_call_operand.vmem [shape: bf16[512,128], index: 1, kind: input, shape index: {}]   ;;  %s785_s0 = inlined_call_operand.vmem [shape: bf16[32,512], index: 0, kind: input, shape index: {}]   ;;  %s786_s3 = inlined_call_operand.vmem [shape: f32[1,128], index: 3, kind: output, shape index: {1}]   ;;  %s787_s4 = inlined_call_operand.vmem [shape: f32[1,128], index: 4, kind: output, shape index: {2}]   ;;  %s788_s2 = inlined_call_operand.vmem [shape: f32[32,128], index: 2, kind: output, shape index: {0}]  }
   0x1   :  { %v564_v0 = vld [vmem:[%s784_s1 + $0x78] sm:$0xff]   ;;  %v568_v4 = vld [vmem:[%s784_s1 + $0x70] sm:$0xff]   ;;  %v572_v8 = vld [vmem:[%s784_s1 + $0x68] sm:$0xff]   ;;  %425 = vst [vmem:[%s786_s3] sm:$0x1] %v608_v40 }
   0x2   :  { %v565_v1 = vld [vmem:[%s784_s1 + $0xf8] sm:$0xff]   ;;  %507 = vmatprep.subr.bf16.mxu0 %v564_v0  ;;  %v569_v5 = vld [vmem:[%s784_s1 + $0xf0] sm:$0xff]   ;;  %v573_v9 = vld [vmem:[%s784_s1 + $0xe8] sm:$0xff]   ;;  %426 = vst [vmem:[%s787_s4] sm:$0x1] %v608_v40 }
   0x3   :  { %v566_v2 = vld [vmem:[%s784_s1 + $0x38] sm:$0xff]   ;;  %535 = vmatprep.subr.bf16.mxu1 %v565_v1  ;;  %v570_v6 = vld [vmem:[%s784_s1 + $0x30] sm:$0xff]   ;;  %v574_v10 = vld [vmem:[%s784_s1 + $0x28] sm:$0xff]  }
   0x4   :  { %v567_v3 = vld [vmem:[%s784_s1 + $0xb8] sm:$0xff]   ;;  %508 = vmatpush3.bf16.msra.mxu0 %v566_v2  ;;  %v571_v7 = vld [vmem:[%s784_s1 + $0xb0] sm:$0xff]   ;;  %v575_v11 = vld [vmem:[%s784_s1 + $0xa8] sm:$0xff]  }
   0x5   :  { %536 = vmatpush3.bf16.msra.mxu1 %v567_v3  ;;  %509 = vmatprep.subr.bf16.mxu0 %v568_v4  ;;  %v576_v12 = vld [vmem:[%s784_s1 + $0x60] sm:$0xff]   ;;  %v580_v16 = vld [vmem:[%s784_s1 + $0x58] sm:$0xff]   ;;  %v584_v20 = vld [vmem:[%s784_s1 + $0x50] sm:$0xff]  }
   0x6   :  { %537 = vmatprep.subr.bf16.mxu1 %v569_v5  ;;  %v577_v13 = vld [vmem:[%s784_s1 + $0xe0] sm:$0xff]   ;;  %v581_v17 = vld [vmem:[%s784_s1 + $0xd8] sm:$0xff]   ;;  %v585_v21 = vld [vmem:[%s784_s1 + $0xd0] sm:$0xff]  }
   0x7   :  { %v578_v14 = vld [vmem:[%s784_s1 + $0x20] sm:$0xff]   ;;  %v582_v18 = vld [vmem:[%s784_s1 + $0x18] sm:$0xff]   ;;  %v586_v22 = vld [vmem:[%s784_s1 + $0x10] sm:$0xff]  }
   0x8   :  { %510 = vmatpush3.bf16.msra.mxu0 %v570_v6  ;;  %v579_v15 = vld [vmem:[%s784_s1 + $0xa0] sm:$0xff]   ;;  %v583_v19 = vld [vmem:[%s784_s1 + $0x98] sm:$0xff]   ;;  %v587_v23 = vld [vmem:[%s784_s1 + $0x90] sm:$0xff]  }
   0x9   :  { %538 = vmatpush3.bf16.msra.mxu1 %v571_v7  ;;  %511 = vmatprep.subr.bf16.mxu0 %v572_v8  ;;  %v588_v24 = vld [vmem:[%s784_s1 + $0x48] sm:$0xff]   ;;  %v592_v28 = vld [vmem:[%s784_s1 + $0x40] sm:$0xff]  }
   0xa   :  { %539 = vmatprep.subr.bf16.mxu1 %v573_v9  ;;  %v589_v25 = vld [vmem:[%s784_s1 + $0xc8] sm:$0xff]   ;;  %v593_v29 = vld [vmem:[%s784_s1 + $0xc0] sm:$0xff]  }
   0xb   :  { %v590_v26 = vld [vmem:[%s784_s1 + $0x8] sm:$0xff]   ;;  %v594_v30 = vld [vmem:[%s784_s1] sm:$0xff]  }
   0xc   :  { %512 = vmatpush3.bf16.msra.mxu0 %v574_v10  ;;  %v591_v27 = vld [vmem:[%s784_s1 + $0x88] sm:$0xff]   ;;  %v595_v31 = vld [vmem:[%s784_s1 + $0x80] sm:$0xff]  }
   0xd   :  { %540 = vmatpush3.bf16.msra.mxu1 %v575_v11  ;;  %513 = vmatprep.subr.bf16.mxu0 %v576_v12  ;;  %v596_v32 = vld [vmem:[%s785_s0] ss:$16 sps:$4 sm:$0xff]   ;;  %v598_v33 = vld [vmem:[%s785_s0 + $0x4] ss:$16 sps:$4 sm:$0xff]   ;;  %v599_v34 = vld [vmem:[%s785_s0 + $0x8] ss:$16 sps:$4 sm:$0xff]  }
   0xe   :  { %541 = vmatprep.subr.bf16.mxu1 %v577_v13  ;;  %v601_v35 = vld [vmem:[%s785_s0 + $0xc] ss:$16 sps:$4 sm:$0xff]   ;;  %351 = vmatprep.mubr.bf16.mxu0 %v598_v33  ;;  %v602_v36 = vld [vmem:[%s785_s0 + $0x24] ss:$16 sps:$4 sm:$0xff]   ;;  %v606_v38 = vld [vmem:[%s785_s0 + $0x20] ss:$16 sps:$4 sm:$0xff]  }
   0xf   :  { %400 = vmatprep.mubr.bf16.mxu1 %v601_v35  ;;  %v604_v37 = vld [vmem:[%s785_s0 + $0x2c] ss:$16 sps:$4 sm:$0xff]   ;;  %v607_v39 = vld [vmem:[%s785_s0 + $0x28] ss:$16 sps:$4 sm:$0xff]  }
  0x10   :  { %514 = vmatpush3.bf16.msra.mxu0 %v578_v14 }
  0x11   :  { %542 = vmatpush3.bf16.msra.mxu1 %v579_v15  ;;  %515 = vmatprep.subr.bf16.mxu0 %v580_v16 }
  0x12   :  { %543 = vmatprep.subr.bf16.mxu1 %v581_v17 }
  0x14   :  { %516 = vmatpush3.bf16.msra.mxu0 %v582_v18 }
  0x15   :  { %544 = vmatpush3.bf16.msra.mxu1 %v583_v19  ;;  %517 = vmatprep.subr.bf16.mxu0 %v584_v20 }
  0x16   :  { %545 = vmatprep.subr.bf16.mxu1 %v585_v21 }
  0x18   :  { %518 = vmatpush3.bf16.msra.mxu0 %v586_v22 }
  0x19   :  { %546 = vmatpush3.bf16.msra.mxu1 %v587_v23  ;;  %519 = vmatprep.subr.bf16.mxu0 %v588_v24  ;;  %v427_v24 = vld [vmem:[%s786_s3] sm:$0x1] }
  0x1a   :  { %547 = vmatprep.subr.bf16.mxu1 %v589_v25 }
  0x1c   :  { %520 = vmatpush3.bf16.msra.mxu0 %v590_v26 }
  0x1d   :  { %548 = vmatpush3.bf16.msra.mxu1 %v591_v27  ;;  %521 = vmatprep.subr.bf16.mxu0 %v592_v28  ;;  %v439_v27 = vld [vmem:[%s787_s4] sm:$0x1] }
  0x1e   :  { %549 = vmatprep.subr.bf16.mxu1 %v593_v29 }
  0x20   :  { %522 = vmatpush3.bf16.msra.mxu0 %v594_v30 }
  0x21   :  { %550 = vmatpush3.bf16.msra.mxu1 %v595_v31 }
  0x23   :  { %352 = vmatmul.mubr.bf16.vlgmr.msra.gmra.mxu0 %v596_v32 }
  0x24   :  { %401 = vmatmul.mubr.bf16.vlgmr.msra.gmra.mxu1 %v599_v34  ;;  %359 = vmatprep.mubr.bf16.mxu0 %v602_v36 }
  0x25   :  { %408 = vmatprep.mubr.bf16.mxu1 %v604_v37 }
  0x2b   :  { %360 = vmatmul.mubr.bf16.gmra.mxu0 %v606_v38 }
  0x2c   :  { %409 = vmatmul.mubr.bf16.gmra.mxu1 %v607_v39 }
  0xe3   :  { %v523_v41 = vpop.f32.mrf.mxu0 }
  0xe4   :  { %v551_v42 = vpop.f32.mrf.mxu1 }
  0xe5   :  { %v524_v43 = vpop.f32.mrf.mxu0 }
  0xe6   :  { %v525_v44 = vadd.f32 %v524_v43, %v523_v41  ;;  %v552_v45 = vpop.f32.mrf.mxu1 }
  0xe7   :  { %v553_v46 = vadd.f32 %v552_v45, %v551_v42  ;;  %v526_v47 = vpop.f32.mrf.mxu0 }
  0xe8   :  { %v554_v48 = vpop.f32.mrf.mxu1 }
  0xe9   :  { %v403_v49 = vadd.f32 %v553_v46, %v525_v44  ;;  %v527_v50 = vpop.f32.mrf.mxu0 }
  0xea   :  { %v528_v51 = vadd.f32 %v527_v50, %v526_v47  ;;  %v555_v52 = vpop.f32.mrf.mxu1 }
  0xeb   :  { %417 = vst [vmem:[%s788_s2] sm:$0xff] %v403_v49  ;;  %v556_v53 = vadd.f32 %v555_v52, %v554_v48  ;;  %v529_v54 = vpop.f32.mrf.mxu0  ;;  %v440_v4 = vmul.f32 %v403_v49, %v403_v49 }
  0xec   :  { %v557_v55 = vpop.f32.mrf.mxu1 }
  0xed   :  { %v406_v56 = vadd.f32 %v556_v53, %v528_v51  ;;  %v530_v57 = vpop.f32.mrf.mxu0 }
  0xee   :  { %v531_v58 = vadd.f32 %v530_v57, %v529_v54  ;;  %v558_v59 = vpop.f32.mrf.mxu1 }
  0xef   :  { %418 = vst [vmem:[%s788_s2 + $0x8] sm:$0xff] %v406_v56  ;;  %v559_v60 = vadd.f32 %v558_v59, %v557_v55  ;;  %v532_v61 = vpop.f32.mrf.mxu0  ;;  %v441_v63 = vmul.f32 %v406_v56, %v406_v56  ;;  %v428_v5 = vadd.f32 %v406_v56, %v403_v49 }
  0xf0   :  { %v560_v62 = vpop.f32.mrf.mxu1 }
  0xf1   :  { %v411_v0 = vadd.f32 %v559_v60, %v531_v58  ;;  %v533_v1 = vpop.f32.mrf.mxu0  ;;  %v444_v8 = vadd.f32 %v441_v63, %v440_v4 }
  0xf2   :  { %v534_v2 = vadd.f32 %v533_v1, %v532_v61  ;;  %v561_v3 = vpop.f32.mrf.mxu1 }
  0xf3   :  { %419 = vst [vmem:[%s788_s2 + $0x10] sm:$0xff] %v411_v0  ;;  %v442_v6 = vmul.f32 %v411_v0, %v411_v0  ;;  %v562_v7 = vadd.f32 %v561_v3, %v560_v62  ;;  %v429_v9 = vadd.f32 %v428_v5, %v411_v0 }
  0xf5   :  { %v414_v10 = vadd.f32 %v562_v7, %v534_v2  ;;  %v445_v11 = vadd.f32 %v444_v8, %v442_v6 }
  0xf7   :  { %420 = vst [vmem:[%s788_s2 + $0x18] sm:$0xff] %v414_v10  ;;  %v430_v12 = vadd.f32 %v429_v9, %v414_v10  ;;  %v443_v13 = vmul.f32 %v414_v10, %v414_v10 }
  0xf9   :  { %v431_v14 = vrot.slane %v430_v12, 4  ;;  %v446_v15 = vadd.f32 %v445_v11, %v443_v13 }
  0xfb   :  { %v432_v16 = vadd.f32 %v431_v14, %v430_v12  ;;  %v447_v17 = vrot.slane %v446_v15, 4 }
  0xfd   :  { %v433_v18 = vrot.slane %v432_v16, 2  ;;  %v448_v19 = vadd.f32 %v447_v17, %v446_v15 }
  0xff   :  { %v434_v20 = vadd.f32 %v433_v18, %v432_v16  ;;  %v449_v21 = vrot.slane %v448_v19, 2 }
 0x101   :  { %v435_v22 = vrot.slane %v434_v20, 1  ;;  %v450_v23 = vadd.f32 %v449_v21, %v448_v19 }
 0x103   :  { %v436_v25 = vadd.f32 %v435_v22, %v434_v20  ;;  %v451_v26 = vrot.slane %v450_v23, 1 }
 0x105   :  { %v437_v28 = vadd.f32 %v436_v25, %v427_v24  ;;  %v452_v29 = vadd.f32 %v451_v26, %v450_v23 }
 0x107   :  { %438 = vst [vmem:[%s786_s3] sm:$0x1] %v437_v28  ;;  %v453_v30 = vadd.f32 %v452_v29, %v439_v27 }
 0x109   :  { %454 = vst [vmem:[%s787_s4] sm:$0x1] %v453_v30 }

// kernel: _lambda_.26
= control target key start
LH: loop header
LB: loop body
LE: loop exit
PB: predicated region body
PF: predicated region fallthrough
CT: control target
= control target key end

     0   :  { %s141_s0 = inlined_call_operand.vmem [shape: f32[32,128], index: 0, kind: input, shape index: {}]   ;;  %s142_s1 = inlined_call_operand.vmem [shape: f32[1,128], index: 1, kind: input, shape index: {}]   ;;  %s143_s2 = inlined_call_operand.vmem [shape: f32[1,128], index: 2, kind: input, shape index: {}]   ;;  %s144_s3 = inlined_call_operand.vmem [shape: bf16[32,128], index: 3, kind: output, shape index: {}]  }
   0x1   :  { %v14_v0 = vld [vmem:[%s141_s0] sm:$0xff]  ;;  %v15_v1 = vld [vmem:[%s141_s0 + $0x8] sm:$0xff]  ;;  %v16_v6 = vld [vmem:[%s141_s0 + $0x10] sm:$0xff] }
   0x2   :  { %v76_v2 = vld [vmem:[%s142_s1] ss:$0 sm:$0xff]  ;;  %v17_v7 = vld [vmem:[%s141_s0 + $0x18] sm:$0xff] }
   0x3   :  { %v25_v3 = vmul.f32 %v76_v2, %v14_v0  ;;  %v26_v4 = vmul.f32 %v76_v2, %v15_v1  ;;  %v77_v5 = vld [vmem:[%s143_s2] ss:$0 sm:$0xff]  ;;  %v27_v8 = vmul.f32 %v76_v2, %v16_v6  ;;  %v28_v9 = vmul.f32 %v76_v2, %v17_v7 }
   0x5   :  { %v36_v10 = vadd.f32 %v77_v5, %v25_v3  ;;  %v37_v11 = vadd.f32 %v77_v5, %v26_v4  ;;  %v38_v12 = vadd.f32 %v77_v5, %v27_v8  ;;  %v39_v13 = vadd.f32 %v77_v5, %v28_v9 }
   0x7   :  { %vm40_vm0 = vcmp.ge.f32.partialorder %v36_v10, 0.0  ;;  %vm41_vm1 = vcmp.ge.f32.partialorder %v37_v11, 0.0  ;;  %v44_v14 = vmul.f32 0.1, %v36_v10  ;;  %v45_v15 = vmul.f32 0.1, %v37_v11 }
   0x8   :  { %vm42_vm2 = vcmp.ge.f32.partialorder %v38_v12, 0.0  ;;  %vm43_vm3 = vcmp.ge.f32.partialorder %v39_v13, 0.0  ;;  %v46_v16 = vmul.f32 0.1, %v38_v12  ;;  %v47_v17 = vmul.f32 0.1, %v39_v13 }
   0x9   :  { %v48_v18 = vsel %vm40_vm0, %v36_v10, %v44_v14  ;;  %v49_v19 = vsel %vm41_vm1, %v37_v11, %v45_v15 }
   0xa   :  { %v89_v20 = vpack.c.bf16 %v49_v19, %v48_v18  ;;  %v50_v21 = vsel %vm42_vm2, %v38_v12, %v46_v16  ;;  %v51_v22 = vsel %vm43_vm3, %v39_v13, %v47_v17 }
   0xb   :  { %v94_v23 = vpack.c.bf16 %v51_v22, %v50_v21 }
   0xc   :  { %90 = vst [vmem:[%s144_s3] sm:$0xff] %v89_v20  }
   0xd   :  { %96 = vst [vmem:[%s144_s3 + $0x8] sm:$0xff] %v94_v23  }

// kernel: _lambda_.27
= control target key start
LH: loop header
LB: loop body
LE: loop exit
PB: predicated region body
PF: predicated region fallthrough
CT: control target
= control target key end

     0   :  { %v516_v30 = vmov 0.0   ;;  %s662_s1 = inlined_call_operand.vmem [shape: bf16[384,128], index: 1, kind: input, shape index: {}]   ;;  %s663_s0 = inlined_call_operand.vmem [shape: bf16[32,384], index: 0, kind: input, shape index: {}]   ;;  %s664_s3 = inlined_call_operand.vmem [shape: f32[1,128], index: 3, kind: output, shape index: {1}]   ;;  %s665_s4 = inlined_call_operand.vmem [shape: f32[1,128], index: 4, kind: output, shape index: {2}]   ;;  %s666_s2 = inlined_call_operand.vmem [shape: f32[32,128], index: 2, kind: output, shape index: {0}]  }
   0x1   :  { %v484_v0 = vld [vmem:[%s662_s1 + $0x78] sm:$0xff]   ;;  %v487_v3 = vld [vmem:[%s662_s1 + $0x70] sm:$0xff]   ;;  %v490_v6 = vld [vmem:[%s662_s1 + $0x68] sm:$0xff]   ;;  %353 = vst [vmem:[%s664_s3] sm:$0x1] %v516_v30 }
   0x2   :  { %v485_v1 = vld [vmem:[%s662_s1 + $0xb8] sm:$0xff]   ;;  %425 = vmatprep.subr.bf16.mxu0 %v484_v0  ;;  %v488_v4 = vld [vmem:[%s662_s1 + $0xb0] sm:$0xff]   ;;  %v491_v7 = vld [vmem:[%s662_s1 + $0xa8] sm:$0xff]   ;;  %354 = vst [vmem:[%s665_s4] sm:$0x1] %v516_v30 }
   0x3   :  { %v486_v2 = vld [vmem:[%s662_s1 + $0x38] sm:$0xff]   ;;  %463 = vmatprep.subr.bf16.mxu1 %v485_v1  ;;  %v489_v5 = vld [vmem:[%s662_s1 + $0x30] sm:$0xff]   ;;  %v492_v8 = vld [vmem:[%s662_s1 + $0x28] sm:$0xff]  }
   0x4   :  { %426 = vmatpush3.bf16.msra.mxu0 %v486_v2  ;;  %464 = vmatpush3.bf16.msra.mxu1 %v485_v1  ;;  %v493_v9 = vld [vmem:[%s662_s1 + $0x60] sm:$0xff]   ;;  %v496_v12 = vld [vmem:[%s662_s1 + $0x58] sm:$0xff]   ;;  %v499_v15 = vld [vmem:[%s662_s1 + $0x50] sm:$0xff]  }
   0x5   :  { %427 = vmatprep.subr.bf16.mxu0 %v487_v3  ;;  %465 = vmatprep.subr.bf16.mxu1 %v488_v4  ;;  %v494_v10 = vld [vmem:[%s662_s1 + $0xa0] sm:$0xff]   ;;  %v497_v13 = vld [vmem:[%s662_s1 + $0x98] sm:$0xff]   ;;  %v500_v16 = vld [vmem:[%s662_s1 + $0x90] sm:$0xff]  }
   0x6   :  { %v495_v11 = vld [vmem:[%s662_s1 + $0x20] sm:$0xff]   ;;  %v498_v14 = vld [vmem:[%s662_s1 + $0x18] sm:$0xff]   ;;  %v501_v17 = vld [vmem:[%s662_s1 + $0x10] sm:$0xff]  }
   0x7   :  { %v502_v18 = vld [vmem:[%s662_s1 + $0x48] sm:$0xff]   ;;  %v505_v21 = vld [vmem:[%s662_s1 + $0x40] sm:$0xff]  }
   0x8   :  { %428 = vmatpush3.bf16.msra.mxu0 %v489_v5  ;;  %466 = vmatpush3.bf16.msra.mxu1 %v488_v4  ;;  %v503_v19 = vld [vmem:[%s662_s1 + $0x88] sm:$0xff]   ;;  %v506_v22 = vld [vmem:[%s662_s1 + $0x80] sm:$0xff]  }
   0x9   :  { %429 = vmatprep.subr.bf16.mxu0 %v490_v6  ;;  %467 = vmatprep.subr.bf16.mxu1 %v491_v7  ;;  %v504_v20 = vld [vmem:[%s662_s1 + $0x8] sm:$0xff]   ;;  %v510_v23 = vld [vmem:[%s663_s0 + $0x4] ss:$12 sps:$4 sm:$0xff]   ;;  %v355_v6 = vld [vmem:[%s664_s3] sm:$0x1] }
   0xa   :  { %v511_v24 = vld [vmem:[%s663_s0 + $0x8] ss:$12 sps:$4 sm:$0xff]   ;;  %279 = vmatprep.mubr.bf16.mxu0 %v510_v23  ;;  %v507_v25 = vld [vmem:[%s662_s1] sm:$0xff]  }
   0xb   :  { %479 = vmatprep.mubr.bf16.mxu1 %v511_v24  ;;  %v508_v26 = vld [vmem:[%s663_s0] ss:$12 sps:$4 sm:$0xff]   ;;  %v513_v28 = vld [vmem:[%s663_s0 + $0x1c] ss:$12 sps:$4 sm:$0xff]   ;;  %v515_v29 = vld [vmem:[%s663_s0 + $0x18] ss:$12 sps:$4 sm:$0xff]  }
   0xc   :  { %430 = vmatpush3.bf16.msra.mxu0 %v492_v8  ;;  %468 = vmatpush3.bf16.msra.mxu1 %v491_v7  ;;  %v512_v27 = vld [vmem:[%s663_s0 + $0x20] ss:$12 sps:$4 sm:$0xff]  }
   0xd   :  { %431 = vmatprep.subr.bf16.mxu0 %v493_v9  ;;  %469 = vmatprep.subr.bf16.mxu1 %v494_v10  ;;  %v367_v9 = vld [vmem:[%s665_s4] sm:$0x1] }
  0x10   :  { %432 = vmatpush3.bf16.msra.mxu0 %v495_v11  ;;  %470 = vmatpush3.bf16.msra.mxu1 %v494_v10 }
  0x11   :  { %433 = vmatprep.subr.bf16.mxu0 %v496_v12  ;;  %471 = vmatprep.subr.bf16.mxu1 %v497_v13 }
  0x14   :  { %434 = vmatpush3.bf16.msra.mxu0 %v498_v14  ;;  %472 = vmatpush3.bf16.msra.mxu1 %v497_v13 }
  0x15   :  { %435 = vmatprep.subr.bf16.mxu0 %v499_v15  ;;  %473 = vmatprep.subr.bf16.mxu1 %v500_v16 }
  0x18   :  { %436 = vmatpush3.bf16.msra.mxu0 %v501_v17  ;;  %474 = vmatpush3.bf16.msra.mxu1 %v500_v16 }
  0x19   :  { %437 = vmatprep.subr.bf16.mxu0 %v502_v18  ;;  %475 = vmatprep.subr.bf16.mxu1 %v503_v19 }
  0x1c   :  { %438 = vmatpush3.bf16.msra.mxu0 %v504_v20  ;;  %476 = vmatpush3.bf16.msra.mxu1 %v503_v19 }
  0x1d   :  { %439 = vmatprep.subr.bf16.mxu0 %v505_v21  ;;  %477 = vmatprep.subr.bf16.mxu1 %v506_v22 }
  0x20   :  { %440 = vmatpush3.bf16.msra.mxu0 %v507_v25  ;;  %478 = vmatpush3.bf16.msra.mxu1 %v506_v22 }
  0x23   :  { %280 = vmatmul.mubr.bf16.vlgmr.msra.gmra.mxu0 %v508_v26  ;;  %480 = vmatmul.mubr.bf16.vlgmr.msra.gmra.mxu1 %v512_v27 }
  0x24   :  { %287 = vmatprep.mubr.bf16.mxu0 %v513_v28 }
  0x2b   :  { %288 = vmatmul.mubr.bf16.gmra.mxu0 %v515_v29 }
  0xe3   :  { %v441_v31 = vpop.f32.mrf.mxu0  ;;  %v481_v32 = vpop.f32.mrf.mxu1 }
  0xe5   :  { %v442_v33 = vpop.f32.mrf.mxu0  ;;  %v330_v34 = vpop.f32.mrf.mxu1 }
  0xe6   :  { %v443_v35 = vadd.f32 %v442_v33, %v441_v31 }
  0xe7   :  { %v444_v36 = vpop.f32.mrf.mxu0  ;;  %v482_v37 = vpop.f32.mrf.mxu1 }
  0xe8   :  { %v331_v38 = vadd.f32 %v443_v35, %v330_v34 }
  0xe9   :  { %v445_v39 = vpop.f32.mrf.mxu0  ;;  %v333_v41 = vpop.f32.mrf.mxu1 }
  0xea   :  { %345 = vst [vmem:[%s666_s2] sm:$0xff] %v331_v38  ;;  %v446_v40 = vadd.f32 %v445_v39, %v444_v36  ;;  %v368_v50 = vmul.f32 %v331_v38, %v331_v38 }
  0xeb   :  { %v447_v42 = vpop.f32.mrf.mxu0 }
  0xec   :  { %v334_v43 = vadd.f32 %v446_v40, %v333_v41 }
  0xed   :  { %v448_v44 = vpop.f32.mrf.mxu0 }
  0xee   :  { %346 = vst [vmem:[%s666_s2 + $0x8] sm:$0xff] %v334_v43  ;;  %v449_v45 = vadd.f32 %v448_v44, %v447_v42  ;;  %v369_v47 = vmul.f32 %v334_v43, %v334_v43  ;;  %v356_v51 = vadd.f32 %v334_v43, %v331_v38 }
  0xef   :  { %v450_v46 = vpop.f32.mrf.mxu0 }
  0xf0   :  { %v339_v48 = vadd.f32 %v481_v32, %v449_v45  ;;  %v372_v54 = vadd.f32 %v369_v47, %v368_v50 }
  0xf1   :  { %v451_v49 = vpop.f32.mrf.mxu0 }
  0xf2   :  { %347 = vst [vmem:[%s666_s2 + $0x10] sm:$0xff] %v339_v48  ;;  %v370_v52 = vmul.f32 %v339_v48, %v339_v48  ;;  %v452_v53 = vadd.f32 %v451_v49, %v450_v46  ;;  %v357_v55 = vadd.f32 %v356_v51, %v339_v48 }
  0xf4   :  { %v342_v56 = vadd.f32 %v482_v37, %v452_v53  ;;  %v373_v57 = vadd.f32 %v372_v54, %v370_v52 }
  0xf6   :  { %348 = vst [vmem:[%s666_s2 + $0x18] sm:$0xff] %v342_v56  ;;  %v358_v58 = vadd.f32 %v357_v55, %v342_v56  ;;  %v371_v59 = vmul.f32 %v342_v56, %v342_v56 }
  0xf8   :  { %v359_v60 = vrot.slane %v358_v58, 4  ;;  %v374_v61 = vadd.f32 %v373_v57, %v371_v59 }
  0xfa   :  { %v360_v62 = vadd.f32 %v359_v60, %v358_v58  ;;  %v375_v63 = vrot.slane %v374_v61, 4 }
  0xfc   :  { %v361_v0 = vrot.slane %v360_v62, 2  ;;  %v376_v1 = vadd.f32 %v375_v63, %v374_v61 }
  0xfe   :  { %v362_v2 = vadd.f32 %v361_v0, %v360_v62  ;;  %v377_v3 = vrot.slane %v376_v1, 2 }
 0x100   :  { %v363_v4 = vrot.slane %v362_v2, 1  ;;  %v378_v5 = vadd.f32 %v377_v3, %v376_v1 }
 0x102   :  { %v364_v7 = vadd.f32 %v363_v4, %v362_v2  ;;  %v379_v8 = vrot.slane %v378_v5, 1 }
 0x104   :  { %v365_v10 = vadd.f32 %v364_v7, %v355_v6  ;;  %v380_v11 = vadd.f32 %v379_v8, %v378_v5 }
 0x106   :  { %366 = vst [vmem:[%s664_s3] sm:$0x1] %v365_v10  ;;  %v381_v12 = vadd.f32 %v380_v11, %v367_v9 }
 0x108   :  { %382 = vst [vmem:[%s665_s4] sm:$0x1] %v381_v12 }

// kernel: _lambda_.29
= control target key start
LH: loop header
LB: loop body
LE: loop exit
PB: predicated region body
PF: predicated region fallthrough
CT: control target
= control target key end

     0   :  { %s1175_s1 = inlined_call_operand.vmem [shape: bf16[1024,128], index: 1, kind: input, shape index: {}]   ;;  %s1176_s0 = inlined_call_operand.vmem [shape: bf16[8,1024], index: 0, kind: input, shape index: {}]   ;;  %s1177_s2 = inlined_call_operand.vmem [shape: f32[8,128], index: 2, kind: output, shape index: {}]  }
   0x1   :  { %v881_v0 = vld [vmem:[%s1175_s1 + $0x78] sm:$0xff]   ;;  %v885_v4 = vld [vmem:[%s1175_s1 + $0x70] sm:$0xff]   ;;  %v889_v8 = vld [vmem:[%s1175_s1 + $0x68] sm:$0xff]  }
   0x2   :  { %v882_v1 = vld [vmem:[%s1175_s1 + $0xf8] sm:$0xff]   ;;  %793 = vmatprep.subr.bf16.mxu0 %v881_v0  ;;  %v886_v5 = vld [vmem:[%s1175_s1 + $0xf0] sm:$0xff]   ;;  %v890_v9 = vld [vmem:[%s1175_s1 + $0xe8] sm:$0xff]  }
   0x3   :  { %v883_v2 = vld [vmem:[%s1175_s1 + $0x38] sm:$0xff]   ;;  %815 = vmatprep.subr.bf16.mxu1 %v882_v1  ;;  %v887_v6 = vld [vmem:[%s1175_s1 + $0x30] sm:$0xff]   ;;  %v891_v10 = vld [vmem:[%s1175_s1 + $0x28] sm:$0xff]  }
   0x4   :  { %v884_v3 = vld [vmem:[%s1175_s1 + $0xb8] sm:$0xff]   ;;  %794 = vmatpush3.bf16.msra.mxu0 %v883_v2  ;;  %v888_v7 = vld [vmem:[%s1175_s1 + $0xb0] sm:$0xff]   ;;  %v892_v11 = vld [vmem:[%s1175_s1 + $0xa8] sm:$0xff]  }
   0x5   :  { %816 = vmatpush3.bf16.msra.mxu1 %v884_v3  ;;  %795 = vmatprep.subr.bf16.mxu0 %v885_v4  ;;  %v893_v12 = vld [vmem:[%s1175_s1 + $0x60] sm:$0xff]   ;;  %v897_v16 = vld [vmem:[%s1175_s1 + $0x58] sm:$0xff]   ;;  %v901_v20 = vld [vmem:[%s1175_s1 + $0x50] sm:$0xff]  }
   0x6   :  { %817 = vmatprep.subr.bf16.mxu1 %v886_v5  ;;  %v894_v13 = vld [vmem:[%s1175_s1 + $0xe0] sm:$0xff]   ;;  %v898_v17 = vld [vmem:[%s1175_s1 + $0xd8] sm:$0xff]   ;;  %v902_v21 = vld [vmem:[%s1175_s1 + $0xd0] sm:$0xff]  }
   0x7   :  { %v895_v14 = vld [vmem:[%s1175_s1 + $0x20] sm:$0xff]   ;;  %v899_v18 = vld [vmem:[%s1175_s1 + $0x18] sm:$0xff]   ;;  %v903_v22 = vld [vmem:[%s1175_s1 + $0x10] sm:$0xff]  }
   0x8   :  { %796 = vmatpush3.bf16.msra.mxu0 %v887_v6  ;;  %v896_v15 = vld [vmem:[%s1175_s1 + $0xa0] sm:$0xff]   ;;  %v900_v19 = vld [vmem:[%s1175_s1 + $0x98] sm:$0xff]   ;;  %v904_v23 = vld [vmem:[%s1175_s1 + $0x90] sm:$0xff]  }
   0x9   :  { %818 = vmatpush3.bf16.msra.mxu1 %v888_v7  ;;  %797 = vmatprep.subr.bf16.mxu0 %v889_v8  ;;  %v905_v24 = vld [vmem:[%s1175_s1 + $0x48] sm:$0xff]   ;;  %v909_v28 = vld [vmem:[%s1175_s1 + $0x40] sm:$0xff]   ;;  %v917_v38 = vld [vmem:[%s1175_s1 + $0x178] sm:$0xff]  }
   0xa   :  { %819 = vmatprep.subr.bf16.mxu1 %v890_v9  ;;  %v906_v25 = vld [vmem:[%s1175_s1 + $0xc8] sm:$0xff]   ;;  %v910_v29 = vld [vmem:[%s1175_s1 + $0xc0] sm:$0xff]   ;;  %v918_v39 = vld [vmem:[%s1175_s1 + $0x1f8] sm:$0xff]  }
   0xb   :  { %v907_v26 = vld [vmem:[%s1175_s1 + $0x8] sm:$0xff]   ;;  %v911_v30 = vld [vmem:[%s1175_s1] sm:$0xff]   ;;  %v919_v40 = vld [vmem:[%s1175_s1 + $0x138] sm:$0xff]  }
   0xc   :  { %798 = vmatpush3.bf16.msra.mxu0 %v891_v10  ;;  %v908_v27 = vld [vmem:[%s1175_s1 + $0x88] sm:$0xff]   ;;  %v912_v31 = vld [vmem:[%s1175_s1 + $0x80] sm:$0xff]   ;;  %v920_v41 = vld [vmem:[%s1175_s1 + $0x1b8] sm:$0xff]  }
   0xd   :  { %820 = vmatpush3.bf16.msra.mxu1 %v892_v11  ;;  %799 = vmatprep.subr.bf16.mxu0 %v893_v12  ;;  %v12_v32 = vld [vmem:[%s1176_s0] sm:$0xff]  ;;  %v13_v33 = vld [vmem:[%s1176_s0 + $0x8] sm:$0xff]  ;;  %v921_v42 = vld [vmem:[%s1175_s1 + $0x170] sm:$0xff]  }
   0xe   :  { %821 = vmatprep.subr.bf16.mxu1 %v894_v13  ;;  %v721_v34 = vcombine.low %v12_v32, %v12_v32  ;;  %v722_v35 = vcombine.high %v12_v32, %v12_v32  ;;  %v723_v36 = vcombine.low %v13_v33, %v13_v33  ;;  %v724_v37 = vcombine.high %v13_v33, %v13_v33  ;;  %v922_v43 = vld [vmem:[%s1175_s1 + $0x1f0] sm:$0xff]   ;;  %v925_v46 = vld [vmem:[%s1175_s1 + $0x168] sm:$0xff]   ;;  %v929_v50 = vld [vmem:[%s1175_s1 + $0x160] sm:$0xff]  }
   0xf   :  { %v923_v44 = vld [vmem:[%s1175_s1 + $0x130] sm:$0xff]   ;;  %v926_v47 = vld [vmem:[%s1175_s1 + $0x1e8] sm:$0xff]   ;;  %v930_v51 = vld [vmem:[%s1175_s1 + $0x1e0] sm:$0xff]  }
  0x10   :  { %800 = vmatpush3.bf16.msra.mxu0 %v895_v14  ;;  %588 = vmatprep.mubr.bf16.mxu0 %v722_v35  ;;  %v924_v45 = vld [vmem:[%s1175_s1 + $0x1b0] sm:$0xff]   ;;  %v927_v48 = vld [vmem:[%s1175_s1 + $0x128] sm:$0xff]   ;;  %v931_v52 = vld [vmem:[%s1175_s1 + $0x120] sm:$0xff]  }
  0x11   :  { %822 = vmatpush3.bf16.msra.mxu1 %v896_v15  ;;  %801 = vmatprep.subr.bf16.mxu0 %v897_v16  ;;  %v928_v49 = vld [vmem:[%s1175_s1 + $0x1a8] sm:$0xff]   ;;  %v932_v53 = vld [vmem:[%s1175_s1 + $0x1a0] sm:$0xff]   ;;  %v933_v54 = vld [vmem:[%s1175_s1 + $0x158] sm:$0xff]  }
  0x12   :  { %823 = vmatprep.subr.bf16.mxu1 %v898_v17  ;;  %628 = vmatprep.mubr.bf16.mxu1 %v724_v37  ;;  %v934_v55 = vld [vmem:[%s1175_s1 + $0x1d8] sm:$0xff]   ;;  %v937_v58 = vld [vmem:[%s1175_s1 + $0x150] sm:$0xff]   ;;  %v941_v62 = vld [vmem:[%s1175_s1 + $0x148] sm:$0xff]  }
  0x13   :  { %v935_v56 = vld [vmem:[%s1175_s1 + $0x118] sm:$0xff]   ;;  %v938_v59 = vld [vmem:[%s1175_s1 + $0x1d0] sm:$0xff]   ;;  %v942_v63 = vld [vmem:[%s1175_s1 + $0x1c8] sm:$0xff]  }
  0x14   :  { %802 = vmatpush3.bf16.msra.mxu0 %v899_v18  ;;  %v936_v57 = vld [vmem:[%s1175_s1 + $0x198] sm:$0xff]   ;;  %v939_v60 = vld [vmem:[%s1175_s1 + $0x110] sm:$0xff]   ;;  %v943_v0 = vld [vmem:[%s1175_s1 + $0x108] sm:$0xff]  }
  0x15   :  { %824 = vmatpush3.bf16.msra.mxu1 %v900_v19  ;;  %803 = vmatprep.subr.bf16.mxu0 %v901_v20  ;;  %v940_v61 = vld [vmem:[%s1175_s1 + $0x190] sm:$0xff]   ;;  %v944_v1 = vld [vmem:[%s1175_s1 + $0x188] sm:$0xff]   ;;  %v945_v2 = vld [vmem:[%s1175_s1 + $0x140] sm:$0xff]  }
  0x16   :  { %825 = vmatprep.subr.bf16.mxu1 %v902_v21  ;;  %v946_v3 = vld [vmem:[%s1175_s1 + $0x1c0] sm:$0xff]   ;;  %v14_v6 = vld [vmem:[%s1176_s0 + $0x10] sm:$0xff]  ;;  %v15_v9 = vld [vmem:[%s1176_s0 + $0x18] sm:$0xff] }
  0x17   :  { %v947_v4 = vld [vmem:[%s1175_s1 + $0x100] sm:$0xff]   ;;  %v725_v7 = vcombine.low %v14_v6, %v14_v6  ;;  %v726_v8 = vcombine.high %v14_v6, %v14_v6  ;;  %v727_v10 = vcombine.low %v15_v9, %v15_v9  ;;  %v728_v11 = vcombine.high %v15_v9, %v15_v9 }
  0x18   :  { %804 = vmatpush3.bf16.msra.mxu0 %v903_v22  ;;  %v948_v5 = vld [vmem:[%s1175_s1 + $0x180] sm:$0xff]  }
  0x19   :  { %826 = vmatpush3.bf16.msra.mxu1 %v904_v23  ;;  %805 = vmatprep.subr.bf16.mxu0 %v905_v24 }
  0x1a   :  { %827 = vmatprep.subr.bf16.mxu1 %v906_v25 }
  0x1c   :  { %806 = vmatpush3.bf16.msra.mxu0 %v907_v26 }
  0x1d   :  { %828 = vmatpush3.bf16.msra.mxu1 %v908_v27  ;;  %807 = vmatprep.subr.bf16.mxu0 %v909_v28 }
  0x1e   :  { %829 = vmatprep.subr.bf16.mxu1 %v910_v29 }
  0x20   :  { %808 = vmatpush3.bf16.msra.mxu0 %v911_v30 }
  0x21   :  { %830 = vmatpush3.bf16.msra.mxu1 %v912_v31  ;;  %837 = vmatprep.subr.bf16.mxu0 %v917_v38 }
  0x22   :  { %859 = vmatprep.subr.bf16.mxu1 %v918_v39 }
  0x23   :  { %589 = vmatmul.mubr.bf16.vlgmr.msra.gmra.mxu0 %v721_v34 }
  0x24   :  { %629 = vmatmul.mubr.bf16.vlgmr.msra.gmra.mxu1 %v723_v36  ;;  %838 = vmatpush3.bf16.msra.mxu0 %v919_v40 }
  0x25   :  { %860 = vmatpush3.bf16.msra.mxu1 %v920_v41  ;;  %839 = vmatprep.subr.bf16.mxu0 %v921_v42 }
  0x26   :  { %861 = vmatprep.subr.bf16.mxu1 %v922_v43  ;;  %668 = vmatprep.mubr.bf16.mxu0 %v726_v8 }
  0x27   :  { %708 = vmatprep.mubr.bf16.mxu1 %v728_v11 }
  0x28   :  { %840 = vmatpush3.bf16.msra.mxu0 %v923_v44 }
  0x29   :  { %862 = vmatpush3.bf16.msra.mxu1 %v924_v45  ;;  %841 = vmatprep.subr.bf16.mxu0 %v925_v46 }
  0x2a   :  { %863 = vmatprep.subr.bf16.mxu1 %v926_v47 }
  0x2c   :  { %842 = vmatpush3.bf16.msra.mxu0 %v927_v48 }
  0x2d   :  { %864 = vmatpush3.bf16.msra.mxu1 %v928_v49  ;;  %843 = vmatprep.subr.bf16.mxu0 %v929_v50 }
  0x2e   :  { %865 = vmatprep.subr.bf16.mxu1 %v930_v51 }
  0x30   :  { %844 = vmatpush3.bf16.msra.mxu0 %v931_v52 }
  0x31   :  { %866 = vmatpush3.bf16.msra.mxu1 %v932_v53  ;;  %845 = vmatprep.subr.bf16.mxu0 %v933_v54 }
  0x32   :  { %867 = vmatprep.subr.bf16.mxu1 %v934_v55 }
  0x34   :  { %846 = vmatpush3.bf16.msra.mxu0 %v935_v56 }
  0x35   :  { %868 = vmatpush3.bf16.msra.mxu1 %v936_v57  ;;  %847 = vmatprep.subr.bf16.mxu0 %v937_v58 }
  0x36   :  { %869 = vmatprep.subr.bf16.mxu1 %v938_v59 }
  0x38   :  { %848 = vmatpush3.bf16.msra.mxu0 %v939_v60 }
  0x39   :  { %870 = vmatpush3.bf16.msra.mxu1 %v940_v61  ;;  %849 = vmatprep.subr.bf16.mxu0 %v941_v62 }
  0x3a   :  { %871 = vmatprep.subr.bf16.mxu1 %v942_v63 }
  0x3c   :  { %850 = vmatpush3.bf16.msra.mxu0 %v943_v0 }
  0x3d   :  { %872 = vmatpush3.bf16.msra.mxu1 %v944_v1  ;;  %851 = vmatprep.subr.bf16.mxu0 %v945_v2 }
  0x3e   :  { %873 = vmatprep.subr.bf16.mxu1 %v946_v3 }
  0x40   :  { %852 = vmatpush3.bf16.msra.mxu0 %v947_v4 }
  0x41   :  { %874 = vmatpush3.bf16.msra.mxu1 %v948_v5 }
  0x43   :  { %669 = vmatmul.mubr.bf16.vlgmr.msra.gmra.mxu0 %v725_v7 }
  0x44   :  { %709 = vmatmul.mubr.bf16.vlgmr.msra.gmra.mxu1 %v727_v10 }
  0xe3   :  { %v809_v12 = vpop.f32.mrf.mxu0 }
  0xe4   :  { %v831_v13 = vpop.f32.mrf.mxu1 }
  0xe5   :  { %v810_v14 = vpop.f32.mrf.mxu0 }
  0xe6   :  { %v832_v15 = vpop.f32.mrf.mxu1  ;;  %v811_v20 = vadd.f32 %v810_v14, %v809_v12 }
  0xe7   :  { %v812_v16 = vpop.f32.mrf.mxu0  ;;  %v833_v21 = vadd.f32 %v832_v15, %v831_v13 }
  0xe8   :  { %v834_v17 = vpop.f32.mrf.mxu1 }
  0xe9   :  { %v813_v18 = vpop.f32.mrf.mxu0  ;;  %v631_v26 = vadd.f32 %v833_v21, %v811_v20 }
  0xea   :  { %v835_v19 = vpop.f32.mrf.mxu1 }
 0x103   :  { %v853_v22 = vpop.f32.mrf.mxu0 }
 0x104   :  { %v875_v23 = vpop.f32.mrf.mxu1 }
 0x105   :  { %v854_v24 = vpop.f32.mrf.mxu0 }
 0x106   :  { %v876_v25 = vpop.f32.mrf.mxu1  ;;  %v855_v27 = vadd.f32 %v854_v24, %v853_v22 }
 0x107   :  { %v856_v28 = vpop.f32.mrf.mxu0  ;;  %v877_v31 = vadd.f32 %v876_v25, %v875_v23 }
 0x108   :  { %v878_v29 = vpop.f32.mrf.mxu1  ;;  %v671_v30 = vadd.f32 %v855_v27, %v631_v26 }
 0x109   :  { %v857_v32 = vpop.f32.mrf.mxu0 }
 0x10a   :  { %v879_v33 = vpop.f32.mrf.mxu1  ;;  %v711_v34 = vadd.f32 %v877_v31, %v671_v30 }
 0x10c   :  { %716 = vst [vmem:[%s1177_s2] sm:$0xff] %v711_v34 }

</bundles_post_ra>
